<compile_context>
chip_gen: v6e
topology: v6e:2x2x1
jax: 0.10.0
libtpu: 0.0.40
codegen_flags: <defaults>
</compile_context>

<pallas_src>
import math
from functools import partial

import jax
import jax.numpy as jnp
from jax.experimental import pallas as pl
from jax.experimental.pallas import tpu as pltpu

BN_EPS = 1e-5


# ----------------------------------------------------------------------------- activations

def _hswish(v):
    return v * jnp.clip(v + 3.0, 0.0, 6.0) * (1.0 / 6.0)


def _hsigmoid(v):
    return jnp.clip(v + 3.0, 0.0, 6.0) * (1.0 / 6.0)


def _ds(start, size, stride):
    return pl.ds(start, size) if stride == 1 else pl.ds(start, size, stride=stride)


# ----------------------------------------------------------------------------- fused kernel

def _make_block_kernel(*, k, stride, H, W, OH, OW, cin, hidden, cout,
                       has_exp, use_se, use_hs, identity, pad, Hp, Wp, Nb, R):
    """Fused InvertedResidual body; Nb images per grid step, channels-first layout."""

    M = OH * OW

    def act(v):
        return _hswish(v) if use_hs else jnp.maximum(v, 0.0)

    def kernel(*refs):
        it = iter(refs)
        x_ref = next(it)
        if has_exp:
            exp_w, exp_scale, exp_shift = next(it), next(it), next(it)
        dw_w, dw_scale, dw_shift = next(it), next(it), next(it)
        if use_se:
            se_w1, se_b1, se_w2, se_b2 = next(it), next(it), next(it), next(it)
        pw_w, pw_scale, pw_shift = next(it), next(it), next(it)
        o_ref = next(it)
        ypad_ref = next(it)      # [Hp, Wp, hidden] padded activation scratch
        z_ref = next(it)         # [M, hidden] depthwise output scratch

        # ---- zero only the halo border of the padded scratch; interior is fully
        #      overwritten for every image.  Runs every grid step (per-core scratch).
        if pad > 0:
            zrows = jnp.zeros((pad, Wp, hidden), jnp.float32)
            ypad_ref[pl.ds(0, pad), :, :] = zrows
            ypad_ref[pl.ds(pad + H, pad), :, :] = zrows
            zcols = jnp.zeros((Hp, pad, hidden), jnp.float32)
            ypad_ref[:, pl.ds(0, pad), :] = zcols
            ypad_ref[:, pl.ds(pad + W, pad), :] = zcols

        wdw = dw_w[...]          # [k*k, hidden] f32 (VPU path)
        dws = dw_scale[...]      # [1, hidden]
        dwb = dw_shift[...]      # [1, hidden]

        def se_scale(v_cf):
            # v_cf: [hidden, M] channels-first.  Two tiny FCs on the VPU/XLU (no M=1 MXU
            # matmuls on the critical path):  pool -> FC1+ReLU -> FC2+HSigmoid -> scale.
            g = jnp.mean(v_cf, axis=1, keepdims=True)                             # [hidden,1]
            h = jnp.sum(g * se_w1[...], axis=0, keepdims=True) + se_b1[...]        # [1, r]
            h = jnp.maximum(h, 0.0)
            s = jnp.sum(h * se_w2[...], axis=1, keepdims=True) + se_b2[...]        # [hidden,1]
            return v_cf * _hsigmoid(s)

        for n in range(Nb):                                   # images packed per grid step
            x_cf = x_ref[n]                                   # [cin, H*W] f32

            # ---- 1x1 expansion conv + folded BN + act (channels-first: W^T @ X) ----
            if has_exp:
                y_cf = jnp.dot(exp_w[...], x_cf.astype(jnp.bfloat16),
                               preferred_element_type=jnp.float32)                # [hidden,HW]
                y_cf = act(y_cf * exp_scale[...] + exp_shift[...])
            else:
                y_cf = x_cf                                                       # cin==hidden

            # ---- stage into padded [Hp, Wp, hidden] scratch (channels dense on lanes) ----
            ypad_ref[pl.ds(pad, H), pl.ds(pad, W), :] = y_cf.T.reshape(H, W, hidden)

            # ---- depthwise kxk conv + folded BN: row-tiled accumulation, taps read
            #      directly from the scratch ref with (strided) pl.ds slices ----
            for r0 in range(0, OH, R):
                rows = min(R, OH - r0)
                acc = None
                for kh in range(k):
                    rs = _ds(r0 * stride + kh, rows, stride)
                    for kw in range(k):
                        tap = ypad_ref[rs, _ds(kw, OW, stride), :]                # [rows,OW,hid]
                        term = tap.reshape(rows * OW, hidden) * wdw[kh * k + kw: kh * k + kw + 1]
                        acc = term if acc is None else acc + term
                z_ref[pl.ds(r0 * OW, rows * OW), :] = acc * dws + dwb             # one store

            # back to channels-first for SE / activation / projection
            z_cf = z_ref[...].T                                                   # [hidden, M]

            if has_exp:          # expand path:    dw -> BN -> SE -> act
                if use_se:
                    z_cf = se_scale(z_cf)
                z_cf = act(z_cf)
            else:                # no-expand path: dw -> BN -> act -> SE
                z_cf = act(z_cf)
                if use_se:
                    z_cf = se_scale(z_cf)

            # ---- 1x1 projection conv (W^T[cout,hidden] @ Z[hidden,M]) + BN (+ residual) ----
            out_cf = jnp.dot(pw_w[...], z_cf.astype(jnp.bfloat16),
                             preferred_element_type=jnp.float32)                  # [cout, M]
            out_cf = out_cf * pw_scale[...] + pw_shift[...]
            if identity:
                out_cf = out_cf + x_cf
            o_ref[n] = out_cf

    return kernel


# ----------------------------------------------------------------------------- wrapper

def _pick_nb(batch):
    # Pack images per grid step, but keep the grid length >= 2 (v7x megacore balance).
    for nb in (4, 2):
        if batch % nb == 0 and batch // nb >= 2:
            return nb
    return 1


def inverted_residual(params, x_nchw, *, k, stride, use_se, use_hs):
    """Eval-mode InvertedResidual forward.  NCHW in / NCHW out, like the PyTorch module."""
    x = x_nchw.astype(jnp.float32)
    B, cin, H, W = x.shape
    hidden = params['dw_w'].shape[1]
    cout = params['pw_w'].shape[0]
    has_exp = 'exp_w' in params
    if not has_exp:
        assert cin == hidden
    pad = (k - 1) // 2
    OH = (H + 2 * pad - k) // stride + 1
    OW = (W + 2 * pad - k) // stride + 1
    M = OH * OW
    identity = (stride == 1 and cin == cout)
    Hp, Wp = H + 2 * pad, W + 2 * pad
    Nb = _pick_nb(B)
    # ~4K-element depthwise accumulator chunk so it stays register-resident.
    R = max(1, min(OH, 4096 // max(OW * hidden, 1)))

    # NCHW -> channels-first [B, cin, H*W]: a free reshape, no HBM transpose pass.
    x2 = x.reshape(B, cin, H * W)

    args = [x2]
    in_specs = [pl.BlockSpec((Nb, cin, H * W), lambda b: (b, 0, 0))]

    def _add(*names):
        for name in names:
            a = params[name]
            args.append(a)
            # Constant block index -> fetched once, resident in VMEM across grid steps.
            in_specs.append(pl.BlockSpec(a.shape, lambda b, _nd=a.ndim: (0,) * _nd))

    if has_exp:
        _add('exp_w', 'exp_scale', 'exp_shift')
    _add('dw_w', 'dw_scale', 'dw_shift')
    if use_se:
        _add('se_w1', 'se_b1', 'se_w2', 'se_b2')
    _add('pw_w', 'pw_scale', 'pw_shift')

    kernel = _make_block_kernel(k=k, stride=stride, H=H, W=W, OH=OH, OW=OW,
                                cin=cin, hidden=hidden, cout=cout,
                                has_exp=has_exp, use_se=use_se, use_hs=use_hs,
                                identity=identity, pad=pad, Hp=Hp, Wp=Wp,
                                Nb=Nb, R=R)

    # Advisory cost estimate so XLA schedules around the custom call sensibly.
    flops = 2 * B * M * k * k * hidden + 2 * B * M * hidden * cout
    if has_exp:
        flops += 2 * B * H * W * cin * hidden
    if use_se:
        flops += 4 * B * hidden * params['se_w1'].shape[1]
    weight_bytes = sum(int(a.size * a.dtype.itemsize) for a in args[1:])
    bytes_accessed = int(x.size * 4 + weight_bytes + B * M * cout * 4)

    # Honest VMEM budget: double-buffered IO blocks + double-buffered resident weights
    # + both scratch buffers + live temporaries, capped against this chip's capacity
    # (64 MiB per TensorCore on v7x, 128 MiB on v5e/v6e).
    try:
        vmem_cap = int(pltpu.get_tpu_info().vmem_capacity_bytes)
    except Exception:                                             # pragma: no cover
        vmem_cap = 64 * 1024 * 1024                               # v7x-conservative fallback
    io_bytes = 2 * Nb * (cin * H * W + cout * M) * 4
    scratch_bytes = (Hp * Wp * hidden + M * hidden) * 4
    temp_bytes = 4 * hidden * max(H * W, M) * 4                   # y_cf/z_cf/transposes/acc
    need = 2 * weight_bytes + io_bytes + scratch_bytes + temp_bytes
    vmem_limit = int(min(max(2 * need, 32 * 1024 * 1024),
                         min(vmem_cap * 7 // 8, 128 * 1024 * 1024)))

    out = pl.pallas_call(
        kernel,
        grid=(B // Nb,),
        in_specs=in_specs,
        # Channels-first output block: last dim = OH*OW -> lane-dense HBM writeback.
        out_specs=pl.BlockSpec((Nb, cout, M), lambda b: (b, 0, 0)),
        out_shape=jax.ShapeDtypeStruct((B, cout, M), jnp.float32),
        scratch_shapes=[pltpu.VMEM((Hp, Wp, hidden), jnp.float32),
                        pltpu.VMEM((M, hidden), jnp.float32)],
        compiler_params=pltpu.CompilerParams(
            dimension_semantics=("parallel",),          # v7x: shard batch over both TCs
            vmem_limit_bytes=vmem_limit),
        cost_estimate=pl.CostEstimate(flops=int(flops), transcendentals=0,
                                      bytes_accessed=bytes_accessed),
    )(*args)
    # [B, cout, OH*OW] -> NCHW: a free reshape, no transpose.
    return out.reshape(B, cout, OH, OW)


# ----------------------------------------------------------------------------- pure-JAX reference

def inverted_residual_ref(params, x_nchw, *, k, stride, use_se, use_hs):
    x = x_nchw.astype(jnp.float32)
    B, cin, H, W = x.shape
    hidden = params['dw_w'].shape[1]
    cout = params['pw_w'].shape[0]
    has_exp = 'exp_w' in params
    act = _hswish if use_hs else (lambda v: jnp.maximum(v, 0.0))
    pad = (k - 1) // 2
    OH = (H + 2 * pad - k) // stride + 1
    OW = (W + 2 * pad - k) // stride + 1

    def dot_bf16(a, w):
        return jnp.dot(a.astype(jnp.bfloat16), w.astype(jnp.bfloat16),
                       preferred_element_type=jnp.float32)

    x_sm = jnp.transpose(x.reshape(B, cin, H * W), (0, 2, 1))        # [B, HW, cin]
    if has_exp:
        y = dot_bf16(x_sm, params['exp_w'].T)                        # [B, HW, hidden]
        y = act(y * params['exp_scale'].reshape(1, 1, hidden)
                + params['exp_shift'].reshape(1, 1, hidden))
    else:
        y = x_sm
    y4 = y.reshape(B, H, W, hidden)
    yp = jnp.pad(y4, ((0, 0), (pad, pad), (pad, pad), (0, 0)))
    wdw = params['dw_w']
    acc = jnp.zeros((B, OH, OW, hidden), jnp.float32)
    t = 0
    for kh in range(k):
        for kw in range(k):
            blk = yp[:, kh:kh + (OH - 1) * stride + 1:stride,
                     kw:kw + (OW - 1) * stride + 1:stride, :]
            acc = acc + blk * wdw[t]
            t += 1
    z = (acc * params['dw_scale'].reshape(1, 1, 1, hidden)
         + params['dw_shift'].reshape(1, 1, 1, hidden)).reshape(B, OH * OW, hidden)

    def se(v):
        g = jnp.mean(v, axis=1)                                      # [B, hidden]
        h = jnp.maximum(jnp.dot(g, params['se_w1']) + params['se_b1'], 0.0)
        s = _hsigmoid(jnp.dot(h, params['se_w2'].T)
                      + params['se_b2'].reshape(1, hidden))
        return v * s[:, None, :]

    if has_exp:
        if use_se:
            z = se(z)
        z = act(z)
    else:
        z = act(z)
        if use_se:
            z = se(z)

    out = dot_bf16(z, params['pw_w'].T)                              # [B, M, cout]
    out = out * params['pw_scale'].reshape(1, 1, cout) + params['pw_shift'].reshape(1, 1, cout)
    if stride == 1 and cin == cout:
        out = out + x_sm
    return jnp.transpose(out, (0, 2, 1)).reshape(B, cout, OH, OW)


# ----------------------------------------------------------------------------- params (eval-mode BN folded)

def init_block_params(key, *, cin, hidden, cout, k, use_se):
    keys = iter(jax.random.split(key, 24))
    nk = lambda: next(keys)

    def conv_w(shape, fan_in):
        return jax.random.normal(nk(), shape, jnp.float32) * math.sqrt(2.0 / fan_in)

    def folded_bn(c, col):
        gamma = 1.0 + 0.1 * jax.random.normal(nk(), (c,), jnp.float32)
        beta = 0.1 * jax.random.normal(nk(), (c,), jnp.float32)
        mean = 0.1 * jax.random.normal(nk(), (c,), jnp.float32)
        var = jnp.abs(1.0 + 0.1 * jax.random.normal(nk(), (c,), jnp.float32))
        scale = gamma / jnp.sqrt(var + BN_EPS)
        shift = beta - mean * scale
        if col:     # applied in channels-first [C, M] layout
            return scale.reshape(c, 1), shift.reshape(c, 1)
        return scale.reshape(1, c), shift.reshape(1, c)

    p = {}
    if cin != hidden:                               # expansion branch exists
        # 1x1 expand weight stored channel-major [hidden, cin] (== PyTorch [out, in]).
        p['exp_w'] = conv_w((hidden, cin), cin).astype(jnp.bfloat16)
        p['exp_scale'], p['exp_shift'] = folded_bn(hidden, col=True)
    p['dw_w'] = conv_w((k * k, hidden), k * k)      # f32: depthwise runs on the VPU
    p['dw_scale'], p['dw_shift'] = folded_bn(hidden, col=False)
    if use_se:
        r = hidden // 4
        p['se_w1'] = 0.05 * jax.random.normal(nk(), (hidden, r), jnp.float32)
        p['se_b1'] = 0.01 * jax.random.normal(nk(), (1, r), jnp.float32)
        # second SE FC stored channel-major [hidden, r] (W2^T) for the VPU/XLU path.
        p['se_w2'] = 0.05 * jax.random.normal(nk(), (hidden, r), jnp.float32)
        p['se_b2'] = 0.01 * jax.random.normal(nk(), (hidden, 1), jnp.float32)
    # 1x1 project weight stored channel-major [cout, hidden] (== PyTorch [out, in]).
    p['pw_w'] = conv_w((cout, hidden), hidden).astype(jnp.bfloat16)
    p['pw_scale'], p['pw_shift'] = folded_bn(cout, col=True)
    return p


# ----------------------------------------------------------------------------- main

if __name__ == "__main__":
    key = jax.random.PRNGKey(0)
    k1, k2, k3, k4 = jax.random.split(key, 4)

    # Config A: expansion + SE + HSwish, stride 1, cin == cout -> identity residual path.
    cfgA = dict(k=3, stride=1, use_se=True, use_hs=True)
    pA = init_block_params(k1, cin=16, hidden=64, cout=16, k=3, use_se=True)
    xA = jax.random.normal(k2, (2, 16, 16, 16), jnp.float32)          # NCHW
    fA = jax.jit(partial(inverted_residual, **cfgA))
    outA = jax.block_until_ready(fA(pA, xA))
    refA = inverted_residual_ref(pA, xA, **cfgA)
    assert outA.shape == (2, 16, 16, 16) and bool(jnp.all(jnp.isfinite(outA)))
    tolA = 1e-2 * (1.0 + float(jnp.max(jnp.abs(refA))))
    errA = float(jnp.max(jnp.abs(outA - refA)))
    assert errA < tolA, (errA, tolA)

    # Config B: no expansion (cin == hidden), k=5, stride 2, SE, ReLU.
    cfgB = dict(k=5, stride=2, use_se=True, use_hs=False)
    pB = init_block_params(k3, cin=32, hidden=32, cout=48, k=5, use_se=True)
    xB = jax.random.normal(k4, (2, 32, 16, 16), jnp.float32)          # NCHW
    fB = jax.jit(partial(inverted_residual, **cfgB))
    outB = jax.block_until_ready(fB(pB, xB))
    refB = inverted_residual_ref(pB, xB, **cfgB)
    assert outB.shape == (2, 48, 8, 8) and bool(jnp.all(jnp.isfinite(outB)))
    tolB = 1e-2 * (1.0 + float(jnp.max(jnp.abs(refB))))
    errB = float(jnp.max(jnp.abs(outB - refB)))
    assert errB < tolB, (errB, tolB)

    print("KERNEL_OK")
</pallas_src>

<mosaic_0001>
module attributes {stable_mosaic.version = 11 : i64} {
  func.func @kernel(%arg0: i32, %arg1: memref<1x16x256xf32, #tpu.memory_space<vmem>>, %arg2: memref<64x16xbf16, #tpu.memory_space<vmem>>, %arg3: memref<64x1xf32, #tpu.memory_space<vmem>>, %arg4: memref<64x1xf32, #tpu.memory_space<vmem>>, %arg5: memref<9x64xf32, #tpu.memory_space<vmem>>, %arg6: memref<1x64xf32, #tpu.memory_space<vmem>>, %arg7: memref<1x64xf32, #tpu.memory_space<vmem>>, %arg8: memref<64x16xf32, #tpu.memory_space<vmem>>, %arg9: memref<1x16xf32, #tpu.memory_space<vmem>>, %arg10: memref<64x16xf32, #tpu.memory_space<vmem>>, %arg11: memref<64x1xf32, #tpu.memory_space<vmem>>, %arg12: memref<16x64xbf16, #tpu.memory_space<vmem>>, %arg13: memref<16x1xf32, #tpu.memory_space<vmem>>, %arg14: memref<16x1xf32, #tpu.memory_space<vmem>>, %arg15: memref<1x16x256xf32, #tpu.memory_space<vmem>>, %arg16: memref<18x18x64xf32, #tpu.memory_space<vmem>>, %arg17: memref<256x64xf32, #tpu.memory_space<vmem>>) attributes {dimension_semantics = [#tpu.dimension_semantics<parallel>], iteration_bounds = array<i64: 2>, scalar_prefetch = 0 : i64, scratch_operands = 2 : i64, tpu.core_type = #tpu.core_type<tc>, window_params = [{transform_indices = @transform_0, window_bounds = array<i64: 1, 16, 256>}, {pipeline_mode = #tpu.pipeline_mode<synchronous>, transform_indices = @transform_1, window_bounds = array<i64: 64, 16>}, {pipeline_mode = #tpu.pipeline_mode<synchronous>, transform_indices = @transform_2, window_bounds = array<i64: 64, 1>}, {pipeline_mode = #tpu.pipeline_mode<synchronous>, transform_indices = @transform_3, window_bounds = array<i64: 64, 1>}, {pipeline_mode = #tpu.pipeline_mode<synchronous>, transform_indices = @transform_4, window_bounds = array<i64: 9, 64>}, {pipeline_mode = #tpu.pipeline_mode<synchronous>, transform_indices = @transform_5, window_bounds = array<i64: 1, 64>}, {pipeline_mode = #tpu.pipeline_mode<synchronous>, transform_indices = @transform_6, window_bounds = array<i64: 1, 64>}, {pipeline_mode = #tpu.pipeline_mode<synchronous>, transform_indices = @transform_7, window_bounds = array<i64: 64, 16>}, {pipeline_mode = #tpu.pipeline_mode<synchronous>, transform_indices = @transform_8, window_bounds = array<i64: 1, 16>}, {pipeline_mode = #tpu.pipeline_mode<synchronous>, transform_indices = @transform_9, window_bounds = array<i64: 64, 16>}, {pipeline_mode = #tpu.pipeline_mode<synchronous>, transform_indices = @transform_10, window_bounds = array<i64: 64, 1>}, {pipeline_mode = #tpu.pipeline_mode<synchronous>, transform_indices = @transform_11, window_bounds = array<i64: 16, 64>}, {pipeline_mode = #tpu.pipeline_mode<synchronous>, transform_indices = @transform_12, window_bounds = array<i64: 16, 1>}, {pipeline_mode = #tpu.pipeline_mode<synchronous>, transform_indices = @transform_13, window_bounds = array<i64: 16, 1>}, {transform_indices = @transform_14, window_bounds = array<i64: 1, 16, 256>}]} {
    %cst = arith.constant 0.000000e+00 : f32
    %0 = vector.broadcast %cst : f32 to vector<1x18x64xf32>
    %c0 = arith.constant 0 : index
    %c0_0 = arith.constant 0 : index
    %c0_1 = arith.constant 0 : index
    %1 = vector.load %arg16[%c0, %c0_0, %c0_1] : memref<18x18x64xf32, #tpu.memory_space<vmem>>, vector<1x18x64xf32>
    tpu.vector_store %arg16[%c0, %c0_0, %c0_1], %0 {strides = array<i32>} : memref<18x18x64xf32, #tpu.memory_space<vmem>>, vector<1x18x64xf32>,
    %c17 = arith.constant 17 : index
    %c0_2 = arith.constant 0 : index
    %c0_3 = arith.constant 0 : index
    %2 = vector.load %arg16[%c17, %c0_2, %c0_3] : memref<18x18x64xf32, #tpu.memory_space<vmem>>, vector<1x18x64xf32>
    tpu.vector_store %arg16[%c17, %c0_2, %c0_3], %0 {strides = array<i32>} : memref<18x18x64xf32, #tpu.memory_space<vmem>>, vector<1x18x64xf32>,
    %cst_4 = arith.constant 0.000000e+00 : f32
    %3 = vector.broadcast %cst_4 : f32 to vector<18x1x64xf32>
    %c0_5 = arith.constant 0 : index
    %c0_6 = arith.constant 0 : index
    %c0_7 = arith.constant 0 : index
    %4 = vector.load %arg16[%c0_5, %c0_6, %c0_7] : memref<18x18x64xf32, #tpu.memory_space<vmem>>, vector<18x1x64xf32>
    tpu.vector_store %arg16[%c0_5, %c0_6, %c0_7], %3 {strides = array<i32>} : memref<18x18x64xf32, #tpu.memory_space<vmem>>, vector<18x1x64xf32>,
    %c0_8 = arith.constant 0 : index
    %c17_9 = arith.constant 17 : index
    %c0_10 = arith.constant 0 : index
    %5 = vector.load %arg16[%c0_8, %c17_9, %c0_10] : memref<18x18x64xf32, #tpu.memory_space<vmem>>, vector<18x1x64xf32>
    tpu.vector_store %arg16[%c0_8, %c17_9, %c0_10], %3 {strides = array<i32>} : memref<18x18x64xf32, #tpu.memory_space<vmem>>, vector<18x1x64xf32>,
    %c0_11 = arith.constant 0 : index
    %c0_12 = arith.constant 0 : index
    %6 = vector.load %arg5[%c0_11, %c0_12] : memref<9x64xf32, #tpu.memory_space<vmem>>, vector<9x64xf32>
    %c0_13 = arith.constant 0 : index
    %c0_14 = arith.constant 0 : index
    %7 = vector.load %arg6[%c0_13, %c0_14] : memref<1x64xf32, #tpu.memory_space<vmem>>, vector<1x64xf32>
    %c0_15 = arith.constant 0 : index
    %c0_16 = arith.constant 0 : index
    %8 = vector.load %arg7[%c0_15, %c0_16] : memref<1x64xf32, #tpu.memory_space<vmem>>, vector<1x64xf32>
    %c0_17 = arith.constant 0 : index
    %c0_18 = arith.constant 0 : index
    %c0_19 = arith.constant 0 : index
    %9 = vector.load %arg1[%c0_17, %c0_18, %c0_19] : memref<1x16x256xf32, #tpu.memory_space<vmem>>, vector<1x16x256xf32>
    %10 = vector.shape_cast %9 : vector<1x16x256xf32> to vector<16x256xf32>
    %c0_20 = arith.constant 0 : index
    %c0_21 = arith.constant 0 : index
    %11 = vector.load %arg2[%c0_20, %c0_21] : memref<64x16xbf16, #tpu.memory_space<vmem>>, vector<64x16xbf16>
    %12 = arith.truncf %10 : vector<16x256xf32> to vector<16x256xbf16>
    %cst_22 = arith.constant dense<0.000000e+00> : vector<64x256xf32>
    %13 = tpu.matmul %11, %12, %cst_22 {dimension_numbers = #tpu.dot_dimension_numbers<[1], [0], [0], [1], [0, 0, 1, 1], [], []>} : vector<64x16xbf16>, vector<16x256xbf16>, vector<64x256xf32> -> vector<64x256xf32>
    %c0_23 = arith.constant 0 : index
    %c0_24 = arith.constant 0 : index
    %14 = vector.load %arg3[%c0_23, %c0_24] : memref<64x1xf32, #tpu.memory_space<vmem>>, vector<64x1xf32>
    %15 = vector.broadcast %14 : vector<64x1xf32> to vector<64x256xf32>
    %16 = arith.mulf %13, %15 : vector<64x256xf32>
    %c0_25 = arith.constant 0 : index
    %c0_26 = arith.constant 0 : index
    %17 = vector.load %arg4[%c0_25, %c0_26] : memref<64x1xf32, #tpu.memory_space<vmem>>, vector<64x1xf32>
    %18 = vector.broadcast %17 : vector<64x1xf32> to vector<64x256xf32>
    %19 = arith.addf %16, %18 : vector<64x256xf32>
    %cst_27 = arith.constant 3.000000e+00 : f32
    %20 = vector.broadcast %cst_27 : f32 to vector<64x256xf32>
    %21 = arith.addf %19, %20 : vector<64x256xf32>
    %cst_28 = arith.constant 0.000000e+00 : f32
    %cst_29 = arith.constant 6.000000e+00 : f32
    %22 = vector.broadcast %cst_28 : f32 to vector<64x256xf32>
    %23 = arith.maximumf %22, %21 : vector<64x256xf32>
    %24 = vector.broadcast %cst_29 : f32 to vector<64x256xf32>
    %25 = arith.minimumf %24, %23 : vector<64x256xf32>
    %26 = arith.mulf %19, %25 : vector<64x256xf32>
    %cst_30 = arith.constant 0.166666672 : f32
    %27 = vector.broadcast %cst_30 : f32 to vector<64x256xf32>
    %28 = arith.mulf %26, %27 : vector<64x256xf32>
    %29 = tpu.transpose %28, [1, 0] : vector<64x256xf32> -> vector<256x64xf32>
    %30 = vector.shape_cast %29 : vector<256x64xf32> to vector<16x16x64xf32>
    %c1 = arith.constant 1 : index
    %c1_31 = arith.constant 1 : index
    %c0_32 = arith.constant 0 : index
    %31 = vector.load %arg16[%c1, %c1_31, %c0_32] : memref<18x18x64xf32, #tpu.memory_space<vmem>>, vector<16x16x64xf32>
    tpu.vector_store %arg16[%c1, %c1_31, %c0_32], %30 {strides = array<i32>} : memref<18x18x64xf32, #tpu.memory_space<vmem>>, vector<16x16x64xf32>,
    %c0_33 = arith.constant 0 : index
    %c0_34 = arith.constant 0 : index
    %c0_35 = arith.constant 0 : index
    %32 = vector.load %arg16[%c0_33, %c0_34, %c0_35] : memref<18x18x64xf32, #tpu.memory_space<vmem>>, vector<4x16x64xf32>
    %33 = vector.shape_cast %32 : vector<4x16x64xf32> to vector<64x64xf32>
    %34 = vector.extract_strided_slice %6 {offsets = [0, 0], sizes = [1, 64], strides = [1, 1]} : vector<9x64xf32> to vector<1x64xf32>
    %35 = vector.broadcast %34 : vector<1x64xf32> to vector<64x64xf32>
    %36 = arith.mulf %33, %35 : vector<64x64xf32>
    %c0_36 = arith.constant 0 : index
    %c1_37 = arith.constant 1 : index
    %c0_38 = arith.constant 0 : index
    %37 = vector.load %arg16[%c0_36, %c1_37, %c0_38] : memref<18x18x64xf32, #tpu.memory_space<vmem>>, vector<4x16x64xf32>
    %38 = vector.shape_cast %37 : vector<4x16x64xf32> to vector<64x64xf32>
    %39 = vector.extract_strided_slice %6 {offsets = [1, 0], sizes = [1, 64], strides = [1, 1]} : vector<9x64xf32> to vector<1x64xf32>
    %40 = vector.broadcast %39 : vector<1x64xf32> to vector<64x64xf32>
    %41 = arith.mulf %38, %40 : vector<64x64xf32>
    %42 = arith.addf %36, %41 : vector<64x64xf32>
    %c0_39 = arith.constant 0 : index
    %c2 = arith.constant 2 : index
    %c0_40 = arith.constant 0 : index
    %43 = vector.load %arg16[%c0_39, %c2, %c0_40] : memref<18x18x64xf32, #tpu.memory_space<vmem>>, vector<4x16x64xf32>
    %44 = vector.shape_cast %43 : vector<4x16x64xf32> to vector<64x64xf32>
    %45 = vector.extract_strided_slice %6 {offsets = [2, 0], sizes = [1, 64], strides = [1, 1]} : vector<9x64xf32> to vector<1x64xf32>
    %46 = vector.broadcast %45 : vector<1x64xf32> to vector<64x64xf32>
    %47 = arith.mulf %44, %46 : vector<64x64xf32>
    %48 = arith.addf %42, %47 : vector<64x64xf32>
    %c1_41 = arith.constant 1 : index
    %c0_42 = arith.constant 0 : index
    %c0_43 = arith.constant 0 : index
    %49 = vector.load %arg16[%c1_41, %c0_42, %c0_43] : memref<18x18x64xf32, #tpu.memory_space<vmem>>, vector<4x16x64xf32>
    %50 = vector.shape_cast %49 : vector<4x16x64xf32> to vector<64x64xf32>
    %51 = vector.extract_strided_slice %6 {offsets = [3, 0], sizes = [1, 64], strides = [1, 1]} : vector<9x64xf32> to vector<1x64xf32>
    %52 = vector.broadcast %51 : vector<1x64xf32> to vector<64x64xf32>
    %53 = arith.mulf %50, %52 : vector<64x64xf32>
    %54 = arith.addf %48, %53 : vector<64x64xf32>
    %c1_44 = arith.constant 1 : index
    %c1_45 = arith.constant 1 : index
    %c0_46 = arith.constant 0 : index
    %55 = vector.load %arg16[%c1_44, %c1_45, %c0_46] : memref<18x18x64xf32, #tpu.memory_space<vmem>>, vector<4x16x64xf32>
    %56 = vector.shape_cast %55 : vector<4x16x64xf32> to vector<64x64xf32>
    %57 = vector.extract_strided_slice %6 {offsets = [4, 0], sizes = [1, 64], strides = [1, 1]} : vector<9x64xf32> to vector<1x64xf32>
    %58 = vector.broadcast %57 : vector<1x64xf32> to vector<64x64xf32>
    %59 = arith.mulf %56, %58 : vector<64x64xf32>
    %60 = arith.addf %54, %59 : vector<64x64xf32>
    %c1_47 = arith.constant 1 : index
    %c2_48 = arith.constant 2 : index
    %c0_49 = arith.constant 0 : index
    %61 = vector.load %arg16[%c1_47, %c2_48, %c0_49] : memref<18x18x64xf32, #tpu.memory_space<vmem>>, vector<4x16x64xf32>
    %62 = vector.shape_cast %61 : vector<4x16x64xf32> to vector<64x64xf32>
    %63 = vector.extract_strided_slice %6 {offsets = [5, 0], sizes = [1, 64], strides = [1, 1]} : vector<9x64xf32> to vector<1x64xf32>
    %64 = vector.broadcast %63 : vector<1x64xf32> to vector<64x64xf32>
    %65 = arith.mulf %62, %64 : vector<64x64xf32>
    %66 = arith.addf %60, %65 : vector<64x64xf32>
    %c2_50 = arith.constant 2 : index
    %c0_51 = arith.constant 0 : index
    %c0_52 = arith.constant 0 : index
    %67 = vector.load %arg16[%c2_50, %c0_51, %c0_52] : memref<18x18x64xf32, #tpu.memory_space<vmem>>, vector<4x16x64xf32>
    %68 = vector.shape_cast %67 : vector<4x16x64xf32> to vector<64x64xf32>
    %69 = vector.extract_strided_slice %6 {offsets = [6, 0], sizes = [1, 64], strides = [1, 1]} : vector<9x64xf32> to vector<1x64xf32>
    %70 = vector.broadcast %69 : vector<1x64xf32> to vector<64x64xf32>
    %71 = arith.mulf %68, %70 : vector<64x64xf32>
    %72 = arith.addf %66, %71 : vector<64x64xf32>
    %c2_53 = arith.constant 2 : index
    %c1_54 = arith.constant 1 : index
    %c0_55 = arith.constant 0 : index
    %73 = vector.load %arg16[%c2_53, %c1_54, %c0_55] : memref<18x18x64xf32, #tpu.memory_space<vmem>>, vector<4x16x64xf32>
    %74 = vector.shape_cast %73 : vector<4x16x64xf32> to vector<64x64xf32>
    %75 = vector.extract_strided_slice %6 {offsets = [7, 0], sizes = [1, 64], strides = [1, 1]} : vector<9x64xf32> to vector<1x64xf32>
    %76 = vector.broadcast %75 : vector<1x64xf32> to vector<64x64xf32>
    %77 = arith.mulf %74, %76 : vector<64x64xf32>
    %78 = arith.addf %72, %77 : vector<64x64xf32>
    %c2_56 = arith.constant 2 : index
    %c2_57 = arith.constant 2 : index
    %c0_58 = arith.constant 0 : index
    %79 = vector.load %arg16[%c2_56, %c2_57, %c0_58] : memref<18x18x64xf32, #tpu.memory_space<vmem>>, vector<4x16x64xf32>
    %80 = vector.shape_cast %79 : vector<4x16x64xf32> to vector<64x64xf32>
    %81 = vector.extract_strided_slice %6 {offsets = [8, 0], sizes = [1, 64], strides = [1, 1]} : vector<9x64xf32> to vector<1x64xf32>
    %82 = vector.broadcast %81 : vector<1x64xf32> to vector<64x64xf32>
    %83 = arith.mulf %80, %82 : vector<64x64xf32>
    %84 = arith.addf %78, %83 : vector<64x64xf32>
    %85 = vector.broadcast %7 : vector<1x64xf32> to vector<64x64xf32>
    %86 = arith.mulf %84, %85 : vector<64x64xf32>
    %87 = vector.broadcast %8 : vector<1x64xf32> to vector<64x64xf32>
    %88 = arith.addf %86, %87 : vector<64x64xf32>
    %c0_59 = arith.constant 0 : index
    %c0_60 = arith.constant 0 : index
    %89 = vector.load %arg17[%c0_59, %c0_60] : memref<256x64xf32, #tpu.memory_space<vmem>>, vector<64x64xf32>
    tpu.vector_store %arg17[%c0_59, %c0_60], %88 {strides = array<i32>} : memref<256x64xf32, #tpu.memory_space<vmem>>, vector<64x64xf32>,
    %c4 = arith.constant 4 : index
    %c0_61 = arith.constant 0 : index
    %c0_62 = arith.constant 0 : index
    %90 = vector.load %arg16[%c4, %c0_61, %c0_62] : memref<18x18x64xf32, #tpu.memory_space<vmem>>, vector<4x16x64xf32>
    %91 = vector.shape_cast %90 : vector<4x16x64xf32> to vector<64x64xf32>
    %92 = vector.extract_strided_slice %6 {offsets = [0, 0], sizes = [1, 64], strides = [1, 1]} : vector<9x64xf32> to vector<1x64xf32>
    %93 = vector.broadcast %92 : vector<1x64xf32> to vector<64x64xf32>
    %94 = arith.mulf %91, %93 : vector<64x64xf32>
    %c4_63 = arith.constant 4 : index
    %c1_64 = arith.constant 1 : index
    %c0_65 = arith.constant 0 : index
    %95 = vector.load %arg16[%c4_63, %c1_64, %c0_65] : memref<18x18x64xf32, #tpu.memory_space<vmem>>, vector<4x16x64xf32>
    %96 = vector.shape_cast %95 : vector<4x16x64xf32> to vector<64x64xf32>
    %97 = vector.extract_strided_slice %6 {offsets = [1, 0], sizes = [1, 64], strides = [1, 1]} : vector<9x64xf32> to vector<1x64xf32>
    %98 = vector.broadcast %97 : vector<1x64xf32> to vector<64x64xf32>
    %99 = arith.mulf %96, %98 : vector<64x64xf32>
    %100 = arith.addf %94, %99 : vector<64x64xf32>
    %c4_66 = arith.constant 4 : index
    %c2_67 = arith.constant 2 : index
    %c0_68 = arith.constant 0 : index
    %101 = vector.load %arg16[%c4_66, %c2_67, %c0_68] : memref<18x18x64xf32, #tpu.memory_space<vmem>>, vector<4x16x64xf32>
    %102 = vector.shape_cast %101 : vector<4x16x64xf32> to vector<64x64xf32>
    %103 = vector.extract_strided_slice %6 {offsets = [2, 0], sizes = [1, 64], strides = [1, 1]} : vector<9x64xf32> to vector<1x64xf32>
    %104 = vector.broadcast %103 : vector<1x64xf32> to vector<64x64xf32>
    %105 = arith.mulf %102, %104 : vector<64x64xf32>
    %106 = arith.addf %100, %105 : vector<64x64xf32>
    %c5 = arith.constant 5 : index
    %c0_69 = arith.constant 0 : index
    %c0_70 = arith.constant 0 : index
    %107 = vector.load %arg16[%c5, %c0_69, %c0_70] : memref<18x18x64xf32, #tpu.memory_space<vmem>>, vector<4x16x64xf32>
    %108 = vector.shape_cast %107 : vector<4x16x64xf32> to vector<64x64xf32>
    %109 = vector.extract_strided_slice %6 {offsets = [3, 0], sizes = [1, 64], strides = [1, 1]} : vector<9x64xf32> to vector<1x64xf32>
    %110 = vector.broadcast %109 : vector<1x64xf32> to vector<64x64xf32>
    %111 = arith.mulf %108, %110 : vector<64x64xf32>
    %112 = arith.addf %106, %111 : vector<64x64xf32>
    %c5_71 = arith.constant 5 : index
    %c1_72 = arith.constant 1 : index
    %c0_73 = arith.constant 0 : index
    %113 = vector.load %arg16[%c5_71, %c1_72, %c0_73] : memref<18x18x64xf32, #tpu.memory_space<vmem>>, vector<4x16x64xf32>
    %114 = vector.shape_cast %113 : vector<4x16x64xf32> to vector<64x64xf32>
    %115 = vector.extract_strided_slice %6 {offsets = [4, 0], sizes = [1, 64], strides = [1, 1]} : vector<9x64xf32> to vector<1x64xf32>
    %116 = vector.broadcast %115 : vector<1x64xf32> to vector<64x64xf32>
    %117 = arith.mulf %114, %116 : vector<64x64xf32>
    %118 = arith.addf %112, %117 : vector<64x64xf32>
    %c5_74 = arith.constant 5 : index
    %c2_75 = arith.constant 2 : index
    %c0_76 = arith.constant 0 : index
    %119 = vector.load %arg16[%c5_74, %c2_75, %c0_76] : memref<18x18x64xf32, #tpu.memory_space<vmem>>, vector<4x16x64xf32>
    %120 = vector.shape_cast %119 : vector<4x16x64xf32> to vector<64x64xf32>
    %121 = vector.extract_strided_slice %6 {offsets = [5, 0], sizes = [1, 64], strides = [1, 1]} : vector<9x64xf32> to vector<1x64xf32>
    %122 = vector.broadcast %121 : vector<1x64xf32> to vector<64x64xf32>
    %123 = arith.mulf %120, %122 : vector<64x64xf32>
    %124 = arith.addf %118, %123 : vector<64x64xf32>
    %c6 = arith.constant 6 : index
    %c0_77 = arith.constant 0 : index
    %c0_78 = arith.constant 0 : index
    %125 = vector.load %arg16[%c6, %c0_77, %c0_78] : memref<18x18x64xf32, #tpu.memory_space<vmem>>, vector<4x16x64xf32>
    %126 = vector.shape_cast %125 : vector<4x16x64xf32> to vector<64x64xf32>
    %127 = vector.extract_strided_slice %6 {offsets = [6, 0], sizes = [1, 64], strides = [1, 1]} : vector<9x64xf32> to vector<1x64xf32>
    %128 = vector.broadcast %127 : vector<1x64xf32> to vector<64x64xf32>
    %129 = arith.mulf %126, %128 : vector<64x64xf32>
    %130 = arith.addf %124, %129 : vector<64x64xf32>
    %c6_79 = arith.constant 6 : index
    %c1_80 = arith.constant 1 : index
    %c0_81 = arith.constant 0 : index
    %131 = vector.load %arg16[%c6_79, %c1_80, %c0_81] : memref<18x18x64xf32, #tpu.memory_space<vmem>>, vector<4x16x64xf32>
    %132 = vector.shape_cast %131 : vector<4x16x64xf32> to vector<64x64xf32>
    %133 = vector.extract_strided_slice %6 {offsets = [7, 0], sizes = [1, 64], strides = [1, 1]} : vector<9x64xf32> to vector<1x64xf32>
    %134 = vector.broadcast %133 : vector<1x64xf32> to vector<64x64xf32>
    %135 = arith.mulf %132, %134 : vector<64x64xf32>
    %136 = arith.addf %130, %135 : vector<64x64xf32>
    %c6_82 = arith.constant 6 : index
    %c2_83 = arith.constant 2 : index
    %c0_84 = arith.constant 0 : index
    %137 = vector.load %arg16[%c6_82, %c2_83, %c0_84] : memref<18x18x64xf32, #tpu.memory_space<vmem>>, vector<4x16x64xf32>
    %138 = vector.shape_cast %137 : vector<4x16x64xf32> to vector<64x64xf32>
    %139 = vector.extract_strided_slice %6 {offsets = [8, 0], sizes = [1, 64], strides = [1, 1]} : vector<9x64xf32> to vector<1x64xf32>
    %140 = vector.broadcast %139 : vector<1x64xf32> to vector<64x64xf32>
    %141 = arith.mulf %138, %140 : vector<64x64xf32>
    %142 = arith.addf %136, %141 : vector<64x64xf32>
    %143 = vector.broadcast %7 : vector<1x64xf32> to vector<64x64xf32>
    %144 = arith.mulf %142, %143 : vector<64x64xf32>
    %145 = vector.broadcast %8 : vector<1x64xf32> to vector<64x64xf32>
    %146 = arith.addf %144, %145 : vector<64x64xf32>
    %c64 = arith.constant 64 : index
    %c0_85 = arith.constant 0 : index
    %147 = vector.load %arg17[%c64, %c0_85] : memref<256x64xf32, #tpu.memory_space<vmem>>, vector<64x64xf32>
    tpu.vector_store %arg17[%c64, %c0_85], %146 {strides = array<i32>} : memref<256x64xf32, #tpu.memory_space<vmem>>, vector<64x64xf32>,
    %c8 = arith.constant 8 : index
    %c0_86 = arith.constant 0 : index
    %c0_87 = arith.constant 0 : index
    %148 = vector.load %arg16[%c8, %c0_86, %c0_87] : memref<18x18x64xf32, #tpu.memory_space<vmem>>, vector<4x16x64xf32>
    %149 = vector.shape_cast %148 : vector<4x16x64xf32> to vector<64x64xf32>
    %150 = vector.extract_strided_slice %6 {offsets = [0, 0], sizes = [1, 64], strides = [1, 1]} : vector<9x64xf32> to vector<1x64xf32>
    %151 = vector.broadcast %150 : vector<1x64xf32> to vector<64x64xf32>
    %152 = arith.mulf %149, %151 : vector<64x64xf32>
    %c8_88 = arith.constant 8 : index
    %c1_89 = arith.constant 1 : index
    %c0_90 = arith.constant 0 : index
    %153 = vector.load %arg16[%c8_88, %c1_89, %c0_90] : memref<18x18x64xf32, #tpu.memory_space<vmem>>, vector<4x16x64xf32>
    %154 = vector.shape_cast %153 : vector<4x16x64xf32> to vector<64x64xf32>
    %155 = vector.extract_strided_slice %6 {offsets = [1, 0], sizes = [1, 64], strides = [1, 1]} : vector<9x64xf32> to vector<1x64xf32>
    %156 = vector.broadcast %155 : vector<1x64xf32> to vector<64x64xf32>
    %157 = arith.mulf %154, %156 : vector<64x64xf32>
    %158 = arith.addf %152, %157 : vector<64x64xf32>
    %c8_91 = arith.constant 8 : index
    %c2_92 = arith.constant 2 : index
    %c0_93 = arith.constant 0 : index
    %159 = vector.load %arg16[%c8_91, %c2_92, %c0_93] : memref<18x18x64xf32, #tpu.memory_space<vmem>>, vector<4x16x64xf32>
    %160 = vector.shape_cast %159 : vector<4x16x64xf32> to vector<64x64xf32>
    %161 = vector.extract_strided_slice %6 {offsets = [2, 0], sizes = [1, 64], strides = [1, 1]} : vector<9x64xf32> to vector<1x64xf32>
    %162 = vector.broadcast %161 : vector<1x64xf32> to vector<64x64xf32>
    %163 = arith.mulf %160, %162 : vector<64x64xf32>
    %164 = arith.addf %158, %163 : vector<64x64xf32>
    %c9 = arith.constant 9 : index
    %c0_94 = arith.constant 0 : index
    %c0_95 = arith.constant 0 : index
    %165 = vector.load %arg16[%c9, %c0_94, %c0_95] : memref<18x18x64xf32, #tpu.memory_space<vmem>>, vector<4x16x64xf32>
    %166 = vector.shape_cast %165 : vector<4x16x64xf32> to vector<64x64xf32>
    %167 = vector.extract_strided_slice %6 {offsets = [3, 0], sizes = [1, 64], strides = [1, 1]} : vector<9x64xf32> to vector<1x64xf32>
    %168 = vector.broadcast %167 : vector<1x64xf32> to vector<64x64xf32>
    %169 = arith.mulf %166, %168 : vector<64x64xf32>
    %170 = arith.addf %164, %169 : vector<64x64xf32>
    %c9_96 = arith.constant 9 : index
    %c1_97 = arith.constant 1 : index
    %c0_98 = arith.constant 0 : index
    %171 = vector.load %arg16[%c9_96, %c1_97, %c0_98] : memref<18x18x64xf32, #tpu.memory_space<vmem>>, vector<4x16x64xf32>
    %172 = vector.shape_cast %171 : vector<4x16x64xf32> to vector<64x64xf32>
    %173 = vector.extract_strided_slice %6 {offsets = [4, 0], sizes = [1, 64], strides = [1, 1]} : vector<9x64xf32> to vector<1x64xf32>
    %174 = vector.broadcast %173 : vector<1x64xf32> to vector<64x64xf32>
    %175 = arith.mulf %172, %174 : vector<64x64xf32>
    %176 = arith.addf %170, %175 : vector<64x64xf32>
    %c9_99 = arith.constant 9 : index
    %c2_100 = arith.constant 2 : index
    %c0_101 = arith.constant 0 : index
    %177 = vector.load %arg16[%c9_99, %c2_100, %c0_101] : memref<18x18x64xf32, #tpu.memory_space<vmem>>, vector<4x16x64xf32>
    %178 = vector.shape_cast %177 : vector<4x16x64xf32> to vector<64x64xf32>
    %179 = vector.extract_strided_slice %6 {offsets = [5, 0], sizes = [1, 64], strides = [1, 1]} : vector<9x64xf32> to vector<1x64xf32>
    %180 = vector.broadcast %179 : vector<1x64xf32> to vector<64x64xf32>
    %181 = arith.mulf %178, %180 : vector<64x64xf32>
    %182 = arith.addf %176, %181 : vector<64x64xf32>
    %c10 = arith.constant 10 : index
    %c0_102 = arith.constant 0 : index
    %c0_103 = arith.constant 0 : index
    %183 = vector.load %arg16[%c10, %c0_102, %c0_103] : memref<18x18x64xf32, #tpu.memory_space<vmem>>, vector<4x16x64xf32>
    %184 = vector.shape_cast %183 : vector<4x16x64xf32> to vector<64x64xf32>
    %185 = vector.extract_strided_slice %6 {offsets = [6, 0], sizes = [1, 64], strides = [1, 1]} : vector<9x64xf32> to vector<1x64xf32>
    %186 = vector.broadcast %185 : vector<1x64xf32> to vector<64x64xf32>
    %187 = arith.mulf %184, %186 : vector<64x64xf32>
    %188 = arith.addf %182, %187 : vector<64x64xf32>
    %c10_104 = arith.constant 10 : index
    %c1_105 = arith.constant 1 : index
    %c0_106 = arith.constant 0 : index
    %189 = vector.load %arg16[%c10_104, %c1_105, %c0_106] : memref<18x18x64xf32, #tpu.memory_space<vmem>>, vector<4x16x64xf32>
    %190 = vector.shape_cast %189 : vector<4x16x64xf32> to vector<64x64xf32>
    %191 = vector.extract_strided_slice %6 {offsets = [7, 0], sizes = [1, 64], strides = [1, 1]} : vector<9x64xf32> to vector<1x64xf32>
    %192 = vector.broadcast %191 : vector<1x64xf32> to vector<64x64xf32>
    %193 = arith.mulf %190, %192 : vector<64x64xf32>
    %194 = arith.addf %188, %193 : vector<64x64xf32>
    %c10_107 = arith.constant 10 : index
    %c2_108 = arith.constant 2 : index
    %c0_109 = arith.constant 0 : index
    %195 = vector.load %arg16[%c10_107, %c2_108, %c0_109] : memref<18x18x64xf32, #tpu.memory_space<vmem>>, vector<4x16x64xf32>
    %196 = vector.shape_cast %195 : vector<4x16x64xf32> to vector<64x64xf32>
    %197 = vector.extract_strided_slice %6 {offsets = [8, 0], sizes = [1, 64], strides = [1, 1]} : vector<9x64xf32> to vector<1x64xf32>
    %198 = vector.broadcast %197 : vector<1x64xf32> to vector<64x64xf32>
    %199 = arith.mulf %196, %198 : vector<64x64xf32>
    %200 = arith.addf %194, %199 : vector<64x64xf32>
    %201 = vector.broadcast %7 : vector<1x64xf32> to vector<64x64xf32>
    %202 = arith.mulf %200, %201 : vector<64x64xf32>
    %203 = vector.broadcast %8 : vector<1x64xf32> to vector<64x64xf32>
    %204 = arith.addf %202, %203 : vector<64x64xf32>
    %c128 = arith.constant 128 : index
    %c0_110 = arith.constant 0 : index
    %205 = vector.load %arg17[%c128, %c0_110] : memref<256x64xf32, #tpu.memory_space<vmem>>, vector<64x64xf32>
    tpu.vector_store %arg17[%c128, %c0_110], %204 {strides = array<i32>} : memref<256x64xf32, #tpu.memory_space<vmem>>, vector<64x64xf32>,
    %c12 = arith.constant 12 : index
    %c0_111 = arith.constant 0 : index
    %c0_112 = arith.constant 0 : index
    %206 = vector.load %arg16[%c12, %c0_111, %c0_112] : memref<18x18x64xf32, #tpu.memory_space<vmem>>, vector<4x16x64xf32>
    %207 = vector.shape_cast %206 : vector<4x16x64xf32> to vector<64x64xf32>
    %208 = vector.extract_strided_slice %6 {offsets = [0, 0], sizes = [1, 64], strides = [1, 1]} : vector<9x64xf32> to vector<1x64xf32>
    %209 = vector.broadcast %208 : vector<1x64xf32> to vector<64x64xf32>
    %210 = arith.mulf %207, %209 : vector<64x64xf32>
    %c12_113 = arith.constant 12 : index
    %c1_114 = arith.constant 1 : index
    %c0_115 = arith.constant 0 : index
    %211 = vector.load %arg16[%c12_113, %c1_114, %c0_115] : memref<18x18x64xf32, #tpu.memory_space<vmem>>, vector<4x16x64xf32>
    %212 = vector.shape_cast %211 : vector<4x16x64xf32> to vector<64x64xf32>
    %213 = vector.extract_strided_slice %6 {offsets = [1, 0], sizes = [1, 64], strides = [1, 1]} : vector<9x64xf32> to vector<1x64xf32>
    %214 = vector.broadcast %213 : vector<1x64xf32> to vector<64x64xf32>
    %215 = arith.mulf %212, %214 : vector<64x64xf32>
    %216 = arith.addf %210, %215 : vector<64x64xf32>
    %c12_116 = arith.constant 12 : index
    %c2_117 = arith.constant 2 : index
    %c0_118 = arith.constant 0 : index
    %217 = vector.load %arg16[%c12_116, %c2_117, %c0_118] : memref<18x18x64xf32, #tpu.memory_space<vmem>>, vector<4x16x64xf32>
    %218 = vector.shape_cast %217 : vector<4x16x64xf32> to vector<64x64xf32>
    %219 = vector.extract_strided_slice %6 {offsets = [2, 0], sizes = [1, 64], strides = [1, 1]} : vector<9x64xf32> to vector<1x64xf32>
    %220 = vector.broadcast %219 : vector<1x64xf32> to vector<64x64xf32>
    %221 = arith.mulf %218, %220 : vector<64x64xf32>
    %222 = arith.addf %216, %221 : vector<64x64xf32>
    %c13 = arith.constant 13 : index
    %c0_119 = arith.constant 0 : index
    %c0_120 = arith.constant 0 : index
    %223 = vector.load %arg16[%c13, %c0_119, %c0_120] : memref<18x18x64xf32, #tpu.memory_space<vmem>>, vector<4x16x64xf32>
    %224 = vector.shape_cast %223 : vector<4x16x64xf32> to vector<64x64xf32>
    %225 = vector.extract_strided_slice %6 {offsets = [3, 0], sizes = [1, 64], strides = [1, 1]} : vector<9x64xf32> to vector<1x64xf32>
    %226 = vector.broadcast %225 : vector<1x64xf32> to vector<64x64xf32>
    %227 = arith.mulf %224, %226 : vector<64x64xf32>
    %228 = arith.addf %222, %227 : vector<64x64xf32>
    %c13_121 = arith.constant 13 : index
    %c1_122 = arith.constant 1 : index
    %c0_123 = arith.constant 0 : index
    %229 = vector.load %arg16[%c13_121, %c1_122, %c0_123] : memref<18x18x64xf32, #tpu.memory_space<vmem>>, vector<4x16x64xf32>
    %230 = vector.shape_cast %229 : vector<4x16x64xf32> to vector<64x64xf32>
    %231 = vector.extract_strided_slice %6 {offsets = [4, 0], sizes = [1, 64], strides = [1, 1]} : vector<9x64xf32> to vector<1x64xf32>
    %232 = vector.broadcast %231 : vector<1x64xf32> to vector<64x64xf32>
    %233 = arith.mulf %230, %232 : vector<64x64xf32>
    %234 = arith.addf %228, %233 : vector<64x64xf32>
    %c13_124 = arith.constant 13 : index
    %c2_125 = arith.constant 2 : index
    %c0_126 = arith.constant 0 : index
    %235 = vector.load %arg16[%c13_124, %c2_125, %c0_126] : memref<18x18x64xf32, #tpu.memory_space<vmem>>, vector<4x16x64xf32>
    %236 = vector.shape_cast %235 : vector<4x16x64xf32> to vector<64x64xf32>
    %237 = vector.extract_strided_slice %6 {offsets = [5, 0], sizes = [1, 64], strides = [1, 1]} : vector<9x64xf32> to vector<1x64xf32>
    %238 = vector.broadcast %237 : vector<1x64xf32> to vector<64x64xf32>
    %239 = arith.mulf %236, %238 : vector<64x64xf32>
    %240 = arith.addf %234, %239 : vector<64x64xf32>
    %c14 = arith.constant 14 : index
    %c0_127 = arith.constant 0 : index
    %c0_128 = arith.constant 0 : index
    %241 = vector.load %arg16[%c14, %c0_127, %c0_128] : memref<18x18x64xf32, #tpu.memory_space<vmem>>, vector<4x16x64xf32>
    %242 = vector.shape_cast %241 : vector<4x16x64xf32> to vector<64x64xf32>
    %243 = vector.extract_strided_slice %6 {offsets = [6, 0], sizes = [1, 64], strides = [1, 1]} : vector<9x64xf32> to vector<1x64xf32>
    %244 = vector.broadcast %243 : vector<1x64xf32> to vector<64x64xf32>
    %245 = arith.mulf %242, %244 : vector<64x64xf32>
    %246 = arith.addf %240, %245 : vector<64x64xf32>
    %c14_129 = arith.constant 14 : index
    %c1_130 = arith.constant 1 : index
    %c0_131 = arith.constant 0 : index
    %247 = vector.load %arg16[%c14_129, %c1_130, %c0_131] : memref<18x18x64xf32, #tpu.memory_space<vmem>>, vector<4x16x64xf32>
    %248 = vector.shape_cast %247 : vector<4x16x64xf32> to vector<64x64xf32>
    %249 = vector.extract_strided_slice %6 {offsets = [7, 0], sizes = [1, 64], strides = [1, 1]} : vector<9x64xf32> to vector<1x64xf32>
    %250 = vector.broadcast %249 : vector<1x64xf32> to vector<64x64xf32>
    %251 = arith.mulf %248, %250 : vector<64x64xf32>
    %252 = arith.addf %246, %251 : vector<64x64xf32>
    %c14_132 = arith.constant 14 : index
    %c2_133 = arith.constant 2 : index
    %c0_134 = arith.constant 0 : index
    %253 = vector.load %arg16[%c14_132, %c2_133, %c0_134] : memref<18x18x64xf32, #tpu.memory_space<vmem>>, vector<4x16x64xf32>
    %254 = vector.shape_cast %253 : vector<4x16x64xf32> to vector<64x64xf32>
    %255 = vector.extract_strided_slice %6 {offsets = [8, 0], sizes = [1, 64], strides = [1, 1]} : vector<9x64xf32> to vector<1x64xf32>
    %256 = vector.broadcast %255 : vector<1x64xf32> to vector<64x64xf32>
    %257 = arith.mulf %254, %256 : vector<64x64xf32>
    %258 = arith.addf %252, %257 : vector<64x64xf32>
    %259 = vector.broadcast %7 : vector<1x64xf32> to vector<64x64xf32>
    %260 = arith.mulf %258, %259 : vector<64x64xf32>
    %261 = vector.broadcast %8 : vector<1x64xf32> to vector<64x64xf32>
    %262 = arith.addf %260, %261 : vector<64x64xf32>
    %c192 = arith.constant 192 : index
    %c0_135 = arith.constant 0 : index
    %263 = vector.load %arg17[%c192, %c0_135] : memref<256x64xf32, #tpu.memory_space<vmem>>, vector<64x64xf32>
    tpu.vector_store %arg17[%c192, %c0_135], %262 {strides = array<i32>} : memref<256x64xf32, #tpu.memory_space<vmem>>, vector<64x64xf32>,
    %c0_136 = arith.constant 0 : index
    %c0_137 = arith.constant 0 : index
    %264 = vector.load %arg17[%c0_136, %c0_137] : memref<256x64xf32, #tpu.memory_space<vmem>>, vector<256x64xf32>
    %265 = tpu.transpose %264, [1, 0] : vector<256x64xf32> -> vector<64x256xf32>
    %cst_138 = arith.constant dense<0.000000e+00> : vector<64xf32>
    %266 = vector.multi_reduction <add>, %265, %cst_138 [1] : vector<64x256xf32> to vector<64xf32>
    %267 = vector.shape_cast %266 : vector<64xf32> to vector<64x1xf32>
    %cst_139 = arith.constant 2.560000e+02 : f32
    %268 = vector.broadcast %cst_139 : f32 to vector<64x1xf32>
    %269 = arith.divf %267, %268 : vector<64x1xf32>
    %c0_140 = arith.constant 0 : index
    %c0_141 = arith.constant 0 : index
    %270 = vector.load %arg8[%c0_140, %c0_141] : memref<64x16xf32, #tpu.memory_space<vmem>>, vector<64x16xf32>
    %271 = vector.broadcast %269 : vector<64x1xf32> to vector<64x16xf32>
    %272 = arith.mulf %271, %270 : vector<64x16xf32>
    %cst_142 = arith.constant dense<0.000000e+00> : vector<16xf32>
    %273 = vector.multi_reduction <add>, %272, %cst_142 [0] : vector<64x16xf32> to vector<16xf32>
    %274 = vector.shape_cast %273 : vector<16xf32> to vector<1x16xf32>
    %c0_143 = arith.constant 0 : index
    %c0_144 = arith.constant 0 : index
    %275 = vector.load %arg9[%c0_143, %c0_144] : memref<1x16xf32, #tpu.memory_space<vmem>>, vector<1x16xf32>
    %276 = arith.addf %274, %275 : vector<1x16xf32>
    %cst_145 = arith.constant 0.000000e+00 : f32
    %277 = vector.broadcast %cst_145 : f32 to vector<1x16xf32>
    %278 = arith.maximumf %276, %277 : vector<1x16xf32>
    %c0_146 = arith.constant 0 : index
    %c0_147 = arith.constant 0 : index
    %279 = vector.load %arg10[%c0_146, %c0_147] : memref<64x16xf32, #tpu.memory_space<vmem>>, vector<64x16xf32>
    %280 = vector.broadcast %278 : vector<1x16xf32> to vector<64x16xf32>
    %281 = arith.mulf %280, %279 : vector<64x16xf32>
    %cst_148 = arith.constant dense<0.000000e+00> : vector<64xf32>
    %282 = vector.multi_reduction <add>, %281, %cst_148 [1] : vector<64x16xf32> to vector<64xf32>
    %283 = vector.shape_cast %282 : vector<64xf32> to vector<64x1xf32>
    %c0_149 = arith.constant 0 : index
    %c0_150 = arith.constant 0 : index
    %284 = vector.load %arg11[%c0_149, %c0_150] : memref<64x1xf32, #tpu.memory_space<vmem>>, vector<64x1xf32>
    %285 = arith.addf %283, %284 : vector<64x1xf32>
    %cst_151 = arith.constant 3.000000e+00 : f32
    %286 = vector.broadcast %cst_151 : f32 to vector<64x1xf32>
    %287 = arith.addf %285, %286 : vector<64x1xf32>
    %cst_152 = arith.constant 0.000000e+00 : f32
    %cst_153 = arith.constant 6.000000e+00 : f32
    %288 = vector.broadcast %cst_152 : f32 to vector<64x1xf32>
    %289 = arith.maximumf %288, %287 : vector<64x1xf32>
    %290 = vector.broadcast %cst_153 : f32 to vector<64x1xf32>
    %291 = arith.minimumf %290, %289 : vector<64x1xf32>
    %cst_154 = arith.constant 0.166666672 : f32
    %292 = vector.broadcast %cst_154 : f32 to vector<64x1xf32>
    %293 = arith.mulf %291, %292 : vector<64x1xf32>
    %294 = vector.broadcast %293 : vector<64x1xf32> to vector<64x256xf32>
    %295 = arith.mulf %265, %294 : vector<64x256xf32>
    %cst_155 = arith.constant 3.000000e+00 : f32
    %296 = vector.broadcast %cst_155 : f32 to vector<64x256xf32>
    %297 = arith.addf %295, %296 : vector<64x256xf32>
    %cst_156 = arith.constant 0.000000e+00 : f32
    %cst_157 = arith.constant 6.000000e+00 : f32
    %298 = vector.broadcast %cst_156 : f32 to vector<64x256xf32>
    %299 = arith.maximumf %298, %297 : vector<64x256xf32>
    %300 = vector.broadcast %cst_157 : f32 to vector<64x256xf32>
    %301 = arith.minimumf %300, %299 : vector<64x256xf32>
    %302 = arith.mulf %295, %301 : vector<64x256xf32>
    %cst_158 = arith.constant 0.166666672 : f32
    %303 = vector.broadcast %cst_158 : f32 to vector<64x256xf32>
    %304 = arith.mulf %302, %303 : vector<64x256xf32>
    %c0_159 = arith.constant 0 : index
    %c0_160 = arith.constant 0 : index
    %305 = vector.load %arg12[%c0_159, %c0_160] : memref<16x64xbf16, #tpu.memory_space<vmem>>, vector<16x64xbf16>
    %306 = arith.truncf %304 : vector<64x256xf32> to vector<64x256xbf16>
    %cst_161 = arith.constant dense<0.000000e+00> : vector<16x256xf32>
    %307 = tpu.matmul %305, %306, %cst_161 {dimension_numbers = #tpu.dot_dimension_numbers<[1], [0], [0], [1], [0, 0, 1, 1], [], []>} : vector<16x64xbf16>, vector<64x256xbf16>, vector<16x256xf32> -> vector<16x256xf32>
    %c0_162 = arith.constant 0 : index
    %c0_163 = arith.constant 0 : index
    %308 = vector.load %arg13[%c0_162, %c0_163] : memref<16x1xf32, #tpu.memory_space<vmem>>, vector<16x1xf32>
    %309 = vector.broadcast %308 : vector<16x1xf32> to vector<16x256xf32>
    %310 = arith.mulf %307, %309 : vector<16x256xf32>
    %c0_164 = arith.constant 0 : index
    %c0_165 = arith.constant 0 : index
    %311 = vector.load %arg14[%c0_164, %c0_165] : memref<16x1xf32, #tpu.memory_space<vmem>>, vector<16x1xf32>
    %312 = vector.broadcast %311 : vector<16x1xf32> to vector<16x256xf32>
    %313 = arith.addf %310, %312 : vector<16x256xf32>
    %314 = arith.addf %313, %10 : vector<16x256xf32>
    %c0_166 = arith.constant 0 : index
    %c0_167 = arith.constant 0 : index
    %c0_168 = arith.constant 0 : index
    %315 = vector.load %arg15[%c0_166, %c0_167, %c0_168] : memref<1x16x256xf32, #tpu.memory_space<vmem>>, vector<1x16x256xf32>
    %316 = vector.shape_cast %315 : vector<1x16x256xf32> to vector<16x256xf32>
    %317 = vector.shape_cast %314 : vector<16x256xf32> to vector<1x16x256xf32>
    tpu.vector_store %arg15[%c0_166, %c0_167, %c0_168], %317 {strides = array<i32>} : memref<1x16x256xf32, #tpu.memory_space<vmem>>, vector<1x16x256xf32>,
    return
  }
  func.func @transform_0(%arg0: i32) -> (i32, i32, i32) {
    %c0_i32 = arith.constant 0 : i32
    %c0_i32_0 = arith.constant 0 : i32
    %c0_i32_1 = arith.constant 0 : i32
    return %arg0, %c0_i32, %c0_i32_0 : i32, i32, i32
  }
  func.func @transform_1(%arg0: i32) -> (i32, i32) {
    %c0_i32 = arith.constant 0 : i32
    %c0_i32_0 = arith.constant 0 : i32
    %c0_i32_1 = arith.constant 0 : i32
    return %c0_i32, %c0_i32_0 : i32, i32
  }
  func.func @transform_2(%arg0: i32) -> (i32, i32) {
    %c0_i32 = arith.constant 0 : i32
    %c0_i32_0 = arith.constant 0 : i32
    %c0_i32_1 = arith.constant 0 : i32
    return %c0_i32, %c0_i32_0 : i32, i32
  }
  func.func @transform_3(%arg0: i32) -> (i32, i32) {
    %c0_i32 = arith.constant 0 : i32
    %c0_i32_0 = arith.constant 0 : i32
    %c0_i32_1 = arith.constant 0 : i32
    return %c0_i32, %c0_i32_0 : i32, i32
  }
  func.func @transform_4(%arg0: i32) -> (i32, i32) {
    %c0_i32 = arith.constant 0 : i32
    %c0_i32_0 = arith.constant 0 : i32
    %c0_i32_1 = arith.constant 0 : i32
    return %c0_i32, %c0_i32_0 : i32, i32
  }
  func.func @transform_5(%arg0: i32) -> (i32, i32) {
    %c0_i32 = arith.constant 0 : i32
    %c0_i32_0 = arith.constant 0 : i32
    %c0_i32_1 = arith.constant 0 : i32
    return %c0_i32, %c0_i32_0 : i32, i32
  }
  func.func @transform_6(%arg0: i32) -> (i32, i32) {
    %c0_i32 = arith.constant 0 : i32
    %c0_i32_0 = arith.constant 0 : i32
    %c0_i32_1 = arith.constant 0 : i32
    return %c0_i32, %c0_i32_0 : i32, i32
  }
  func.func @transform_7(%arg0: i32) -> (i32, i32) {
    %c0_i32 = arith.constant 0 : i32
    %c0_i32_0 = arith.constant 0 : i32
    %c0_i32_1 = arith.constant 0 : i32
    return %c0_i32, %c0_i32_0 : i32, i32
  }
  func.func @transform_8(%arg0: i32) -> (i32, i32) {
    %c0_i32 = arith.constant 0 : i32
    %c0_i32_0 = arith.constant 0 : i32
    %c0_i32_1 = arith.constant 0 : i32
    return %c0_i32, %c0_i32_0 : i32, i32
  }
  func.func @transform_9(%arg0: i32) -> (i32, i32) {
    %c0_i32 = arith.constant 0 : i32
    %c0_i32_0 = arith.constant 0 : i32
    %c0_i32_1 = arith.constant 0 : i32
    return %c0_i32, %c0_i32_0 : i32, i32
  }
  func.func @transform_10(%arg0: i32) -> (i32, i32) {
    %c0_i32 = arith.constant 0 : i32
    %c0_i32_0 = arith.constant 0 : i32
    %c0_i32_1 = arith.constant 0 : i32
    return %c0_i32, %c0_i32_0 : i32, i32
  }
  func.func @transform_11(%arg0: i32) -> (i32, i32) {
    %c0_i32 = arith.constant 0 : i32
    %c0_i32_0 = arith.constant 0 : i32
    %c0_i32_1 = arith.constant 0 : i32
    return %c0_i32, %c0_i32_0 : i32, i32
  }
  func.func @transform_12(%arg0: i32) -> (i32, i32) {
    %c0_i32 = arith.constant 0 : i32
    %c0_i32_0 = arith.constant 0 : i32
    %c0_i32_1 = arith.constant 0 : i32
    return %c0_i32, %c0_i32_0 : i32, i32
  }
  func.func @transform_13(%arg0: i32) -> (i32, i32) {
    %c0_i32 = arith.constant 0 : i32
    %c0_i32_0 = arith.constant 0 : i32
    %c0_i32_1 = arith.constant 0 : i32
    return %c0_i32, %c0_i32_0 : i32, i32
  }
  func.func @transform_14(%arg0: i32) -> (i32, i32, i32) {
    %c0_i32 = arith.constant 0 : i32
    %c0_i32_0 = arith.constant 0 : i32
    %c0_i32_1 = arith.constant 0 : i32
    return %arg0, %c0_i32, %c0_i32_0 : i32, i32, i32
  }
}

</mosaic_0001>

<bundles_post_ra>
// kernel: inverted_residual.1
= control target key start
LH: loop header
LB: loop body
LE: loop exit
PB: predicated region body
PF: predicated region fallthrough
CT: control target
= control target key end

     0   :  { %s2618_s29 = smov 0   ;;  %s3589_s0 = inlined_call_operand.vmem [shape: f32[2,16,256], index: 0, kind: input, shape index: {}]   ;;  %s3590_s1 = inlined_call_operand.vmem [shape: bf16[64,16], index: 1, kind: input, shape index: {}]   ;;  %s3591_s2 = inlined_call_operand.vmem [shape: f32[64,1], index: 2, kind: input, shape index: {}]   ;;  %s3592_s3 = inlined_call_operand.vmem [shape: f32[64,1], index: 3, kind: input, shape index: {}]   ;;  %s3593_s4 = inlined_call_operand.vmem [shape: f32[9,64], index: 4, kind: input, shape index: {}]   ;;  %s3594_s5 = inlined_call_operand.vmem [shape: f32[1,64], index: 5, kind: input, shape index: {}]   ;;  %s3595_s6 = inlined_call_operand.vmem [shape: f32[1,64], index: 6, kind: input, shape index: {}]   ;;  %s3596_s7 = inlined_call_operand.vmem [shape: f32[64,16], index: 7, kind: input, shape index: {}]   ;;  %s3597_s8 = inlined_call_operand.vmem [shape: f32[1,16], index: 8, kind: input, shape index: {}]   ;;  %s3598_s9 = inlined_call_operand.vmem [shape: f32[64,16], index: 9, kind: input, shape index: {}]   ;;  %s3599_s10 = inlined_call_operand.vmem [shape: f32[64,1], index: 10, kind: input, shape index: {}]   ;;  %s3600_s11 = inlined_call_operand.vmem [shape: bf16[16,64], index: 11, kind: input, shape index: {}]   ;;  %s3601_s12 = inlined_call_operand.vmem [shape: f32[16,1], index: 12, kind: input, shape index: {}]   ;;  %s3602_s13 = inlined_call_operand.vmem [shape: f32[16,1], index: 13, kind: input, shape index: {}]   ;;  %s3603_s14 = inlined_call_operand.vmem [shape: f32[2,16,256], index: 14, kind: output, shape index: {}]  }
   0x1 LB: > { %s2483_s30 = sadd.s32 4294967295, %s2539_s29   ;;  %p2487_p0 = scmp.ge.s32.totalorder %s2539_s29, 1  ;;  %s2539_s29 = sphi %s2618_s29, %s24_s29  }
   0x2   : > { %p412_p1 = scmp.lt.s32.totalorder %s2539_s29, 3 }
   0x4   : > { %p413_p2 = pnand %p2487_p0, %p412_p1 }
   0x6   : > { %416 = sbr.rel (%p413_p2) target bundleno = 1340 (0x53c), region = 76 }
   0xb   : > { %p458_p3 = scmp.lt.s32.totalorder %s2483_s30, 1  ;;  %v2541_v0 = vmov 0   ;;  %v639_v1 = vld [vmem:[%s3591_s2] sm:$0xff]  ;;  %v640_v3 = vld [vmem:[%s3591_s2 + $0x8] sm:$0xff]  ;;  %v641_v9 = vld [vmem:[%s3591_s2 + $0x10] sm:$0xff]  ;;  %vm553_vm0 = vcmask 130048  }
   0xc   : > { %598 = vmatprep.mubr.bf16.mxu0 %v2541_v0  ;;  %2519 = vset.pattern.permute.xlu0 %v2541_v0  ;;  %v703_v2 = vld [vmem:[%s3592_s3] sm:$0xff]  ;;  %v704_v12 = vld [vmem:[%s3592_s3 + $0x8] sm:$0xff]  ;;  %v642_v13 = vld [vmem:[%s3591_s2 + $0x18] sm:$0xff]  ;;  %vm469_vm1 = vcmask 523264   ;;  %vm478_vm2 = vcmask 516096   ;;  %v2542_v27 = vmov 0.0  }
   0xd   : > { %s3610_s30 = smov (!%p458_p3, %s2483_s30), 1  ;;  %2520 = vset.pattern.permute.xlu1 %v2541_v0  ;;  %2377 = vmatprep.mubr.bf16.mxu1 %v2541_v0  ;;  %v2521_v11 = vld [vmem:[%s3590_s1] sm:$0xff]   ;;  %v705_v14 = vld [vmem:[%s3592_s3 + $0x10] sm:$0xff]  ;;  %v2522_v16 = vld [vmem:[%s3590_s1 + $0x8] sm:$0xff]   ;;  %470 = vst.msk [vmem:[#allocation2] sm:$0xff] %vm469_vm1, %v2542_v27  ;;  %vm472_vm3 = vcmask 517120  }
   0xe   : > { %s2507_s15 = sshll.u32 %s3610_s30, 5  ;;  %649 = vperm.xlu0 %2519, %v639_v1   ;;  %713 = vperm.xlu1 %2520, %v703_v2   ;;  %v643_v15 = vld [vmem:[%s3591_s2 + $0x20] sm:$0xff]  ;;  %v706_v17 = vld [vmem:[%s3592_s3 + $0x18] sm:$0xff]  ;;  %v644_v18 = vld [vmem:[%s3591_s2 + $0x28] sm:$0xff]  ;;  %471 = vst.msk [vmem:[#allocation2 + $0x8] sm:$0xff] %vm469_vm1, %v2542_v27 }
   0xf   : > { %s2640_s22 = scalar_lea.vmem %s3589_s0, %s2507_s15  ;;  %v707_v19 = vld [vmem:[%s3592_s3 + $0x20] sm:$0xff]  ;;  %v645_v20 = vld [vmem:[%s3591_s2 + $0x30] sm:$0xff]  ;;  %v708_v22 = vld [vmem:[%s3592_s3 + $0x28] sm:$0xff]  ;;  %480 = vst.msk [vmem:[#allocation2 + $0x18] sm:$0x1] %vm478_vm2, %v2542_v27  ;;  %s467_s27 = scalar_lea.vmem %s3603_s14, %s2507_s15 }
  0x10   : > { %v520_v4 = vld [vmem:[%s2640_s22 + $0x8] sm:$0xff]  ;;  %v522_v5 = vld [vmem:[%s2640_s22 + $0x18] sm:$0xff]  ;;  %v519_v6 = vld [vmem:[%s2640_s22] sm:$0xff]  ;;  %475 = vst.msk [vmem:[#allocation2 + $0x198] sm:$0xff] %vm469_vm1, %v2542_v27 }
  0x11   : > { %v532_v7 = vpack.c.bf16 %v522_v5, %v520_v4  ;;  %v521_v8 = vld [vmem:[%s2640_s22 + $0x10] sm:$0xff]  ;;  %v646_v23 = vld [vmem:[%s3591_s2 + $0x38] sm:$0xff]  ;;  %476 = vst.msk [vmem:[#allocation2 + $0x1a0] sm:$0xff] %vm469_vm1, %v2542_v27 }
  0x12   : > { %v531_v10 = vpack.c.bf16 %v521_v8, %v519_v6  ;;  %654 = vperm.xlu0 %2519, %v640_v3   ;;  %659 = vperm.xlu1 %2520, %v641_v9   ;;  %v2523_v21 = vld [vmem:[%s3590_s1 + $0x10] sm:$0xff]   ;;  %v710_v25 = vld [vmem:[%s3592_s3 + $0x38] sm:$0xff]  ;;  %481 = vst.msk [vmem:[#allocation2 + $0x30] sm:$0x1] %vm478_vm2, %v2542_v27  ;;  %482 = vst.msk [vmem:[#allocation2 + $0x48] sm:$0x1] %vm478_vm2, %v2542_v27 }
  0x13   : > { %580 = vmatprep.subr.bf16.mxu0 %v532_v7  ;;  %v709_v24 = vld [vmem:[%s3592_s3 + $0x30] sm:$0xff]  ;;  %v2524_v26 = vld [vmem:[%s3590_s1 + $0x18] sm:$0xff]   ;;  %483 = vst.msk [vmem:[#allocation2 + $0x60] sm:$0x1] %vm478_vm2, %v2542_v27  ;;  %484 = vst.msk [vmem:[#allocation2 + $0x78] sm:$0x1] %vm478_vm2, %v2542_v27 }
  0x14   : > { %581 = vmatpush1.bf16.msra.mxu0 %v531_v10  ;;  %485 = vst.msk [vmem:[#allocation2 + $0x90] sm:$0x1] %vm478_vm2, %v2542_v27  ;;  %486 = vst.msk [vmem:[#allocation2 + $0xa8] sm:$0x1] %vm478_vm2, %v2542_v27 }
  0x15   : > { %487 = vst.msk [vmem:[#allocation2 + $0xc0] sm:$0x1] %vm478_vm2, %v2542_v27  ;;  %488 = vst.msk [vmem:[#allocation2 + $0xd8] sm:$0x1] %vm478_vm2, %v2542_v27 }
  0x16   : > { %718 = vperm.xlu0 %2519, %v704_v12   ;;  %664 = vperm.xlu1 %2520, %v642_v13   ;;  %489 = vst.msk [vmem:[#allocation2 + $0xf0] sm:$0x1] %vm478_vm2, %v2542_v27  ;;  %490 = vst.msk [vmem:[#allocation2 + $0x108] sm:$0x1] %vm478_vm2, %v2542_v27 }
  0x17   : > { %2496 = vmatmul.mubr.msk.bf16.vlgmr.msra.gmra.mxu0 %vm553_vm0, %v2521_v11  ;;  %491 = vst.msk [vmem:[#allocation2 + $0x120] sm:$0x1] %vm478_vm2, %v2542_v27  ;;  %492 = vst.msk [vmem:[#allocation2 + $0x138] sm:$0x1] %vm478_vm2, %v2542_v27 }
  0x18   : > { %608 = vmatprep.mubr.bf16.mxu0 %v2541_v0  ;;  %493 = vst.msk [vmem:[#allocation2 + $0x150] sm:$0x1] %vm478_vm2, %v2542_v27  ;;  %494 = vst.msk [vmem:[#allocation2 + $0x168] sm:$0x1] %vm478_vm2, %v2542_v27 }
  0x19   : > { %495 = vst.msk [vmem:[#allocation2 + $0x180] sm:$0x1] %vm478_vm2, %v2542_v27  ;;  %498 = vst.msk [vmem:[#allocation2 + $0x29] sm:$0x1] %vm478_vm2, %v2542_v27 }
  0x1a   : > { %723 = vperm.xlu0 %2519, %v705_v14   ;;  %669 = vperm.xlu1 %2520, %v643_v15   ;;  %499 = vst.msk [vmem:[#allocation2 + $0x41] sm:$0x1] %vm478_vm2, %v2542_v27  ;;  %500 = vst.msk [vmem:[#allocation2 + $0x59] sm:$0x1] %vm478_vm2, %v2542_v27 }
  0x1b   : > { %501 = vst.msk [vmem:[#allocation2 + $0x71] sm:$0x1] %vm478_vm2, %v2542_v27  ;;  %502 = vst.msk [vmem:[#allocation2 + $0x89] sm:$0x1] %vm478_vm2, %v2542_v27 }
  0x1c   : > { %503 = vst.msk [vmem:[#allocation2 + $0xa1] sm:$0x1] %vm478_vm2, %v2542_v27  ;;  %504 = vst.msk [vmem:[#allocation2 + $0xb9] sm:$0x1] %vm478_vm2, %v2542_v27 }
  0x1d   : > { %505 = vst.msk [vmem:[#allocation2 + $0xd1] sm:$0x1] %vm478_vm2, %v2542_v27  ;;  %506 = vst.msk [vmem:[#allocation2 + $0xe9] sm:$0x1] %vm478_vm2, %v2542_v27 }
  0x1e   : > { %728 = vperm.xlu0 %2519, %v706_v17   ;;  %674 = vperm.xlu1 %2520, %v644_v18   ;;  %507 = vst.msk [vmem:[#allocation2 + $0x101] sm:$0x1] %vm478_vm2, %v2542_v27  ;;  %508 = vst.msk [vmem:[#allocation2 + $0x119] sm:$0x1] %vm478_vm2, %v2542_v27 }
  0x1f   : > { %2497 = vmatmul.mubr.msk.bf16.gmra.mxu0 %vm553_vm0, %v2522_v16  ;;  %509 = vst.msk [vmem:[#allocation2 + $0x131] sm:$0x1] %vm478_vm2, %v2542_v27  ;;  %510 = vst.msk [vmem:[#allocation2 + $0x149] sm:$0x1] %vm478_vm2, %v2542_v27 }
  0x20   : > { %618 = vmatprep.mubr.bf16.mxu0 %v2541_v0  ;;  %511 = vst.msk [vmem:[#allocation2 + $0x161] sm:$0x1] %vm478_vm2, %v2542_v27  ;;  %512 = vst.msk [vmem:[#allocation2 + $0x179] sm:$0x1] %vm478_vm2, %v2542_v27 }
  0x21   : > { %513 = vst.msk [vmem:[#allocation2 + $0x191] sm:$0x1] %vm478_vm2, %v2542_v27  ;;  %479 = vst.msk [vmem:[#allocation2] sm:$0x1] %vm478_vm2, %v2542_v27 }
  0x22   : > { %733 = vperm.xlu0 %2519, %v707_v19   ;;  %679 = vperm.xlu1 %2520, %v645_v20   ;;  %496 = vst.msk [vmem:[#allocation2 + $0x198] sm:$0x1] %vm478_vm2, %v2542_v27 }
  0x23   : > { %473 = vst.msk [vmem:[#allocation2 + $0x10] sm:$0x3] %vm472_vm3, %v2542_v27  ;;  %477 = vst.msk [vmem:[#allocation2 + $0x1a8] sm:$0x3] %vm472_vm3, %v2542_v27 }
  0x24   : > { %497 = vst.msk [vmem:[#allocation2 + $0x11] sm:$0x1] %vm478_vm2, %v2542_v27  ;;  %514 = vst.msk [vmem:[#allocation2 + $0x1a9] sm:$0x1] %vm478_vm2, %v2542_v27 }
  0x26   : > { %738 = vperm.xlu0 %2519, %v708_v22   ;;  %684 = vperm.xlu1 %2520, %v646_v23  }
  0x27   : > { %2498 = vmatmul.mubr.msk.bf16.gmra.mxu0 %vm553_vm0, %v2523_v21 }
  0x28   : > { %628 = vmatprep.mubr.bf16.mxu0 %v2541_v0 }
  0x2a   : > { %743 = vperm.xlu0 %2519, %v709_v24   ;;  %748 = vperm.xlu1 %2520, %v710_v25  }
  0x2f   : > { %2499 = vmatmul.mubr.msk.bf16.gmra.mxu0 %vm553_vm0, %v2524_v26 }
  0x89   : > { %v650_v28 = vpop.permute.xlu0 %649  ;;  %v714_v29 = vpop.permute.xlu1 %713 }
  0x8d   : > { %v655_v30 = vpop.permute.xlu0 %654  ;;  %v660_v31 = vpop.permute.xlu1 %659 }
  0x91   : > { %v719_v32 = vpop.permute.xlu0 %718  ;;  %v665_v34 = vpop.permute.xlu1 %664 }
  0x95   : > { %v724_v36 = vpop.permute.xlu0 %723  ;;  %v670_v45 = vpop.permute.xlu1 %669 }
  0x99   : > { %v729_v50 = vpop.permute.xlu0 %728  ;;  %v675_v1 = vpop.permute.xlu1 %674 }
  0x9d   : > { %v734_v6 = vpop.permute.xlu0 %733 }
  0xd7   : > { %v600_v33 = vpop.f32.mrf.mxu0 }
  0xd8   : > { %v687_v35 = vmul.f32 %v650_v28, %v600_v33 }
  0xd9   : > { %v602_v37 = vpop.f32.mrf.mxu0 }
  0xda   : > { %v751_v38 = vadd.f32 %v714_v29, %v687_v35  ;;  %v688_v39 = vmul.f32 %v650_v28, %v602_v37  ;;  %v680_v28 = vpop.permute.xlu1 %679 }
  0xdb   : > { %v604_v40 = vpop.f32.mrf.mxu0 }
  0xdc   : > { %v767_v41 = vadd.f32 3.0, %v751_v38  ;;  %v752_v42 = vadd.f32 %v714_v29, %v688_v39  ;;  %v689_v43 = vmul.f32 %v655_v30, %v604_v40 }
  0xdd   : > { %v606_v44 = vpop.f32.mrf.mxu0 }
  0xde   : > { %v783_v46 = vmax.f32 %v767_v41, 0.0  ;;  %v768_v47 = vadd.f32 3.0, %v752_v42  ;;  %v753_v48 = vadd.f32 %v719_v32, %v689_v43  ;;  %v690_v49 = vmul.f32 %v655_v30, %v606_v44 }
  0xdf   : > { %v610_v51 = vpop.f32.mrf.mxu0 }
  0xe0   : > { %v799_v52 = vmin.f32 %v783_v46, 6.0  ;;  %v784_v53 = vmax.f32 %v768_v47, 0.0  ;;  %v769_v54 = vadd.f32 3.0, %v753_v48  ;;  %v754_v55 = vadd.f32 %v719_v32, %v690_v49  ;;  %v739_v32 = vpop.permute.xlu0 %738 }
  0xe1   : > { %v691_v56 = vmul.f32 %v660_v31, %v610_v51  ;;  %v612_v57 = vpop.f32.mrf.mxu0 }
  0xe2   : > { %v800_v58 = vmin.f32 %v784_v53, 6.0  ;;  %v785_v59 = vmax.f32 %v769_v54, 0.0  ;;  %v770_v60 = vadd.f32 3.0, %v754_v55  ;;  %v692_v61 = vmul.f32 %v660_v31, %v612_v57  ;;  %v685_v53 = vpop.permute.xlu1 %684 }
  0xe3   : > { %v755_v62 = vadd.f32 %v724_v36, %v691_v56  ;;  %v614_v63 = vpop.f32.mrf.mxu0  ;;  %v815_v0 = vmul.f32 %v799_v52, %v751_v38 }
  0xe4   : > { %v801_v2 = vmin.f32 %v785_v59, 6.0  ;;  %v786_v3 = vmax.f32 %v770_v60, 0.0  ;;  %v756_v4 = vadd.f32 %v724_v36, %v692_v61  ;;  %v693_v5 = vmul.f32 %v665_v34, %v614_v63 }
  0xe5   : > { %v771_v7 = vadd.f32 3.0, %v755_v62  ;;  %v616_v8 = vpop.f32.mrf.mxu0  ;;  %v831_v9 = vmul.f32 0.16666667, %v815_v0  ;;  %v816_v10 = vmul.f32 %v800_v58, %v752_v42  ;;  %v744_v58 = vpop.permute.xlu0 %743 }
  0xe6   : > { %v817_v11 = vmul.f32 %v801_v2, %v753_v48  ;;  %v802_v12 = vmin.f32 %v786_v3, 6.0  ;;  %v772_v13 = vadd.f32 3.0, %v756_v4  ;;  %v757_v14 = vadd.f32 %v729_v50, %v693_v5 }
  0xe7   : > { %v787_v15 = vmax.f32 %v771_v7, 0.0  ;;  %v694_v16 = vmul.f32 %v665_v34, %v616_v8  ;;  %847 = vxpose.xlu0.b32.start [1/8] (short) %v831_v9, 128  ;;  %v620_v17 = vpop.f32.mrf.mxu0  ;;  %v832_v18 = vmul.f32 0.16666667, %v816_v10 }
  0xe8   : > { %v833_v19 = vmul.f32 0.16666667, %v817_v11  ;;  %v818_v20 = vmul.f32 %v802_v12, %v754_v55  ;;  %v788_v21 = vmax.f32 %v772_v13, 0.0  ;;  %v773_v22 = vadd.f32 3.0, %v757_v14 }
  0xe9   : > { %v803_v23 = vmin.f32 %v787_v15, 6.0  ;;  %v758_v24 = vadd.f32 %v729_v50, %v694_v16  ;;  %v695_v25 = vmul.f32 %v670_v45, %v620_v17  ;;  %879 = vxpose.xlu1.b32.start [1/8] (short) %v832_v18, 128  ;;  %v622_v26 = vpop.f32.mrf.mxu0  ;;  %v749_v15 = vpop.permute.xlu1 %748 }
  0xea   : > { %v834_v27 = vmul.f32 0.16666667, %v818_v20  ;;  %v804_v29 = vmin.f32 %v788_v21, 6.0  ;;  %v789_v30 = vmax.f32 %v773_v22, 0.0  ;;  %v696_v31 = vmul.f32 %v670_v45, %v622_v26 }
  0xeb   : > { %v819_v33 = vmul.f32 %v803_v23, %v755_v62  ;;  %v774_v34 = vadd.f32 3.0, %v758_v24  ;;  %v759_v35 = vadd.f32 %v734_v6, %v695_v25  ;;  %848 = vxpose.xlu0.b32.cont [2/8] (short) %v833_v19, 128  ;;  %v624_v36 = vpop.f32.mrf.mxu0 }
  0xec   : > { %v820_v37 = vmul.f32 %v804_v29, %v756_v4  ;;  %v805_v38 = vmin.f32 %v789_v30, 6.0  ;;  %v760_v39 = vadd.f32 %v734_v6, %v696_v31  ;;  %v697_v40 = vmul.f32 %v675_v1, %v624_v36 }
  0xed   : > { %v835_v41 = vmul.f32 0.16666667, %v819_v33  ;;  %v790_v42 = vmax.f32 %v774_v34, 0.0  ;;  %v775_v43 = vadd.f32 3.0, %v759_v35  ;;  %880 = vxpose.xlu1.b32.cont [2/8] (short) %v834_v27, 128  ;;  %v626_v44 = vpop.f32.mrf.mxu0 }
  0xee   : > { %v836_v46 = vmul.f32 0.16666667, %v820_v37  ;;  %v821_v47 = vmul.f32 %v805_v38, %v757_v14  ;;  %v776_v48 = vadd.f32 3.0, %v760_v39  ;;  %v761_v49 = vadd.f32 %v739_v32, %v697_v40 }
  0xef   : > { %v806_v45 = vmin.f32 %v790_v42, 6.0  ;;  %v791_v50 = vmax.f32 %v775_v43, 0.0  ;;  %v698_v51 = vmul.f32 %v675_v1, %v626_v44  ;;  %849 = vxpose.xlu0.b32.cont [3/8] (short) %v835_v41, 128  ;;  %v630_v52 = vpop.f32.mrf.mxu0  ;;  %v952_v44 = vlaneseq }
  0xf0   : > { %v837_v54 = vmul.f32 0.16666667, %v821_v47  ;;  %v792_v55 = vmax.f32 %v776_v48, 0.0  ;;  %v777_v56 = vadd.f32 3.0, %v761_v49  ;;  %v699_v57 = vmul.f32 %v680_v28, %v630_v52  ;;  %v944_v52 = vld [vmem:[#allocation2] sm:$0xff] }
  0xf1   : > { %v822_v59 = vmul.f32 %v806_v45, %v758_v24  ;;  %v807_v60 = vmin.f32 %v791_v50, 6.0  ;;  %v762_v61 = vadd.f32 %v739_v32, %v698_v51  ;;  %881 = vxpose.xlu1.b32.cont [3/8] (short) %v836_v46, 128  ;;  %v632_v62 = vpop.f32.mrf.mxu0  ;;  %v2786_v46 = vshrl.u32 %v952_v44, 7 }
  0xf2   : > { %v808_v63 = vmin.f32 %v792_v55, 6.0  ;;  %v793_v0 = vmax.f32 %v777_v56, 0.0  ;;  %v763_v2 = vadd.f32 %v744_v58, %v699_v57  ;;  %v700_v3 = vmul.f32 %v680_v28, %v632_v62  ;;  %v945_v57 = vld [vmem:[#allocation2 + $0x8] sm:$0xff] }
  0xf3   : > { %v838_v4 = vmul.f32 0.16666667, %v822_v59  ;;  %v823_v5 = vmul.f32 %v807_v60, %v759_v35  ;;  %v778_v1 = vadd.f32 3.0, %v762_v61  ;;  %850 = vxpose.xlu0.b32.cont [4/8] (short) %v837_v54, 128  ;;  %v634_v6 = vpop.f32.mrf.mxu0  ;;  %3606 = vst [vmem:[#allocation4_spill] sm:$0xff] %v2786_v46  ;;  %v3604_v47 = vsub.s32 0, %v2786_v46  ;;  %v992_v59 = vld [vmem:[#allocation2 + $0x2] sm:$0xff] }
  0xf4   : > { %v824_v7 = vmul.f32 %v808_v63, %v760_v39  ;;  %v809_v8 = vmin.f32 %v793_v0, 6.0  ;;  %v779_v9 = vadd.f32 3.0, %v763_v2  ;;  %v764_v10 = vadd.f32 %v744_v58, %v700_v3  ;;  %v965_v58 = vld [vmem:[#allocation2 + $0x9] sm:$0xff] }
  0xf5   : > { %v839_v11 = vmul.f32 0.16666667, %v823_v5  ;;  %v794_v12 = vmax.f32 %v778_v1, 0.0  ;;  %v701_v13 = vmul.f32 %v685_v53, %v634_v6  ;;  %882 = vxpose.xlu1.b32.cont [4/8] (short) %v838_v4, 128  ;;  %v636_v14 = vpop.f32.mrf.mxu0  ;;  %v974_v48 = vsub.s32 1, %v2786_v46  ;;  %v993_v5 = vld [vmem:[#allocation2 + $0xa] sm:$0xff] }
  0xf6   : > { %v840_v16 = vmul.f32 0.16666667, %v824_v7  ;;  %v825_v17 = vmul.f32 %v809_v8, %v761_v49  ;;  %v795_v18 = vmax.f32 %v779_v9, 0.0  ;;  %v780_v19 = vadd.f32 3.0, %v764_v10  ;;  %v515_v49 = vld [vmem:[%s3593_s4] sm:$0xff] }
  0xf7   : > { %v810_v20 = vmin.f32 %v794_v12, 6.0  ;;  %v765_v21 = vadd.f32 %v749_v15, %v701_v13  ;;  %v702_v22 = vmul.f32 %v685_v53, %v636_v14  ;;  %851 = vxpose.xlu0.b32.cont [5/8] (short) %v839_v11, 128  ;;  %v2795_v45 = vrot.slane %v515_v49, %v3604_v47  ;;  %v964_v53 = vld [vmem:[#allocation2 + $0x1] sm:$0xff] }
  0xf8   : > { %v841_v23 = vmul.f32 0.16666667, %v825_v17  ;;  %v811_v24 = vmin.f32 %v795_v18, 6.0  ;;  %v796_v25 = vmax.f32 %v780_v19, 0.0  ;;  %v2797_v50 = vrot.slane %v515_v49, %v974_v48 }
  0xf9   : > { %v826_v26 = vmul.f32 %v810_v20, %v762_v61  ;;  %v781_v28 = vadd.f32 3.0, %v765_v21  ;;  %v766_v27 = vadd.f32 %v749_v15, %v702_v22  ;;  %883 = vxpose.xlu1.b32.cont [5/8] (short) %v840_v16, 128  ;;  %v1002_v51 = vsub.s32 2, %v2786_v46 }
  0xfa   : > { %v827_v29 = vmul.f32 %v811_v24, %v763_v2  ;;  %v812_v30 = vmin.f32 %v796_v25, 6.0  ;;  %v956_v54 = vmul.f32 %v2795_v45, %v944_v52  ;;  %v976_v55 = vmul.f32 %v2797_v50, %v964_v53 }
  0xfb   : > { %v842_v31 = vmul.f32 0.16666667, %v826_v26  ;;  %v797_v32 = vmax.f32 %v781_v28, 0.0  ;;  %v782_v33 = vadd.f32 3.0, %v766_v27  ;;  %852 = vxpose.xlu0.b32.cont [6/8] (short) %v841_v23, 128  ;;  %v2802_v56 = vrot.slane %v515_v49, %v1002_v51 }
  0xfc   : > { %v843_v34 = vmul.f32 0.16666667, %v827_v29  ;;  %v828_v35 = vmul.f32 %v812_v30, %v764_v10  ;;  %v1030_v61 = vsub.s32 3, %v2786_v46  ;;  %v1058_v62 = vsub.s32 4, %v2786_v46 }
  0xfd   : > { %v813_v36 = vmin.f32 %v797_v32, 6.0  ;;  %v798_v37 = vmax.f32 %v782_v33, 0.0  ;;  %884 = vxpose.xlu1.b32.cont [6/8] (short) %v842_v31, 128  ;;  %v957_v63 = vmul.f32 %v2795_v45, %v945_v57  ;;  %v977_v0 = vmul.f32 %v2797_v50, %v965_v58 }
  0xfe   : > { %v844_v38 = vmul.f32 0.16666667, %v828_v35  ;;  %v984_v3 = vadd.f32 %v976_v55, %v956_v54  ;;  %v1004_v4 = vmul.f32 %v2802_v56, %v992_v59  ;;  %v1115_v6 = vsub.s32 6, %v2786_v46 }
  0xff   : > { %v829_v39 = vmul.f32 %v813_v36, %v765_v21  ;;  %v814_v40 = vmin.f32 %v798_v37, 6.0  ;;  %853 = vxpose.xlu0.b32.cont [7/8] (short) %v843_v34, 128  ;;  %v2812_v7 = vrot.slane %v515_v49, %v1030_v61  ;;  %v1143_v8 = vsub.s32 7, %v2786_v46 }
 0x100   : > { %v2816_v9 = vrot.slane %v515_v49, %v1058_v62  ;;  %v985_v10 = vadd.f32 %v977_v0, %v957_v63  ;;  %v1005_v11 = vmul.f32 %v2802_v56, %v993_v5  ;;  %v1086_v12 = vsub.s32 5, %v2786_v46 }
 0x101   : > { %v845_v41 = vmul.f32 0.16666667, %v829_v39  ;;  %v830_v42 = vmul.f32 %v814_v40, %v766_v27  ;;  %885 = vxpose.xlu1.b32.cont [7/8] (short) %v844_v38, 128  ;;  %v1012_v14 = vadd.f32 %v1004_v4, %v984_v3  ;;  %v2821_v17 = vrot.slane %v515_v49, %v1115_v6 }
 0x102   : > { %v2826_v22 = vrot.slane %v515_v49, %v1143_v8  ;;  %v1013_v24 = vadd.f32 %v1005_v11, %v985_v10  ;;  %v2830_v25 = vrot.slane %v515_v49, %v1086_v12 }
 0x103   : > { %v846_v43 = vmul.f32 0.16666667, %v830_v42  ;;  %854 = vxpose.xlu0.b32.end [8/8] (short) %v845_v41, 128 }
 0x105   : > { %886 = vxpose.xlu1.b32.end [8/8] (short) %v846_v43, 128 }
 0x163   : > { %v863_v60 = vpop.trf.xlu0 }
 0x164   : > { %912 = vst.msk [vmem:[#allocation2 + $0x19] sm:$0xff] %vm469_vm1, %v863_v60 }
 0x165   : > { %v895_v2 = vpop.trf.xlu1 }
 0x166   : > { %928 = vst.msk [vmem:[#allocation2 + $0xd9] sm:$0xff] %vm469_vm1, %v895_v2 }
 0x167   : > { %v864_v1 = vpop.trf.xlu0 }
 0x168   : > { %913 = vst.msk [vmem:[#allocation2 + $0x21] sm:$0xff] %vm469_vm1, %v864_v1 }
 0x169   : > { %v896_v13 = vpop.trf.xlu1 }
 0x16a   : > { %929 = vst.msk [vmem:[#allocation2 + $0xe1] sm:$0xff] %vm469_vm1, %v896_v13 }
 0x16b   : > { %v946_v15 = vld [vmem:[#allocation2 + $0x18] sm:$0xff]  ;;  %v865_v18 = vpop.trf.xlu0 }
 0x16c   : > { %v966_v16 = vld [vmem:[#allocation2 + $0x19] sm:$0xff]  ;;  %v958_v19 = vmul.f32 %v2795_v45, %v946_v15  ;;  %v1032_v21 = vmul.f32 %v2812_v7, %v946_v15  ;;  %914 = vst.msk [vmem:[#allocation2 + $0x31] sm:$0xff] %vm469_vm1, %v865_v18 }
 0x16d   : > { %v978_v20 = vmul.f32 %v2797_v50, %v966_v16  ;;  %v1060_v23 = vmul.f32 %v2816_v9, %v966_v16  ;;  %v1370_v26 = vld [vmem:[#allocation2 + $0xd8] sm:$0xff]  ;;  %v897_v27 = vpop.trf.xlu1  ;;  %v2883_v16 = vld [vmem:[%s3593_s4 + $0x8] ss:$0 sm:$0xff] }
 0x16e   : > { %v1394_v28 = vld [vmem:[#allocation2 + $0xd9] sm:$0xff]  ;;  %v1040_v30 = vadd.f32 %v1032_v21, %v1012_v14  ;;  %v2833_v31 = vmul.f32 %v1370_v26, %v2821_v17  ;;  %930 = vst.msk [vmem:[#allocation2 + $0xf1] sm:$0xff] %vm469_vm1, %v897_v27  ;;  %v1471_v37 = vmul.f32 %v1370_v26, %v2795_v45  ;;  %v2842_v39 = vmul.f32 %v1370_v26, %v2812_v7 }
 0x16f   : > { %v986_v29 = vadd.f32 %v978_v20, %v958_v19  ;;  %v2836_v32 = vmul.f32 %v1394_v28, %v2826_v22  ;;  %v947_v33 = vld [vmem:[#allocation2 + $0x20] sm:$0xff]  ;;  %v866_v36 = vpop.trf.xlu0  ;;  %v1487_v38 = vmul.f32 %v1394_v28, %v2797_v50  ;;  %v2845_v40 = vmul.f32 %v1394_v28, %v2816_v9 }
 0x170   : > { %v967_v34 = vld [vmem:[#allocation2 + $0x21] sm:$0xff]  ;;  %v1068_v41 = vadd.f32 %v1060_v23, %v1040_v30  ;;  %v959_v42 = vmul.f32 %v2795_v45, %v947_v33  ;;  %915 = vst.msk [vmem:[#allocation2 + $0x39] sm:$0xff] %vm469_vm1, %v866_v36  ;;  %v1033_v51 = vmul.f32 %v2812_v7, %v947_v33 }
 0x171   : > { %v994_v35 = vld [vmem:[#allocation2 + $0x1a] sm:$0xff]  ;;  %v979_v43 = vmul.f32 %v2797_v50, %v967_v34  ;;  %v995_v44 = vld [vmem:[#allocation2 + $0x22] sm:$0xff]  ;;  %v1061_v52 = vmul.f32 %v2816_v9, %v967_v34  ;;  %v898_v55 = vpop.trf.xlu1  ;;  %v2858_v60 = vadd.f32 %v1487_v38, %v1471_v37 }
 0x172   : > { %v1006_v48 = vmul.f32 %v2802_v56, %v994_v35  ;;  %v1007_v49 = vmul.f32 %v2802_v56, %v995_v44  ;;  %v1088_v53 = vmul.f32 %v2830_v25, %v994_v35  ;;  %v2855_v54 = vld [vmem:[#allocation2 + $0xe0] sm:$0xff]  ;;  %v1089_v59 = vmul.f32 %v2830_v25, %v995_v44  ;;  %931 = vst.msk [vmem:[#allocation2 + $0xf9] sm:$0xff] %vm469_vm1, %v898_v55 }
 0x173   : > { %v987_v57 = vadd.f32 %v979_v43, %v959_v42  ;;  %v2860_v61 = vld [vmem:[#allocation2 + $0xe1] sm:$0xff]  ;;  %v1041_v62 = vadd.f32 %v1033_v51, %v1013_v24  ;;  %v948_v0 = vld [vmem:[#allocation2 + $0x30] sm:$0xff]  ;;  %v867_v3 = vpop.trf.xlu0  ;;  %v2865_v4 = vmul.f32 %v2855_v54, %v2821_v17  ;;  %v2898_v34 = vmul.f32 %v2855_v54, %v2795_v45 }
 0x174   : > { %v1014_v58 = vadd.f32 %v1006_v48, %v986_v29  ;;  %v1096_v63 = vadd.f32 %v1088_v53, %v1068_v41  ;;  %v968_v2 = vld [vmem:[#allocation2 + $0x31] sm:$0xff]  ;;  %v2869_v5 = vmul.f32 %v2860_v61, %v2826_v22  ;;  %v2871_v1 = vld [vmem:[#allocation2 + $0xda] sm:$0xff]  ;;  %v960_v8 = vmul.f32 %v2795_v45, %v948_v0  ;;  %916 = vst.msk [vmem:[#allocation2 + $0x49] sm:$0xff] %vm469_vm1, %v867_v3  ;;  %v2885_v18 = vld [vmem:[#allocation2 + $0xe2] sm:$0xff] }
 0x175   : > { %v1015_v6 = vadd.f32 %v1007_v49, %v987_v57  ;;  %v980_v10 = vmul.f32 %v2797_v50, %v968_v2  ;;  %v1034_v11 = vmul.f32 %v2812_v7, %v948_v0  ;;  %v1069_v12 = vadd.f32 %v1061_v52, %v1041_v62  ;;  %v899_v19 = vpop.trf.xlu1 }
 0x176   : > { %v1062_v13 = vmul.f32 %v2816_v9, %v968_v2  ;;  %v1117_v14 = vmul.f32 %v2821_v17, %v948_v0  ;;  %v1145_v15 = vmul.f32 %v2826_v22, %v968_v2  ;;  %v2889_v23 = vmul.f32 %v2883_v16, %v2871_v1  ;;  %932 = vst.msk [vmem:[#allocation2 + $0x109] sm:$0xff] %vm469_vm1, %v899_v19 }
 0x177   : > { %v988_v20 = vadd.f32 %v980_v10, %v960_v8  ;;  %v1042_v21 = vadd.f32 %v1034_v11, %v1014_v58  ;;  %v2893_v24 = vmul.f32 %v2883_v16, %v2885_v18  ;;  %v1097_v26 = vadd.f32 %v1089_v59, %v1069_v12  ;;  %v949_v27 = vld [vmem:[#allocation2 + $0x38] sm:$0xff]  ;;  %v868_v33 = vpop.trf.xlu0  ;;  %v2920_v8 = vld [vmem:[%s3594_s5] ss:$0 sm:$0xff] }
 0x178   : > { %v1125_v28 = vadd.f32 %v1117_v14, %v1096_v63  ;;  %v969_v29 = vld [vmem:[#allocation2 + $0x39] sm:$0xff]  ;;  %v2902_v35 = vmul.f32 %v2860_v61, %v2797_v50  ;;  %v961_v37 = vmul.f32 %v2795_v45, %v949_v27  ;;  %917 = vst.msk [vmem:[#allocation2 + $0x51] sm:$0xff] %vm469_vm1, %v868_v33  ;;  %v1035_v48 = vmul.f32 %v2812_v7, %v949_v27 }
 0x179   : > { %v996_v30 = vld [vmem:[#allocation2 + $0x32] sm:$0xff]  ;;  %v1070_v36 = vadd.f32 %v1062_v13, %v1042_v21  ;;  %v981_v38 = vmul.f32 %v2797_v50, %v969_v29  ;;  %v997_v41 = vld [vmem:[#allocation2 + $0x3a] sm:$0xff]  ;;  %v1063_v49 = vmul.f32 %v2816_v9, %v969_v29  ;;  %v900_v51 = vpop.trf.xlu1  ;;  %v1118_v59 = vmul.f32 %v2821_v17, %v949_v27 }
 0x17a   : > { %v1008_v42 = vmul.f32 %v2802_v56, %v996_v30  ;;  %v1153_v43 = vadd.f32 %v1145_v15, %v1125_v28  ;;  %v1009_v44 = vmul.f32 %v2802_v56, %v997_v41  ;;  %v1090_v55 = vmul.f32 %v2830_v25, %v996_v30  ;;  %933 = vst.msk [vmem:[#allocation2 + $0x111] sm:$0xff] %vm469_vm1, %v900_v51 }
 0x17b   : > { %v989_v52 = vadd.f32 %v981_v38, %v961_v37  ;;  %v1091_v57 = vmul.f32 %v2830_v25, %v997_v41  ;;  %v1043_v58 = vadd.f32 %v1035_v48, %v1015_v6  ;;  %v1146_v62 = vmul.f32 %v2826_v22, %v969_v29  ;;  %v950_v0 = vld [vmem:[#allocation2 + $0x48] sm:$0xff]  ;;  %v869_v3 = vpop.trf.xlu0 }
 0x17c   : > { %v1016_v53 = vadd.f32 %v1008_v42, %v988_v20  ;;  %v1173_v63 = vmul.f32 %v2883_v16, %v996_v30  ;;  %v970_v2 = vld [vmem:[#allocation2 + $0x49] sm:$0xff]  ;;  %v1098_v11 = vadd.f32 %v1090_v55, %v1070_v36  ;;  %v1174_v12 = vmul.f32 %v2883_v16, %v997_v41  ;;  %918 = vst.msk [vmem:[#allocation2 + $0x61] sm:$0xff] %vm469_vm1, %v869_v3 }
 0x17d   : > { %v1017_v10 = vadd.f32 %v1009_v44, %v989_v52  ;;  %v962_v6 = vmul.f32 %v2795_v45, %v950_v0  ;;  %v1071_v13 = vadd.f32 %v1063_v49, %v1043_v58  ;;  %v1126_v14 = vadd.f32 %v1118_v59, %v1097_v26  ;;  %v901_v20 = vpop.trf.xlu1 }
 0x17e   : > { %v1181_v15 = vadd.f32 %v1173_v63, %v1153_v43  ;;  %v982_v19 = vmul.f32 %v2797_v50, %v970_v2  ;;  %v1036_v21 = vmul.f32 %v2812_v7, %v950_v0  ;;  %v1064_v28 = vmul.f32 %v2816_v9, %v970_v2  ;;  %934 = vst.msk [vmem:[#allocation2 + $0x121] sm:$0xff] %vm469_vm1, %v901_v20 }
 0x17f   : > { %v1119_v27 = vmul.f32 %v2821_v17, %v950_v0  ;;  %v1147_v29 = vmul.f32 %v2826_v22, %v970_v2  ;;  %v1099_v30 = vadd.f32 %v1091_v57, %v1071_v13  ;;  %v1154_v33 = vadd.f32 %v1146_v62, %v1126_v14  ;;  %v951_v37 = vld [vmem:[#allocation2 + $0x50] sm:$0xff]  ;;  %v870_v42 = vpop.trf.xlu0 }
 0x180   : > { %v2932_v36 = vmul.f32 %v2920_v8, %v1181_v15  ;;  %v990_v26 = vadd.f32 %v982_v19, %v962_v6  ;;  %v971_v38 = vld [vmem:[#allocation2 + $0x51] sm:$0xff]  ;;  %v1044_v43 = vadd.f32 %v1036_v21, %v1016_v53  ;;  %v963_v48 = vmul.f32 %v2795_v45, %v951_v37  ;;  %919 = vst.msk [vmem:[#allocation2 + $0x69] sm:$0xff] %vm469_vm1, %v870_v42 }
 0x181   : > { %v998_v41 = vld [vmem:[#allocation2 + $0x4a] sm:$0xff]  ;;  %v1127_v44 = vadd.f32 %v1119_v27, %v1098_v11  ;;  %v983_v49 = vmul.f32 %v2797_v50, %v971_v38  ;;  %v999_v51 = vld [vmem:[#allocation2 + $0x52] sm:$0xff]  ;;  %v1182_v52 = vadd.f32 %v1174_v12, %v1154_v33  ;;  %v1037_v58 = vmul.f32 %v2812_v7, %v951_v37  ;;  %v902_v59 = vpop.trf.xlu1 }
 0x182   : > { %v1010_v55 = vmul.f32 %v2802_v56, %v998_v41  ;;  %v1011_v57 = vmul.f32 %v2802_v56, %v999_v51  ;;  %v1072_v62 = vadd.f32 %v1064_v28, %v1044_v43  ;;  %v1065_v53 = vmul.f32 %v2816_v9, %v971_v38  ;;  %935 = vst.msk [vmem:[#allocation2 + $0x129] sm:$0xff] %vm469_vm1, %v902_v59 }
 0x183   : > { %v1155_v63 = vadd.f32 %v1147_v29, %v1127_v44  ;;  %v991_v0 = vadd.f32 %v983_v49, %v963_v48  ;;  %v2943_v2 = vmul.f32 %v2920_v8, %v1182_v52  ;;  %v1045_v11 = vadd.f32 %v1037_v58, %v1017_v10  ;;  %v1026_v6 = vld [vmem:[#allocation2 + $0x60] sm:$0xff]  ;;  %v871_v14 = vpop.trf.xlu0 }
 0x184   : > { %v1018_v3 = vadd.f32 %v1010_v55, %v990_v26  ;;  %v1092_v12 = vmul.f32 %v2830_v25, %v998_v41  ;;  %v1054_v13 = vld [vmem:[#allocation2 + $0x61] sm:$0xff]  ;;  %v1093_v19 = vmul.f32 %v2830_v25, %v999_v51  ;;  %v1120_v20 = vmul.f32 %v2821_v17, %v951_v37  ;;  %920 = vst.msk [vmem:[#allocation2 + $0x79] sm:$0xff] %vm469_vm1, %v871_v14 }
 0x185   : > { %v1019_v15 = vadd.f32 %v1011_v57, %v991_v0  ;;  %v1148_v21 = vmul.f32 %v2826_v22, %v971_v38  ;;  %v1073_v28 = vadd.f32 %v1065_v53, %v1045_v11  ;;  %v1175_v29 = vmul.f32 %v2883_v16, %v998_v41  ;;  %v903_v33 = vpop.trf.xlu1 }
 0x186   : > { %v1100_v27 = vadd.f32 %v1092_v12, %v1072_v62  ;;  %v1176_v10 = vmul.f32 %v2883_v16, %v999_v51  ;;  %v1128_v26 = vadd.f32 %v1120_v20, %v1099_v30  ;;  %v1038_v42 = vmul.f32 %v2812_v7, %v1026_v6  ;;  %936 = vst.msk [vmem:[#allocation2 + $0x139] sm:$0xff] %vm469_vm1, %v903_v33 }
 0x187   : > { %v1066_v43 = vmul.f32 %v2816_v9, %v1054_v13  ;;  %v1121_v44 = vmul.f32 %v2821_v17, %v1026_v6  ;;  %v1101_v37 = vadd.f32 %v1093_v19, %v1073_v28  ;;  %v1183_v38 = vadd.f32 %v1175_v29, %v1155_v63  ;;  %v1027_v52 = vld [vmem:[#allocation2 + $0x68] sm:$0xff]  ;;  %v872_v51 = vpop.trf.xlu0 }
 0x188   : > { %v1149_v48 = vmul.f32 %v2826_v22, %v1054_v13  ;;  %v1234_v49 = vmul.f32 %v1026_v6, %v2795_v45  ;;  %v1055_v41 = vld [vmem:[#allocation2 + $0x69] sm:$0xff]  ;;  %v1156_v57 = vadd.f32 %v1148_v21, %v1128_v26  ;;  %v1046_v30 = vadd.f32 %v1038_v42, %v1018_v3  ;;  %921 = vst.msk [vmem:[#allocation2 + $0x81] sm:$0xff] %vm469_vm1, %v872_v51 }
 0x189   : > { %v1082_v55 = vld [vmem:[#allocation2 + $0x62] sm:$0xff]  ;;  %v1129_v58 = vadd.f32 %v1121_v44, %v1100_v27  ;;  %v1250_v59 = vmul.f32 %v1054_v13, %v2797_v50  ;;  %v1083_v62 = vld [vmem:[#allocation2 + $0x6a] sm:$0xff]  ;;  %v2961_v0 = vmul.f32 %v2920_v8, %v1183_v38  ;;  %v1039_v63 = vmul.f32 %v2812_v7, %v1027_v52  ;;  %v904_v12 = vpop.trf.xlu1 }
 0x18a   : > { %v1067_v53 = vmul.f32 %v2816_v9, %v1055_v41  ;;  %v1094_v11 = vmul.f32 %v2830_v25, %v1082_v55  ;;  %v1184_v6 = vadd.f32 %v1176_v10, %v1156_v57  ;;  %v1074_v14 = vadd.f32 %v1066_v43, %v1046_v30  ;;  %937 = vst.msk [vmem:[#allocation2 + $0x141] sm:$0xff] %vm469_vm1, %v904_v12 }
 0x18b   : > { %v1157_v19 = vadd.f32 %v1149_v48, %v1129_v58  ;;  %v1258_v3 = vadd.f32 %v1250_v59, %v1234_v49  ;;  %v1047_v13 = vadd.f32 %v1039_v63, %v1019_v15  ;;  %v1095_v20 = vmul.f32 %v2830_v25, %v1083_v62  ;;  %v1111_v27 = vld [vmem:[#allocation2 + $0x78] sm:$0xff]  ;;  %v873_v29 = vpop.trf.xlu0 }
 0x18c   : > { %v1122_v21 = vmul.f32 %v2821_v17, %v1027_v52  ;;  %v1150_v28 = vmul.f32 %v2826_v22, %v1055_v41  ;;  %v2971_v33 = vmul.f32 %v2920_v8, %v1184_v6  ;;  %v1102_v26 = vadd.f32 %v1094_v11, %v1074_v14  ;;  %v1139_v43 = vld [vmem:[#allocation2 + $0x79] sm:$0xff]  ;;  %922 = vst.msk [vmem:[#allocation2 + $0x91] sm:$0xff] %vm469_vm1, %v873_v29 }
 0x18d   : > { %v1177_v10 = vmul.f32 %v2883_v16, %v1082_v55  ;;  %v1178_v42 = vmul.f32 %v2883_v16, %v1083_v62  ;;  %v1075_v15 = vadd.f32 %v1067_v53, %v1047_v13  ;;  %v1235_v38 = vmul.f32 %v1027_v52, %v2795_v45  ;;  %v905_v49 = vpop.trf.xlu1 }
 0x18e   : > { %v1130_v44 = vadd.f32 %v1122_v21, %v1101_v37  ;;  %v1251_v48 = vmul.f32 %v1055_v41, %v2797_v50  ;;  %v1274_v57 = vmul.f32 %v1082_v55, %v2802_v56  ;;  %v1275_v30 = vmul.f32 %v1083_v62, %v2802_v56  ;;  %938 = vst.msk [vmem:[#allocation2 + $0x151] sm:$0xff] %vm469_vm1, %v905_v49 }
 0x18f   : > { %v1185_v51 = vadd.f32 %v1177_v10, %v1157_v19  ;;  %v1123_v58 = vmul.f32 %v2821_v17, %v1111_v27  ;;  %v1103_v59 = vadd.f32 %v1095_v20, %v1075_v15  ;;  %v1151_v53 = vmul.f32 %v2826_v22, %v1139_v43  ;;  %v1112_v37 = vld [vmem:[#allocation2 + $0x80] sm:$0xff]  ;;  %v874_v52 = vpop.trf.xlu0 }
 0x190   : > { %v1158_v63 = vadd.f32 %v1150_v28, %v1130_v44  ;;  %v1259_v11 = vadd.f32 %v1251_v48, %v1235_v38  ;;  %v1140_v12 = vld [vmem:[#allocation2 + $0x81] sm:$0xff]  ;;  %v1282_v6 = vadd.f32 %v1274_v57, %v1258_v3  ;;  %v1236_v55 = vmul.f32 %v1111_v27, %v2795_v45  ;;  %923 = vst.msk [vmem:[#allocation2 + $0x99] sm:$0xff] %vm469_vm1, %v874_v52 }
 0x191   : > { %v2984_v41 = vmul.f32 %v2920_v8, %v1185_v51  ;;  %v1131_v14 = vadd.f32 %v1123_v58, %v1102_v26  ;;  %v1167_v62 = vld [vmem:[#allocation2 + $0x7a] sm:$0xff]  ;;  %v1252_v20 = vmul.f32 %v1139_v43, %v2797_v50  ;;  %v1299_v21 = vmul.f32 %v1111_v27, %v2812_v7  ;;  %v1168_v28 = vld [vmem:[#allocation2 + $0x82] sm:$0xff]  ;;  %v906_v29 = vpop.trf.xlu1 }
 0x192   : > { %v1186_v19 = vadd.f32 %v1178_v42, %v1158_v63  ;;  %v1283_v13 = vadd.f32 %v1275_v30, %v1259_v11  ;;  %v1323_v15 = vmul.f32 %v1139_v43, %v2816_v9  ;;  %v1124_v44 = vmul.f32 %v2821_v17, %v1112_v37  ;;  %939 = vst.msk [vmem:[#allocation2 + $0x159] sm:$0xff] %vm469_vm1, %v906_v29 }
 0x193   : > { %v1159_v10 = vadd.f32 %v1151_v53, %v1131_v14  ;;  %v1152_v3 = vmul.f32 %v2826_v22, %v1140_v12  ;;  %v1260_v42 = vadd.f32 %v1252_v20, %v1236_v55  ;;  %v1307_v38 = vadd.f32 %v1299_v21, %v1282_v6  ;;  %v875_v49 = vpop.trf.xlu0  ;;  %v3007_v53 = vld [vmem:[%s3595_s6] ss:$0 sm:$0xff]  ;;  %v1246_v20 = vld [vmem:[#allocation2 + $0x91] sm:$0xff] }
 0x194   : > { %v2995_v26 = vmul.f32 %v2920_v8, %v1186_v19  ;;  %v1179_v48 = vmul.f32 %v2883_v16, %v1167_v62  ;;  %v1132_v27 = vadd.f32 %v1124_v44, %v1103_v59  ;;  %v1180_v51 = vmul.f32 %v2883_v16, %v1168_v28  ;;  %924 = vst.msk [vmem:[#allocation2 + $0xa9] sm:$0xff] %vm469_vm1, %v875_v49  ;;  %v1230_v19 = vld [vmem:[#allocation2 + $0x90] sm:$0xff] }
 0x195   : > { %v1237_v57 = vmul.f32 %v1112_v37, %v2795_v45  ;;  %v1253_v43 = vmul.f32 %v1140_v12, %v2797_v50  ;;  %v1331_v30 = vadd.f32 %v1323_v15, %v1307_v38  ;;  %v1276_v63 = vmul.f32 %v1167_v62, %v2802_v56  ;;  %v907_v59 = vpop.trf.xlu1 }
 0x196   : > { %v1187_v58 = vadd.f32 %v1179_v48, %v1159_v10  ;;  %v1277_v11 = vmul.f32 %v1168_v28, %v2802_v56  ;;  %v1160_v52 = vadd.f32 %v1152_v3, %v1132_v27  ;;  %v1300_v14 = vmul.f32 %v1112_v37, %v2812_v7  ;;  %940 = vst.msk [vmem:[#allocation2 + $0x169] sm:$0xff] %vm469_vm1, %v907_v59 }
 0x197   : > { %v1261_v6 = vadd.f32 %v1253_v43, %v1237_v57  ;;  %v1324_v55 = vmul.f32 %v1140_v12, %v2816_v9  ;;  %v1284_v29 = vadd.f32 %v1276_v63, %v1260_v42  ;;  %v1347_v10 = vmul.f32 %v1167_v62, %v2830_v25  ;;  %v876_v44 = vpop.trf.xlu0  ;;  %v1231_v57 = vld [vmem:[#allocation2 + $0x98] sm:$0xff] }
 0x198   : > { %v3013_v21 = vmul.f32 %v2920_v8, %v1187_v58  ;;  %v1348_v15 = vmul.f32 %v1168_v28, %v2830_v25  ;;  %v1188_v38 = vadd.f32 %v1180_v51, %v1160_v52  ;;  %v1308_v48 = vadd.f32 %v1300_v14, %v1283_v13  ;;  %925 = vst.msk [vmem:[#allocation2 + $0xb1] sm:$0xff] %vm469_vm1, %v876_v44  ;;  %v1247_v62 = vld [vmem:[#allocation2 + $0x99] sm:$0xff] }
 0x199   : > { %v1285_v3 = vadd.f32 %v1277_v11, %v1261_v6  ;;  %v1209_v37 = vadd.f32 %v3007_v53, %v2932_v36  ;;  %v1355_v12 = vadd.f32 %v1347_v10, %v1331_v30  ;;  %v1238_v49 = vmul.f32 %v1230_v19, %v2795_v45  ;;  %v908_v43 = vpop.trf.xlu1  ;;  %v1270_v30 = vld [vmem:[#allocation2 + $0x92] sm:$0xff]  ;;  %v1271_v58 = vld [vmem:[#allocation2 + $0x9a] sm:$0xff] }
 0x19a   : > { %v1254_v27 = vmul.f32 %v1246_v20, %v2797_v50  ;;  %v1301_v42 = vmul.f32 %v1230_v19, %v2812_v7  ;;  %v3024_v28 = vmul.f32 %v2920_v8, %v1188_v38  ;;  %v1332_v51 = vadd.f32 %v1324_v55, %v1308_v48  ;;  %941 = vst.msk [vmem:[#allocation2 + $0x171] sm:$0xff] %vm469_vm1, %v908_v43 }
 0x19b   : > { %1217 = vst.msk [vmem:[#allocation3] sm:$0xff] %vm469_vm1, %v1209_v37  ;;  %v1325_v36 = vmul.f32 %v1246_v20, %v2816_v9  ;;  %v1372_v13 = vmul.f32 %v1230_v19, %v2821_v17  ;;  %v1396_v59 = vmul.f32 %v1246_v20, %v2826_v22  ;;  %v1210_v52 = vadd.f32 %v3007_v53, %v2943_v2  ;;  %v877_v6 = vpop.trf.xlu0 }
 0x19c   : > { %v1262_v63 = vadd.f32 %v1254_v27, %v1238_v49  ;;  %v1309_v11 = vadd.f32 %v1301_v42, %v1284_v29  ;;  %v1356_v14 = vadd.f32 %v1348_v15, %v1332_v51  ;;  %v1239_v10 = vmul.f32 %v1231_v57, %v2795_v45  ;;  %926 = vst.msk [vmem:[#allocation2 + $0xc1] sm:$0xff] %vm469_vm1, %v877_v6  ;;  %v1232_v51 = vld [vmem:[#allocation2 + $0xa8] sm:$0xff] }
 0x19d   : > { %v1380_v55 = vadd.f32 %v1372_v13, %v1355_v12  ;;  %v1255_v44 = vmul.f32 %v1247_v62, %v2797_v50  ;;  %1218 = vst.msk [vmem:[#allocation3 + $0x8] sm:$0xff] %vm469_vm1, %v1210_v52  ;;  %v1278_v38 = vmul.f32 %v1270_v30, %v2802_v56  ;;  %v1279_v29 = vmul.f32 %v1271_v58, %v2802_v56  ;;  %v909_v48 = vpop.trf.xlu1 }
 0x19e   : > { %v1333_v19 = vadd.f32 %v1325_v36, %v1309_v11  ;;  %v1302_v20 = vmul.f32 %v1231_v57, %v2812_v7  ;;  %v1326_v15 = vmul.f32 %v1247_v62, %v2816_v9  ;;  %v1349_v12 = vmul.f32 %v1270_v30, %v2830_v25  ;;  %942 = vst.msk [vmem:[#allocation2 + $0x181] sm:$0xff] %vm469_vm1, %v909_v48  ;;  %v1248_v36 = vld [vmem:[#allocation2 + $0xa9] sm:$0xff] }
 0x19f   : > { %v1404_v2 = vadd.f32 %v1396_v59, %v1380_v55  ;;  %v1263_v37 = vadd.f32 %v1255_v44, %v1239_v10  ;;  %v1286_v49 = vadd.f32 %v1278_v38, %v1262_v63  ;;  %v1350_v42 = vmul.f32 %v1271_v58, %v2830_v25  ;;  %v878_v13 = vpop.trf.xlu0 }
 0x1a0   : > { %v1310_v27 = vadd.f32 %v1302_v20, %v1285_v3  ;;  %v1373_v43 = vmul.f32 %v1231_v57, %v2821_v17  ;;  %v1357_v52 = vadd.f32 %v1349_v12, %v1333_v19  ;;  %v1397_v59 = vmul.f32 %v1247_v62, %v2826_v22  ;;  %927 = vst.msk [vmem:[#allocation2 + $0xc9] sm:$0xff] %vm469_vm1, %v878_v13 }
 0x1a1   : > { %v1287_v11 = vadd.f32 %v1279_v29, %v1263_v37  ;;  %v1420_v6 = vmul.f32 %v2883_v16, %v1270_v30  ;;  %v1421_v3 = vmul.f32 %v2883_v16, %v1271_v58  ;;  %v1211_v63 = vadd.f32 %v3007_v53, %v2961_v0  ;;  %v910_v57 = vpop.trf.xlu1  ;;  %v1233_v30 = vld [vmem:[#allocation2 + $0xb0] sm:$0xff] }
 0x1a2   : > { %v1930_v55 = vld [vmem:[#allocation3] sm:$0xff]  ;;  %v1334_v10 = vadd.f32 %v1326_v15, %v1310_v27  ;;  %v1381_v44 = vadd.f32 %v1373_v43, %v1356_v14  ;;  %v1240_v29 = vmul.f32 %v1232_v51, %v2795_v45  ;;  %v1256_v19 = vmul.f32 %v1248_v36, %v2797_v50  ;;  %943 = vst.msk [vmem:[#allocation2 + $0x189] sm:$0xff] %vm469_vm1, %v910_v57 }
 0x1a3   : > { %1962 = vxpose.xlu0.b32.start [1/16] (narrow) %v1930_v55, 64  ;;  %v1428_v38 = vadd.f32 %v1420_v6, %v1404_v2  ;;  %v1303_v62 = vmul.f32 %v1232_v51, %v2812_v7  ;;  %1219 = vst.msk [vmem:[#allocation3 + $0x10] sm:$0xff] %vm469_vm1, %v1211_v63  ;;  %v1327_v58 = vmul.f32 %v1248_v36, %v2816_v9  ;;  %v1249_v14 = vld [vmem:[#allocation2 + $0xb1] sm:$0xff] }
 0x1a4   : > { %v1358_v20 = vadd.f32 %v1350_v42, %v1334_v10  ;;  %v1405_v48 = vadd.f32 %v1397_v59, %v1381_v44  ;;  %v1374_v0 = vmul.f32 %v1232_v51, %v2821_v17  ;;  %v1272_v37 = vld [vmem:[#allocation2 + $0xaa] sm:$0xff]  ;;  %v1273_v2 = vld [vmem:[#allocation2 + $0xb2] sm:$0xff]  ;;  %v1264_v27 = vadd.f32 %v1256_v19, %v1240_v29 }
 0x1a5   : > { %v1931_v15 = vld [vmem:[#allocation3 + $0x8] sm:$0xff]  ;;  %v3059_v12 = vmul.f32 %v2920_v8, %v1428_v38  ;;  %v1311_v43 = vadd.f32 %v1303_v62, %v1286_v49  ;;  %v1398_v13 = vmul.f32 %v1248_v36, %v2826_v22  ;;  %v1212_v59 = vadd.f32 %v3007_v53, %v2971_v33 }
 0x1a6   : > { %v1429_v6 = vadd.f32 %v1421_v3, %v1405_v48  ;;  %v1382_v42 = vadd.f32 %v1374_v0, %v1357_v52  ;;  %v1241_v55 = vmul.f32 %v1233_v30, %v2795_v45  ;;  %v1257_v10 = vmul.f32 %v1249_v14, %v2797_v50 }
 0x1a7   : > { %1963 = vxpose.xlu0.b32.cont [2/16] (narrow) %v1931_v15, 64  ;;  %v1335_v51 = vadd.f32 %v1327_v58, %v1311_v43  ;;  %v1280_v44 = vmul.f32 %v1272_v37, %v2802_v56  ;;  %v1281_v63 = vmul.f32 %v1273_v2, %v2802_v56  ;;  %1220 = vst.msk [vmem:[#allocation3 + $0x18] sm:$0xff] %vm469_vm1, %v1212_v59 }
 0x1a8   : > { %v3069_v57 = vmul.f32 %v2920_v8, %v1429_v6  ;;  %v1406_v49 = vadd.f32 %v1398_v13, %v1382_v42  ;;  %v1304_v36 = vmul.f32 %v1233_v30, %v2812_v7  ;;  %v1328_v33 = vmul.f32 %v1249_v14, %v2816_v9 }
 0x1a9   : > { %v1265_v52 = vadd.f32 %v1257_v10, %v1241_v55  ;;  %v1288_v3 = vadd.f32 %v1280_v44, %v1264_v27  ;;  %v1351_v38 = vmul.f32 %v1272_v37, %v2830_v25  ;;  %v1352_v29 = vmul.f32 %v1273_v2, %v2830_v25 }
 0x1aa   : > { %v1312_v19 = vadd.f32 %v1304_v36, %v1287_v11  ;;  %v1375_v62 = vmul.f32 %v1233_v30, %v2821_v17  ;;  %v1399_v48 = vmul.f32 %v1249_v14, %v2826_v22  ;;  %v1422_v58 = vmul.f32 %v2883_v16, %v1272_v37  ;;  %v1932_v0 = vld [vmem:[#allocation3 + $0x10] sm:$0xff] }
 0x1ab   : > { %v3079_v15 = vadd.f32 %v1281_v63, %v1265_v52  ;;  %v1359_v43 = vadd.f32 %v1351_v38, %v1335_v51  ;;  %v1423_v13 = vmul.f32 %v2883_v16, %v1273_v2  ;;  %v1213_v27 = vadd.f32 %v3007_v53, %v2984_v41  ;;  %1964 = vxpose.xlu0.b32.cont [3/16] (narrow) %v1932_v0, 64  ;;  %v1297_v30 = vld [vmem:[#allocation2 + $0xc0] sm:$0xff]  ;;  %v1465_v52 = vld [vmem:[#allocation2 + $0xf0] sm:$0xff] }
 0x1ac   : > { %v1336_v6 = vadd.f32 %v1328_v33, %v1312_v19  ;;  %v1383_v42 = vadd.f32 %v1375_v62, %v1358_v20  ;;  %v1430_v59 = vadd.f32 %v1422_v58, %v1406_v49  ;;  %v1496_v11 = vadd.f32 %v2902_v35, %v2898_v34  ;;  %v1321_v20 = vld [vmem:[#allocation2 + $0xc1] sm:$0xff]  ;;  %v1481_v38 = vld [vmem:[#allocation2 + $0xf1] sm:$0xff] }
 0x1ad   : > { %1221 = vst.msk [vmem:[#allocation3 + $0x20] sm:$0xff] %vm469_vm1, %v1213_v27  ;;  %v1511_v14 = vmul.f32 %v2871_v1, %v2802_v56  ;;  %v1512_v37 = vmul.f32 %v2885_v18, %v2802_v56  ;;  %v3093_v2 = vmul.f32 %v2855_v54, %v2812_v7  ;;  %v3097_v41 = vmul.f32 %v2860_v61, %v2816_v9  ;;  %v1322_v27 = vld [vmem:[#allocation2 + $0xc9] sm:$0xff] }
 0x1ae   : > { %v1360_v55 = vadd.f32 %v1352_v29, %v1336_v6  ;;  %v1407_v34 = vadd.f32 %v1399_v48, %v1383_v42  ;;  %v3100_v35 = vmul.f32 %v2920_v8, %v1430_v59  ;;  %v3104_v51 = vmul.f32 %v2871_v1, %v2830_v25  ;;  %v1933_v10 = vld [vmem:[#allocation3 + $0x18] sm:$0xff] }
 0x1af   : > { %v1519_v44 = vadd.f32 %v1511_v14, %v2858_v60  ;;  %v3107_v63 = vadd.f32 %v1512_v37, %v1496_v11  ;;  %v3111_v54 = vmul.f32 %v2885_v18, %v2830_v25  ;;  %v1305_v61 = vmul.f32 %v1297_v30, %v2812_v7  ;;  %1965 = vxpose.xlu0.b32.cont [4/16] (narrow) %v1933_v10, 64  ;;  %v1345_v6 = vld [vmem:[#allocation2 + $0xc2] sm:$0xff] }
 0x1b0   : > { %v1431_v49 = vadd.f32 %v1423_v13, %v1407_v34  ;;  %v1329_v36 = vmul.f32 %v1321_v20, %v2816_v9  ;;  %v1376_v33 = vmul.f32 %v1297_v30, %v2821_v17  ;;  %v1400_v1 = vmul.f32 %v1321_v20, %v2826_v22  ;;  %v1298_v13 = vld [vmem:[#allocation2 + $0xc8] sm:$0xff] }
 0x1b1   : > { %v1313_v29 = vadd.f32 %v1305_v61, %v1288_v3  ;;  %v1469_v60 = vmul.f32 %v1297_v30, %v2795_v45  ;;  %v1485_v19 = vmul.f32 %v1321_v20, %v2797_v50  ;;  %v1214_v18 = vadd.f32 %v3007_v53, %v2995_v26  ;;  %v1346_v26 = vld [vmem:[#allocation2 + $0xca] sm:$0xff] }
 0x1b2   : > { %v3122_v62 = vmul.f32 %v2920_v8, %v1431_v49  ;;  %v1384_v48 = vadd.f32 %v1376_v33, %v1359_v43  ;;  %v1473_v58 = vmul.f32 %v1465_v52, %v2795_v45  ;;  %v1489_v0 = vmul.f32 %v1481_v38, %v2797_v50 }
 0x1b3   : > { %v1337_v42 = vadd.f32 %v1329_v36, %v1313_v29  ;;  %v1493_v3 = vadd.f32 %v1485_v19, %v1469_v60  ;;  %1222 = vst.msk [vmem:[#allocation3 + $0x28] sm:$0xff] %vm469_vm1, %v1214_v18  ;;  %v1536_v59 = vmul.f32 %v1465_v52, %v2812_v7  ;;  %v1560_v11 = vmul.f32 %v1481_v38, %v2816_v9 }
 0x1b4   : > { %v1934_v30 = vld [vmem:[#allocation3 + $0x20] sm:$0xff]  ;;  %v1408_v14 = vadd.f32 %v1400_v1, %v1384_v48  ;;  %v1497_v37 = vadd.f32 %v1489_v0, %v1473_v58  ;;  %v3130_v43 = vmul.f32 %v1465_v52, %v2821_v17  ;;  %v3133_v20 = vmul.f32 %v1481_v38, %v2826_v22 }
 0x1b5   : > { %1966 = vxpose.xlu0.b32.cont [5/16] (narrow) %v1934_v30, 64  ;;  %v1544_v34 = vadd.f32 %v1536_v59, %v1519_v44  ;;  %v1306_v10 = vmul.f32 %v1298_v13, %v2812_v7  ;;  %v1330_v61 = vmul.f32 %v1322_v27, %v2816_v9  ;;  %v1353_v49 = vmul.f32 %v1345_v6, %v2830_v25 }
 0x1b6   : > { %v1354_v36 = vmul.f32 %v1346_v26, %v2830_v25  ;;  %v1377_v33 = vmul.f32 %v1298_v13, %v2821_v17  ;;  %v1401_v1 = vmul.f32 %v1322_v27, %v2826_v22  ;;  %v1424_v52 = vmul.f32 %v2883_v16, %v1345_v6 }
 0x1b7   : > { %v1568_v29 = vadd.f32 %v1560_v11, %v1544_v34  ;;  %v1314_v38 = vadd.f32 %v1306_v10, %v3079_v15  ;;  %v1361_v60 = vadd.f32 %v1353_v49, %v1337_v42  ;;  %v1425_v44 = vmul.f32 %v2883_v16, %v1346_v26  ;;  %v1482_v34 = vld [vmem:[#allocation2 + $0xf9] sm:$0xff] }
 0x1b8   : > { %v1385_v19 = vadd.f32 %v1377_v33, %v1360_v55  ;;  %v1432_v18 = vadd.f32 %v1424_v52, %v1408_v14  ;;  %v1470_v48 = vmul.f32 %v1298_v13, %v2795_v45  ;;  %v1486_v58 = vmul.f32 %v1322_v27, %v2797_v50  ;;  %v1466_v14 = vld [vmem:[#allocation2 + $0xf8] sm:$0xff] }
 0x1b9   : > { %v1338_v0 = vadd.f32 %v1330_v61, %v1314_v38  ;;  %v1386_v59 = vadd.f32 %v2833_v31, %v1361_v60  ;;  %v1509_v30 = vmul.f32 %v1345_v6, %v2802_v56  ;;  %v1510_v47 = vmul.f32 %v1346_v26, %v2802_v56  ;;  %v1505_v26 = vld [vmem:[#allocation2 + $0xf2] sm:$0xff]  ;;  %v1506_v33 = vld [vmem:[#allocation2 + $0xfa] sm:$0xff] }
 0x1ba   : > { %v1935_v46 = vld [vmem:[#allocation3 + $0x28] sm:$0xff]  ;;  %v1409_v11 = vadd.f32 %v1401_v1, %v1385_v19  ;;  %v3150_v15 = vmul.f32 %v2920_v8, %v1432_v18  ;;  %v1494_v42 = vadd.f32 %v1486_v58, %v1470_v48  ;;  %v1215_v55 = vadd.f32 %v3007_v53, %v3013_v21 }
 0x1bb   : > { %1967 = vxpose.xlu0.b32.cont [6/16] (narrow) %v1935_v46, 64  ;;  %v1362_v13 = vadd.f32 %v1354_v36, %v1338_v0  ;;  %v3155_v27 = vadd.f32 %v2836_v32, %v1386_v59  ;;  %v1517_v31 = vadd.f32 %v1509_v30, %v1493_v3  ;;  %v1474_v6 = vmul.f32 %v1466_v14, %v2795_v45 }
 0x1bc   : > { %v1433_v10 = vadd.f32 %v1425_v44, %v1409_v11  ;;  %v1518_v61 = vadd.f32 %v1510_v47, %v1494_v42  ;;  %1223 = vst.msk [vmem:[#allocation3 + $0x30] sm:$0xff] %vm469_vm1, %v1215_v55  ;;  %v1490_v49 = vmul.f32 %v1482_v34, %v2797_v50  ;;  %v1513_v21 = vmul.f32 %v1505_v26, %v2802_v56  ;;  %v1483_v11 = vld [vmem:[#allocation2 + $0x109] sm:$0xff] }
 0x1bd   : > { %v1387_v46 = vadd.f32 %v2865_v4, %v1362_v13  ;;  %v1542_v36 = vadd.f32 %v2842_v39, %v1517_v31  ;;  %v1514_v32 = vmul.f32 %v1506_v33, %v2802_v56  ;;  %v1537_v3 = vmul.f32 %v1466_v14, %v2812_v7 }
 0x1be   : > { %v3166_v1 = vmul.f32 %v2920_v8, %v1433_v10  ;;  %v1543_v47 = vadd.f32 %v3093_v2, %v1518_v61  ;;  %v1498_v52 = vadd.f32 %v1490_v49, %v1474_v6  ;;  %v1521_v38 = vadd.f32 %v1513_v21, %v1497_v37  ;;  %v1468_v10 = vld [vmem:[#allocation2 + $0x110] sm:$0xff] }
 0x1bf   : > { %v3170_v60 = vadd.f32 %v2869_v5, %v1387_v46  ;;  %v1566_v44 = vadd.f32 %v2845_v40, %v1542_v36  ;;  %v1545_v4 = vadd.f32 %v1537_v3, %v3107_v63  ;;  %v1561_v39 = vmul.f32 %v1482_v34, %v2816_v9  ;;  %v1484_v46 = vld [vmem:[#allocation2 + $0x111] sm:$0xff] }
 0x1c0   : > { %v1567_v19 = vadd.f32 %v3097_v41, %v1543_v47  ;;  %v1522_v18 = vadd.f32 %v1514_v32, %v1498_v52  ;;  %v1584_v48 = vmul.f32 %v1505_v26, %v2830_v25  ;;  %v1585_v58 = vmul.f32 %v1506_v33, %v2830_v25  ;;  %v1467_v41 = vld [vmem:[#allocation2 + $0x108] sm:$0xff]  ;;  %v1508_v47 = vld [vmem:[#allocation2 + $0x112] sm:$0xff] }
 0x1c1   : > { %v1590_v2 = vadd.f32 %v3104_v51, %v1566_v44  ;;  %v1569_v0 = vadd.f32 %v1561_v39, %v1545_v4  ;;  %v1608_v37 = vmul.f32 %v1466_v14, %v2821_v17  ;;  %v1632_v5 = vmul.f32 %v1482_v34, %v2826_v22  ;;  %v1507_v36 = vld [vmem:[#allocation2 + $0x10a] sm:$0xff] }
 0x1c2   : > { %v1591_v40 = vadd.f32 %v3111_v54, %v1567_v19  ;;  %v1592_v59 = vadd.f32 %v1584_v48, %v1568_v29  ;;  %v1655_v63 = vmul.f32 %v2883_v16, %v1505_v26  ;;  %v1656_v30 = vmul.f32 %v2883_v16, %v1506_v33 }
 0x1c3   : > { %v1936_v42 = vld [vmem:[#allocation3 + $0x30] sm:$0xff]  ;;  %v1615_v55 = vadd.f32 %v3130_v43, %v1590_v2  ;;  %v1593_v13 = vadd.f32 %v1585_v58, %v1569_v0  ;;  %v1216_v51 = vadd.f32 %v3007_v53, %v3024_v28  ;;  %v1475_v14 = vmul.f32 %v1467_v41, %v2795_v45 }
 0x1c4   : > { %1968 = vxpose.xlu0.b32.cont [7/16] (narrow) %v1936_v42, 64  ;;  %v1616_v31 = vadd.f32 %v1608_v37, %v1591_v40  ;;  %v1491_v54 = vmul.f32 %v1483_v11, %v2797_v50  ;;  %v1538_v29 = vmul.f32 %v1467_v41, %v2812_v7  ;;  %v1562_v6 = vmul.f32 %v1483_v11, %v2816_v9 }
 0x1c5   : > { %v1639_v34 = vadd.f32 %v3133_v20, %v1615_v55  ;;  %1224 = vst.msk [vmem:[#allocation3 + $0x38] sm:$0xff] %vm469_vm1, %v1216_v51  ;;  %v1609_v43 = vmul.f32 %v1467_v41, %v2821_v17  ;;  %v1633_v26 = vmul.f32 %v1483_v11, %v2826_v22  ;;  %v1444_v28 = vadd.f32 %v3007_v53, %v3059_v12  ;;  %v1532_v41 = vld [vmem:[#allocation2 + $0x120] sm:$0xff] }
 0x1c6   : > { %v1640_v61 = vadd.f32 %v1632_v5, %v1616_v31  ;;  %v1499_v49 = vadd.f32 %v1491_v54, %v1475_v14  ;;  %v1546_v33 = vadd.f32 %v1538_v29, %v1521_v38  ;;  %v1476_v21 = vmul.f32 %v1468_v10, %v2795_v45  ;;  %v1556_v11 = vld [vmem:[#allocation2 + $0x121] sm:$0xff] }
 0x1c7   : > { %v1663_v32 = vadd.f32 %v1655_v63, %v1639_v34  ;;  %v1617_v3 = vadd.f32 %v1609_v43, %v1592_v59  ;;  %1452 = vst.msk [vmem:[#allocation3 + $0x40] sm:$0xff] %vm469_vm1, %v1444_v28  ;;  %v1492_v20 = vmul.f32 %v1484_v46, %v2797_v50  ;;  %v1515_v52 = vmul.f32 %v1507_v36, %v2802_v56 }
 0x1c8   : > { %v1664_v44 = vadd.f32 %v1656_v30, %v1640_v61  ;;  %v1570_v4 = vadd.f32 %v1562_v6, %v1546_v33  ;;  %v1516_v12 = vmul.f32 %v1508_v47, %v2802_v56  ;;  %v1539_v39 = vmul.f32 %v1468_v10, %v2812_v7 }
 0x1c9   : > { %v3204_v38 = vmul.f32 %v2920_v8, %v1663_v32  ;;  %v1641_v19 = vadd.f32 %v1633_v26, %v1617_v3  ;;  %v1500_v48 = vadd.f32 %v1492_v20, %v1476_v21  ;;  %v1523_v58 = vadd.f32 %v1515_v52, %v1499_v49  ;;  %v1557_v3 = vld [vmem:[#allocation2 + $0x129] sm:$0xff] }
 0x1ca   : > { %v3207_v2 = vmul.f32 %v2920_v8, %v1664_v44  ;;  %v1547_v0 = vadd.f32 %v1539_v39, %v1522_v18  ;;  %v1563_v37 = vmul.f32 %v1484_v46, %v2816_v9  ;;  %v1586_v5 = vmul.f32 %v1507_v36, %v2830_v25  ;;  %v1580_v20 = vld [vmem:[#allocation2 + $0x122] sm:$0xff] }
 0x1cb   : > { %v1524_v40 = vadd.f32 %v1516_v12, %v1500_v48  ;;  %v1587_v59 = vmul.f32 %v1508_v47, %v2830_v25  ;;  %v1610_v63 = vmul.f32 %v1468_v10, %v2821_v17  ;;  %v1634_v30 = vmul.f32 %v1484_v46, %v2826_v22  ;;  %v1581_v12 = vld [vmem:[#allocation2 + $0x12a] sm:$0xff] }
 0x1cc   : > { %v1937_v42 = vld [vmem:[#allocation3 + $0x38] sm:$0xff]  ;;  %v1571_v55 = vadd.f32 %v1563_v37, %v1547_v0  ;;  %v1594_v51 = vadd.f32 %v1586_v5, %v1570_v4  ;;  %v1657_v14 = vmul.f32 %v2883_v16, %v1507_v36  ;;  %v1658_v18 = vmul.f32 %v2883_v16, %v1508_v47 }
 0x1cd   : > { %1969 = vxpose.xlu0.b32.cont [8/16] (narrow) %v1937_v42, 64  ;;  %v1618_v31 = vadd.f32 %v1610_v63, %v1593_v13  ;;  %v1445_v54 = vadd.f32 %v3007_v53, %v3069_v57  ;;  %v1540_v29 = vmul.f32 %v1532_v41, %v2812_v7  ;;  %v1564_v6 = vmul.f32 %v1556_v11, %v2816_v9  ;;  %v1533_v57 = vld [vmem:[#allocation2 + $0x128] sm:$0xff] }
 0x1ce   : > { %v1938_v34 = vld [vmem:[#allocation3 + $0x40] sm:$0xff]  ;;  %v1595_v43 = vadd.f32 %v1587_v59, %v1571_v55  ;;  %v1665_v26 = vadd.f32 %v1657_v14, %v1641_v19  ;;  %v1611_v28 = vmul.f32 %v1532_v41, %v2821_v17  ;;  %v1635_v10 = vmul.f32 %v1556_v11, %v2826_v22  ;;  %v1605_v59 = vld [vmem:[#allocation2 + $0x138] sm:$0xff] }
 0x1cf   : > { %v1642_v61 = vadd.f32 %v1634_v30, %v1618_v31  ;;  %1453 = vst.msk [vmem:[#allocation3 + $0x48] sm:$0xff] %vm469_vm1, %v1445_v54  ;;  %v1548_v49 = vadd.f32 %v1540_v29, %v1523_v58  ;;  %v1704_v13 = vmul.f32 %v1532_v41, %v2795_v45  ;;  %v1720_v33 = vmul.f32 %v1556_v11, %v2797_v50 }
 0x1d0   : > { %v3226_v21 = vmul.f32 %v2920_v8, %v1665_v26  ;;  %v1619_v46 = vadd.f32 %v1611_v28, %v1594_v51  ;;  %v1446_v36 = vadd.f32 %v3007_v53, %v3100_v35  ;;  %v1541_v32 = vmul.f32 %v1533_v57, %v2812_v7 }
 0x1d1   : > { %1970 = vxpose.xlu0.b32.cont [9/16] (narrow) %v1938_v34, 64  ;;  %v1666_v47 = vadd.f32 %v1658_v18, %v1642_v61  ;;  %v1572_v52 = vadd.f32 %v1564_v6, %v1548_v49  ;;  %v1728_v44 = vadd.f32 %v1720_v33, %v1704_v13  ;;  %v1565_v4 = vmul.f32 %v1557_v3, %v2816_v9  ;;  %v1629_v18 = vld [vmem:[#allocation2 + $0x139] sm:$0xff] }
 0x1d2   : > { %v1643_v39 = vadd.f32 %v1635_v10, %v1619_v46  ;;  %1454 = vst.msk [vmem:[#allocation3 + $0x50] sm:$0xff] %vm469_vm1, %v1446_v36  ;;  %v1549_v19 = vadd.f32 %v1541_v32, %v1524_v40  ;;  %v1588_v48 = vmul.f32 %v1580_v20, %v2830_v25  ;;  %v1589_v58 = vmul.f32 %v1581_v12, %v2830_v25  ;;  %v3244_v40 = vld [vmem:[%s3593_s4 + $0x8] ss:$0 sm:$0xff]  ;;  %v1606_v10 = vld [vmem:[#allocation2 + $0x140] sm:$0xff] }
 0x1d3   : > { %v3236_v35 = vmul.f32 %v2920_v8, %v1666_v47  ;;  %v1612_v0 = vmul.f32 %v1533_v57, %v2821_v17  ;;  %v1636_v37 = vmul.f32 %v1557_v3, %v2826_v22  ;;  %v1659_v5 = vmul.f32 %v2883_v16, %v1580_v20  ;;  %v1654_v47 = vld [vmem:[#allocation2 + $0x142] sm:$0xff] }
 0x1d4   : > { %v1573_v63 = vadd.f32 %v1565_v4, %v1549_v19  ;;  %v1596_v30 = vadd.f32 %v1588_v48, %v1572_v52  ;;  %v1660_v41 = vmul.f32 %v3244_v40, %v1581_v12  ;;  %v1705_v11 = vmul.f32 %v1533_v57, %v2795_v45  ;;  %v1653_v57 = vld [vmem:[#allocation2 + $0x13a] sm:$0xff] }
 0x1d5   : > { %v1620_v42 = vadd.f32 %v1612_v0, %v1595_v43  ;;  %v1667_v55 = vadd.f32 %v1659_v5, %v1643_v39  ;;  %v1721_v51 = vmul.f32 %v1557_v3, %v2797_v50  ;;  %v1744_v14 = vmul.f32 %v1580_v20, %v2802_v56 }
 0x1d6   : > { %v1939_v16 = vld [vmem:[#allocation3 + $0x48] sm:$0xff]  ;;  %v1597_v31 = vadd.f32 %v1589_v58, %v1573_v63  ;;  %v1745_v54 = vmul.f32 %v1581_v12, %v2802_v56  ;;  %v1447_v29 = vadd.f32 %v3007_v53, %v3122_v62  ;;  %v1613_v6 = vmul.f32 %v1605_v59, %v2821_v17  ;;  %v1630_v62 = vld [vmem:[#allocation2 + $0x141] sm:$0xff] }
 0x1d7   : > { %1971 = vxpose.xlu0.b32.cont [10/16] (narrow) %v1939_v16, 64  ;;  %v1644_v34 = vadd.f32 %v1636_v37, %v1620_v42  ;;  %v3255_v26 = vmul.f32 %v2920_v8, %v1667_v55  ;;  %v1729_v43 = vadd.f32 %v1721_v51, %v1705_v11  ;;  %v1752_v28 = vadd.f32 %v1744_v14, %v1728_v44  ;;  %v3282_v14 = vld [vmem:[%s3594_s5] ss:$0 sm:$0xff] }
 0x1d8   : > { %1455 = vst.msk [vmem:[#allocation3 + $0x58] sm:$0xff] %vm469_vm1, %v1447_v29  ;;  %v1621_v61 = vadd.f32 %v1613_v6, %v1596_v30  ;;  %v1637_v49 = vmul.f32 %v1629_v18, %v2826_v22  ;;  %v1706_v13 = vmul.f32 %v1605_v59, %v2795_v45  ;;  %v1722_v33 = vmul.f32 %v1629_v18, %v2797_v50  ;;  %v1700_v29 = vld [vmem:[#allocation2 + $0x150] sm:$0xff] }
 0x1d9   : > { %v1940_v46 = vld [vmem:[#allocation3 + $0x50] sm:$0xff]  ;;  %v1668_v36 = vadd.f32 %v1660_v41, %v1644_v34  ;;  %v1753_v32 = vadd.f32 %v1745_v54, %v1729_v43  ;;  %v1769_v3 = vmul.f32 %v1605_v59, %v2812_v7  ;;  %v1793_v20 = vmul.f32 %v1629_v18, %v2816_v9 }
 0x1da   : > { %v1645_v52 = vadd.f32 %v1637_v49, %v1621_v61  ;;  %v1730_v44 = vadd.f32 %v1722_v33, %v1706_v13  ;;  %v1448_v4 = vadd.f32 %v3007_v53, %v3150_v15  ;;  %v1614_v12 = vmul.f32 %v1606_v10, %v2821_v17 }
 0x1db   : > { %1972 = vxpose.xlu0.b32.cont [11/16] (narrow) %v1940_v46, 64  ;;  %v3267_v39 = vmul.f32 %v2920_v8, %v1668_v36  ;;  %v1777_v19 = vadd.f32 %v1769_v3, %v1752_v28  ;;  %v1638_v48 = vmul.f32 %v1630_v62, %v2826_v22  ;;  %v1661_v58 = vmul.f32 %v3244_v40, %v1653_v57 }
 0x1dc   : > { %1456 = vst.msk [vmem:[#allocation3 + $0x60] sm:$0xff] %vm469_vm1, %v1448_v4  ;;  %v1622_v0 = vadd.f32 %v1614_v12, %v1597_v31  ;;  %v1662_v37 = vmul.f32 %v3244_v40, %v1654_v47  ;;  %v1707_v5 = vmul.f32 %v1606_v10, %v2795_v45  ;;  %v1723_v15 = vmul.f32 %v1630_v62, %v2797_v50 }
 0x1dd   : > { %v1801_v59 = vadd.f32 %v1793_v20, %v1777_v19  ;;  %v1669_v63 = vadd.f32 %v1661_v58, %v1645_v52  ;;  %v1746_v30 = vmul.f32 %v1653_v57, %v2802_v56  ;;  %v1747_v8 = vmul.f32 %v1654_v47, %v2802_v56  ;;  %v1701_v52 = vld [vmem:[#allocation2 + $0x158] sm:$0xff] }
 0x1de   : > { %v1646_v41 = vadd.f32 %v1638_v48, %v1622_v0  ;;  %v1731_v11 = vadd.f32 %v1723_v15, %v1707_v5  ;;  %v1770_v42 = vmul.f32 %v1606_v10, %v2812_v7  ;;  %v1794_v55 = vmul.f32 %v1630_v62, %v2816_v9  ;;  %v1716_v10 = vld [vmem:[#allocation2 + $0x151] sm:$0xff]  ;;  %v1741_v0 = vld [vmem:[#allocation2 + $0x15a] sm:$0xff] }
 0x1df   : > { %v1941_v51 = vld [vmem:[#allocation3 + $0x58] sm:$0xff]  ;;  %v3285_v18 = vmul.f32 %v3282_v14, %v1669_v63  ;;  %v1754_v16 = vadd.f32 %v1746_v30, %v1730_v44  ;;  %v1817_v31 = vmul.f32 %v1653_v57, %v2830_v25  ;;  %v1818_v54 = vmul.f32 %v1654_v47, %v2830_v25  ;;  %v1717_v44 = vld [vmem:[#allocation2 + $0x159] sm:$0xff] }
 0x1e0   : > { %1973 = vxpose.xlu0.b32.cont [12/16] (narrow) %v1941_v51, 64  ;;  %v1670_v6 = vadd.f32 %v1662_v37, %v1646_v41  ;;  %v1755_v34 = vadd.f32 %v1747_v8, %v1731_v11  ;;  %v1778_v43 = vadd.f32 %v1770_v42, %v1753_v32  ;;  %v1449_v28 = vadd.f32 %v3007_v53, %v3166_v1  ;;  %v1740_v58 = vld [vmem:[#allocation2 + $0x152] sm:$0xff] }
 0x1e1   : > { %v1825_v61 = vadd.f32 %v1817_v31, %v1801_v59  ;;  %v1708_v49 = vmul.f32 %v1700_v29, %v2795_v45  ;;  %v1724_v13 = vmul.f32 %v1716_v10, %v2797_v50  ;;  %v1771_v33 = vmul.f32 %v1700_v29, %v2812_v7 }
 0x1e2   : > { %v3295_v62 = vmul.f32 %v3282_v14, %v1670_v6  ;;  %v1802_v57 = vadd.f32 %v1794_v55, %v1778_v43  ;;  %1457 = vst.msk [vmem:[#allocation3 + $0x68] sm:$0xff] %vm469_vm1, %v1449_v28  ;;  %v1795_v46 = vmul.f32 %v1716_v10, %v2816_v9  ;;  %v1842_v36 = vmul.f32 %v1700_v29, %v2821_v17 }
 0x1e3   : > { %v1942_v32 = vld [vmem:[#allocation3 + $0x60] sm:$0xff]  ;;  %v1732_v1 = vadd.f32 %v1724_v13, %v1708_v49  ;;  %v1779_v3 = vadd.f32 %v1771_v33, %v1754_v16  ;;  %v1866_v20 = vmul.f32 %v1716_v10, %v2826_v22  ;;  %v1434_v47 = vadd.f32 %v2889_v23, %v3155_v27  ;;  %v1702_v10 = vld [vmem:[#allocation2 + $0x168] sm:$0xff] }
 0x1e4   : > { %1974 = vxpose.xlu0.b32.cont [13/16] (narrow) %v1942_v32, 64  ;;  %v1826_v4 = vadd.f32 %v1818_v54, %v1802_v57  ;;  %v1850_v12 = vadd.f32 %v1842_v36, %v1825_v61  ;;  %v1709_v19 = vmul.f32 %v1701_v52, %v2795_v45  ;;  %v1725_v48 = vmul.f32 %v1717_v44, %v2797_v50  ;;  %v1718_v33 = vld [vmem:[#allocation2 + $0x169] sm:$0xff] }
 0x1e5   : > { %v1803_v37 = vadd.f32 %v1795_v46, %v1779_v3  ;;  %v1442_v5 = vmul.f32 %v3282_v14, %v1434_v47  ;;  %v1748_v15 = vmul.f32 %v1740_v58, %v2802_v56  ;;  %v1749_v59 = vmul.f32 %v1741_v0, %v2802_v56 }
 0x1e6   : > { %v1874_v63 = vadd.f32 %v1866_v20, %v1850_v12  ;;  %v1733_v23 = vadd.f32 %v1725_v48, %v1709_v19  ;;  %v1772_v27 = vmul.f32 %v1701_v52, %v2812_v7  ;;  %v1796_v30 = vmul.f32 %v1717_v44, %v2816_v9  ;;  %v1703_v48 = vld [vmem:[#allocation2 + $0x170] sm:$0xff] }
 0x1e7   : > { %v1450_v8 = vadd.f32 %v3007_v53, %v1442_v5  ;;  %v1756_v41 = vadd.f32 %v1748_v15, %v1732_v1  ;;  %v1819_v11 = vmul.f32 %v1740_v58, %v2830_v25  ;;  %v1820_v42 = vmul.f32 %v1741_v0, %v2830_v25 }
 0x1e8   : > { %v1757_v55 = vadd.f32 %v1749_v59, %v1733_v23  ;;  %v1780_v51 = vadd.f32 %v1772_v27, %v1755_v34  ;;  %v1843_v16 = vmul.f32 %v1701_v52, %v2821_v17  ;;  %v1867_v31 = vmul.f32 %v1717_v44, %v2826_v22  ;;  %v1743_v59 = vld [vmem:[#allocation2 + $0x172] sm:$0xff] }
 0x1e9   : > { %v1943_v54 = vld [vmem:[#allocation3 + $0x68] sm:$0xff]  ;;  %1458 = vst.msk [vmem:[#allocation3 + $0x70] sm:$0xff] %vm469_vm1, %v1450_v8  ;;  %v1827_v29 = vadd.f32 %v1819_v11, %v1803_v37  ;;  %v1890_v6 = vmul.f32 %v3244_v40, %v1740_v58  ;;  %v1891_v43 = vmul.f32 %v3244_v40, %v1741_v0  ;;  %v1435_v28 = vadd.f32 %v2893_v24, %v3170_v60  ;;  %v1742_v0 = vld [vmem:[#allocation2 + $0x16a] sm:$0xff] }
 0x1ea   : > { %1975 = vxpose.xlu0.b32.cont [14/16] (narrow) %v1943_v54, 64  ;;  %v1804_v61 = vadd.f32 %v1796_v30, %v1780_v51  ;;  %v1851_v49 = vadd.f32 %v1843_v16, %v1826_v4  ;;  %v1679_v34 = vadd.f32 %v3007_v53, %v3204_v38  ;;  %v1710_v13 = vmul.f32 %v1702_v10, %v2795_v45  ;;  %v1719_v58 = vld [vmem:[#allocation2 + $0x171] sm:$0xff]  ;;  %v1767_v54 = vld [vmem:[#allocation2 + $0x180] sm:$0xff] }
 0x1eb   : > { %v1898_v57 = vadd.f32 %v1890_v6, %v1874_v63  ;;  %v1443_v46 = vmul.f32 %v3282_v14, %v1435_v28  ;;  %v1726_v36 = vmul.f32 %v1718_v33, %v2797_v50  ;;  %v1773_v32 = vmul.f32 %v1702_v10, %v2812_v7 }
 0x1ec   : > { %v1828_v1 = vadd.f32 %v1820_v42, %v1804_v61  ;;  %v1875_v3 = vadd.f32 %v1867_v31, %v1851_v49  ;;  %1687 = vst.msk [vmem:[#allocation3 + $0x80] sm:$0xff] %vm469_vm1, %v1679_v34  ;;  %v1797_v24 = vmul.f32 %v1718_v33, %v2816_v9  ;;  %v1844_v60 = vmul.f32 %v1702_v10, %v2821_v17 }
 0x1ed   : > { %v3330_v38 = vmul.f32 %v3282_v14, %v1898_v57  ;;  %v1451_v20 = vadd.f32 %v3007_v53, %v1443_v46  ;;  %v1734_v47 = vadd.f32 %v1726_v36, %v1710_v13  ;;  %v1781_v52 = vadd.f32 %v1773_v32, %v1756_v41  ;;  %v1840_v13 = vld [vmem:[#allocation2 + $0x198] sm:$0xff] }
 0x1ee   : > { %v1899_v44 = vadd.f32 %v1891_v43, %v1875_v3  ;;  %v1852_v4 = vadd.f32 %v1844_v60, %v1827_v29  ;;  %v1868_v12 = vmul.f32 %v1718_v33, %v2826_v22  ;;  %v1680_v19 = vadd.f32 %v3007_v53, %v3207_v2  ;;  %v1791_v29 = vld [vmem:[#allocation2 + $0x181] sm:$0xff]  ;;  %v1864_v3 = vld [vmem:[#allocation2 + $0x199] sm:$0xff] }
 0x1ef   : > { %1459 = vst.msk [vmem:[#allocation3 + $0x78] sm:$0xff] %vm469_vm1, %v1451_v20  ;;  %v1805_v37 = vadd.f32 %v1797_v24, %v1781_v52  ;;  %v1711_v5 = vmul.f32 %v1703_v48, %v2795_v45  ;;  %v1727_v15 = vmul.f32 %v1719_v58, %v2797_v50  ;;  %v1750_v63 = vmul.f32 %v1742_v0, %v2802_v56  ;;  %v1841_v33 = vld [vmem:[#allocation2 + $0x1a0] sm:$0xff] }
 0x1f0   : > { %v1944_v23 = vld [vmem:[#allocation3 + $0x70] sm:$0xff]  ;;  %v3341_v27 = vmul.f32 %v3282_v14, %v1899_v44  ;;  %v1876_v30 = vadd.f32 %v1868_v12, %v1852_v4  ;;  %1688 = vst.msk [vmem:[#allocation3 + $0x88] sm:$0xff] %vm469_vm1, %v1680_v19  ;;  %v1751_v2 = vmul.f32 %v1743_v59, %v2802_v56  ;;  %v1774_v8 = vmul.f32 %v1703_v48, %v2812_v7 }
 0x1f1   : > { %1976 = vxpose.xlu0.b32.cont [15/16] (narrow) %v1944_v23, 64  ;;  %v1735_v41 = vadd.f32 %v1727_v15, %v1711_v5  ;;  %v1758_v11 = vadd.f32 %v1750_v63, %v1734_v47  ;;  %v1798_v45 = vmul.f32 %v1719_v58, %v2816_v9  ;;  %v1821_v50 = vmul.f32 %v1742_v0, %v2830_v25  ;;  %v1865_v24 = vld [vmem:[#allocation2 + $0x1a1] sm:$0xff]  ;;  %v1816_v15 = vld [vmem:[#allocation2 + $0x18a] sm:$0xff] }
 0x1f2   : > { %v1782_v42 = vadd.f32 %v1774_v8, %v1757_v55  ;;  %v1822_v51 = vmul.f32 %v1743_v59, %v2830_v25  ;;  %v1845_v16 = vmul.f32 %v1703_v48, %v2821_v17  ;;  %v1869_v31 = vmul.f32 %v1719_v58, %v2826_v22  ;;  %v1768_v48 = vld [vmem:[#allocation2 + $0x188] sm:$0xff] }
 0x1f3   : > { %v1946_v6 = vld [vmem:[#allocation3 + $0x80] sm:$0xff]  ;;  %v1759_v56 = vadd.f32 %v1751_v2, %v1735_v41  ;;  %v1829_v43 = vadd.f32 %v1821_v50, %v1805_v37  ;;  %v1892_v28 = vmul.f32 %v3244_v40, %v1742_v0  ;;  %v1893_v10 = vmul.f32 %v3244_v40, %v1743_v59 }
 0x1f4   : > { %1994 = vxpose.xlu1.b32.start [1/16] (narrow) %v1946_v6, 64  ;;  %v1806_v61 = vadd.f32 %v1798_v45, %v1782_v42  ;;  %v1853_v49 = vadd.f32 %v1845_v16, %v1828_v1  ;;  %v1681_v55 = vadd.f32 %v3007_v53, %v3226_v21  ;;  %v1775_v34 = vmul.f32 %v1767_v54, %v2812_v7  ;;  %v1792_v58 = vld [vmem:[#allocation2 + $0x189] sm:$0xff] }
 0x1f5   : > { %v1900_v57 = vadd.f32 %v1892_v28, %v1876_v30  ;;  %v1799_v46 = vmul.f32 %v1791_v29, %v2816_v9  ;;  %v1846_v36 = vmul.f32 %v1767_v54, %v2821_v17  ;;  %v1870_v32 = vmul.f32 %v1791_v29, %v2826_v22  ;;  %v1889_v28 = vld [vmem:[#allocation2 + $0x1a2] sm:$0xff] }
 0x1f6   : > { %v1945_v60 = vld [vmem:[#allocation3 + $0x78] sm:$0xff]  ;;  %v1830_v20 = vadd.f32 %v1822_v51, %v1806_v61  ;;  %v1877_v47 = vadd.f32 %v1869_v31, %v1853_v49  ;;  %1689 = vst.msk [vmem:[#allocation3 + $0x90] sm:$0xff] %vm469_vm1, %v1681_v55  ;;  %v1783_v1 = vadd.f32 %v1775_v34, %v1758_v11  ;;  %v1682_v21 = vadd.f32 %v3007_v53, %v3236_v35 }
 0x1f7   : > { %1977 = vxpose.xlu0.b32.end [16/16] (narrow) %v1945_v60, 64  ;;  %v1947_v52 = vld [vmem:[#allocation3 + $0x88] sm:$0xff]  ;;  %v1908_v44 = vmul.f32 %v3282_v14, %v1900_v57  ;;  %v1854_v4 = vadd.f32 %v1846_v36, %v1829_v43  ;;  %v1848_v12 = vmul.f32 %v1840_v13, %v2821_v17  ;;  %v1849_v19 = vmul.f32 %v1841_v33, %v2821_v17  ;;  %v1815_v35 = vld [vmem:[#allocation2 + $0x182] sm:$0xff] }
 0x1f8   : > { %1995 = vxpose.xlu1.b32.cont [2/16] (narrow) %v1947_v52, 64  ;;  %v1901_v0 = vadd.f32 %v1893_v10, %v1877_v47  ;;  %v1807_v37 = vadd.f32 %v1799_v46, %v1783_v1  ;;  %1690 = vst.msk [vmem:[#allocation3 + $0x98] sm:$0xff] %vm469_vm1, %v1682_v21  ;;  %v1872_v5 = vmul.f32 %v1864_v3, %v2826_v22 }
 0x1f9   : > { %v1873_v53 = vmul.f32 %v1865_v24, %v2826_v22  ;;  %v1878_v59 = vadd.f32 %v1870_v32, %v1854_v4  ;;  %v1776_v63 = vmul.f32 %v1768_v48, %v2812_v7  ;;  %v1800_v23 = vmul.f32 %v1792_v58, %v2816_v9  ;;  %v2528_v7 = vld [vmem:[%s3595_s6] ss:$0 sm:$0xff] }
 0x1fa   : > { %v1823_v30 = vmul.f32 %v1815_v35, %v2830_v25  ;;  %v1909_v2 = vmul.f32 %v3282_v14, %v1901_v0  ;;  %v1824_v8 = vmul.f32 %v1816_v15, %v2830_v25  ;;  %v1847_v41 = vmul.f32 %v1768_v48, %v2821_v17 }
 0x1fb   : > { %v1871_v11 = vmul.f32 %v1792_v58, %v2826_v22  ;;  %v1784_v45 = vadd.f32 %v1776_v63, %v1759_v56  ;;  %v1894_v42 = vmul.f32 %v3244_v40, %v1815_v35  ;;  %v1895_v51 = vmul.f32 %v3244_v40, %v1816_v15  ;;  %v1888_v56 = vld [vmem:[#allocation2 + $0x19a] sm:$0xff] }
 0x1fc   : > { %v1831_v50 = vadd.f32 %v1823_v30, %v1807_v37  ;;  %v1855_v16 = vadd.f32 %v1847_v41, %v1830_v20  ;;  %v1683_v9 = vadd.f32 %v2528_v7, %v3255_v26  ;;  %v1684_v31 = vadd.f32 %v2528_v7, %v3267_v39 }
 0x1fd   : > { %v1685_v25 = vadd.f32 %v2528_v7, %v3285_v18  ;;  %v1948_v17 = vld [vmem:[#allocation3 + $0x90] sm:$0xff]  ;;  %v1808_v54 = vadd.f32 %v1800_v23, %v1784_v45  ;;  %v1902_v29 = vadd.f32 %v1894_v42, %v1878_v59  ;;  %v1686_v6 = vadd.f32 %v2528_v7, %v3295_v62 }
 0x1fe   : > { %v1856_v22 = vadd.f32 %v1848_v12, %v1831_v50  ;;  %1996 = vxpose.xlu1.b32.cont [3/16] (narrow) %v1948_v17, 64  ;;  %v1879_v43 = vadd.f32 %v1871_v11, %v1855_v16  ;;  %1691 = vst.msk [vmem:[#allocation3 + $0xa0] sm:$0xff] %vm469_vm1, %v1683_v9  ;;  %1692 = vst.msk [vmem:[#allocation3 + $0xa8] sm:$0xff] %vm469_vm1, %v1684_v31  ;;  %v1914_v26 = vadd.f32 %v2528_v7, %v3330_v38 }
 0x1ff   : > { %1693 = vst.msk [vmem:[#allocation3 + $0xb0] sm:$0xff] %vm469_vm1, %v1685_v25  ;;  %v1915_v39 = vadd.f32 %v2528_v7, %v3341_v27  ;;  %v1916_v18 = vadd.f32 %v2528_v7, %v1908_v44  ;;  %v1832_v10 = vadd.f32 %v1824_v8, %v1808_v54  ;;  %v1910_v49 = vmul.f32 %v3282_v14, %v1902_v29  ;;  %v1949_v34 = vld [vmem:[#allocation3 + $0x98] sm:$0xff] }
 0x200   : > { %v1880_v61 = vadd.f32 %v1872_v5, %v1856_v22  ;;  %1694 = vst.msk [vmem:[#allocation3 + $0xb8] sm:$0xff] %vm469_vm1, %v1686_v6  ;;  %v1917_v62 = vadd.f32 %v2528_v7, %v1909_v2  ;;  %v1903_v55 = vadd.f32 %v1895_v51, %v1879_v43  ;;  %1922 = vst.msk [vmem:[#allocation3 + $0xc0] sm:$0xff] %vm469_vm1, %v1914_v26  ;;  %v2060_v43 = vld [vmem:[%s3596_s7 + $0x8] sm:$0xff] }
 0x201   : > { %1923 = vst.msk [vmem:[#allocation3 + $0xc8] sm:$0xff] %vm469_vm1, %v1915_v39  ;;  %1924 = vst.msk [vmem:[#allocation3 + $0xd0] sm:$0xff] %vm469_vm1, %v1916_v18  ;;  %v1896_v38 = vmul.f32 %v3244_v40, %v1888_v56  ;;  %v1857_v27 = vadd.f32 %v1849_v19, %v1832_v10  ;;  %v1918_v13 = vadd.f32 %v2528_v7, %v1910_v49  ;;  %v2061_v10 = vld [vmem:[%s3596_s7 + $0x10] sm:$0xff] }
 0x202   : > { %1925 = vst.msk [vmem:[#allocation3 + $0xd8] sm:$0xff] %vm469_vm1, %v1917_v62  ;;  %v1897_v33 = vmul.f32 %v3244_v40, %v1889_v28  ;;  %1997 = vxpose.xlu1.b32.cont [4/16] (narrow) %v1949_v34, 64  ;;  %v1911_v57 = vmul.f32 %v3282_v14, %v1903_v55  ;;  %v2059_v28 = vld [vmem:[%s3596_s7] sm:$0xff]  ;;  %v2062_v62 = vld [vmem:[%s3596_s7 + $0x18] sm:$0xff] }
 0x203   : > { %v1904_v46 = vadd.f32 %v1896_v38, %v1880_v61  ;;  %v1881_v36 = vadd.f32 %v1873_v53, %v1857_v27  ;;  %1926 = vst.msk [vmem:[#allocation3 + $0xe0] sm:$0xff] %vm469_vm1, %v1918_v13  ;;  %v2063_v13 = vld [vmem:[%s3596_s7 + $0x20] sm:$0xff] }
 0x204   : > { %v1919_v32 = vadd.f32 %v2528_v7, %v1911_v57 }
 0x205   : > { %v1912_v3 = vmul.f32 %v3282_v14, %v1904_v46  ;;  %v1950_v24 = vld [vmem:[#allocation3 + $0xa0] sm:$0xff]  ;;  %v1905_v60 = vadd.f32 %v1897_v33, %v1881_v36  ;;  %v1951_v40 = vld [vmem:[#allocation3 + $0xa8] sm:$0xff]  ;;  %v2064_v46 = vld [vmem:[%s3596_s7 + $0x28] sm:$0xff] }
 0x206   : > { %1998 = vxpose.xlu1.b32.cont [5/16] (narrow) %v1950_v24, 64  ;;  %1927 = vst.msk [vmem:[#allocation3 + $0xe8] sm:$0xff] %vm469_vm1, %v1919_v32  ;;  %v1952_v21 = vld [vmem:[#allocation3 + $0xb0] sm:$0xff] }
 0x207   : > { %v1920_v20 = vadd.f32 %v2528_v7, %v1912_v3  ;;  %v1913_v47 = vmul.f32 %v3282_v14, %v1905_v60  ;;  %v1953_v52 = vld [vmem:[#allocation3 + $0xb8] sm:$0xff]  ;;  %v1954_v44 = vld [vmem:[#allocation3 + $0xc0] sm:$0xff] }
 0x208   : > { %v1955_v4 = vld [vmem:[#allocation3 + $0xc8] sm:$0xff]  ;;  %v1956_v12 = vld [vmem:[#allocation3 + $0xd0] sm:$0xff] }
 0x209   : > { %1928 = vst.msk [vmem:[#allocation3 + $0xf0] sm:$0xff] %vm469_vm1, %v1920_v20  ;;  %v1921_v1 = vadd.f32 %v2528_v7, %v1913_v47  ;;  %v1957_v19 = vld [vmem:[#allocation3 + $0xd8] sm:$0xff] }
 0x20a   : > { %1999 = vxpose.xlu1.b32.cont [6/16] (narrow) %v1951_v40, 64  ;;  %v1958_v14 = vld [vmem:[#allocation3 + $0xe0] sm:$0xff] }
 0x20b   : > { %1929 = vst.msk [vmem:[#allocation3 + $0xf8] sm:$0xff] %vm469_vm1, %v1921_v1 }
 0x20d   : > { %v1959_v48 = vld [vmem:[#allocation3 + $0xe8] sm:$0xff] }
 0x20e   : > { %2000 = vxpose.xlu1.b32.cont [7/16] (narrow) %v1952_v21, 64  ;;  %v2065_v21 = vld [vmem:[%s3596_s7 + $0x30] sm:$0xff] }
 0x210   : > { %v1960_v58 = vld [vmem:[#allocation3 + $0xf0] sm:$0xff] }
 0x212   : > { %2001 = vxpose.xlu1.b32.cont [8/16] (narrow) %v1953_v52, 64  ;;  %v1961_v0 = vld [vmem:[#allocation3 + $0xf8] sm:$0xff] }
 0x216   : > { %2002 = vxpose.xlu1.b32.cont [9/16] (narrow) %v1954_v44, 64 }
 0x21a   : > { %2003 = vxpose.xlu1.b32.cont [10/16] (narrow) %v1955_v4, 64 }
 0x21e   : > { %2004 = vxpose.xlu1.b32.cont [11/16] (narrow) %v1956_v12, 64 }
 0x222   : > { %2005 = vxpose.xlu1.b32.cont [12/16] (narrow) %v1957_v19, 64 }
 0x226   : > { %2006 = vxpose.xlu1.b32.cont [13/16] (narrow) %v1958_v14, 64 }
 0x22a   : > { %2007 = vxpose.xlu1.b32.cont [14/16] (narrow) %v1959_v48, 64 }
 0x22e   : > { %2008 = vxpose.xlu1.b32.cont [15/16] (narrow) %v1960_v58, 64  ;;  %v2066_v58 = vld [vmem:[%s3596_s7 + $0x38] sm:$0xff] }
 0x232   : > { %2009 = vxpose.xlu1.b32.end [16/16] (narrow) %v1961_v0, 64 }
 0x237   : > { %v3404_v37 = vpop.trf.xlu0 }
 0x23b   : > { %v3406_v5 = vpop.trf.xlu0 }
 0x23f   : > { %v3408_v53 = vpop.trf.xlu0 }
 0x243   : > { %v3414_v59 = vpop.trf.xlu0 }
 0x247   : > { %v3422_v2 = vpop.trf.xlu0 }
 0x24b   : > { %v3430_v45 = vpop.trf.xlu0 }
 0x24f   : > { %v3438_v16 = vpop.trf.xlu0 }
 0x253   : > { %v3446_v25 = vpop.trf.xlu0 }
 0x272   : > { %v3410_v35 = vpop.trf.xlu1 }
 0x273   : > { %v2026_v15 = vadd.f32 %v3410_v35, %v3404_v37 }
 0x275   : > { %2027 = vadd.xlane.f32.xlu0 %v2026_v15 }
 0x276   : > { %v3416_v63 = vpop.trf.xlu1 }
 0x277   : > { %v2029_v23 = vadd.f32 %v3416_v63, %v3406_v5 }
 0x279   : > { %2030 = vadd.xlane.f32.xlu1 %v2029_v23 }
 0x27a   : > { %v3420_v30 = vpop.trf.xlu1 }
 0x27b   : > { %v2032_v8 = vadd.f32 %v3420_v30, %v3408_v53 }
 0x27d   : > { %2033 = vadd.xlane.f32.xlu0 %v2032_v8 }
 0x27e   : > { %v3426_v41 = vpop.trf.xlu1 }
 0x27f   : > { %v2035_v11 = vadd.f32 %v3426_v41, %v3414_v59 }
 0x281   : > { %2036 = vadd.xlane.f32.xlu0 %v2035_v11 }
 0x282   : > { %v3432_v50 = vpop.trf.xlu1 }
 0x283   : > { %v2038_v42 = vadd.f32 %v3432_v50, %v3422_v2 }
 0x285   : > { %2039 = vadd.xlane.f32.xlu1 %v2038_v42 }
 0x286   : > { %v3436_v51 = vpop.trf.xlu1 }
 0x287   : > { %v2041_v7 = vadd.f32 %v3436_v51, %v3430_v45 }
 0x289   : > { %2042 = vadd.xlane.f32.xlu0 %v2041_v7 }
 0x28a   : > { %v3442_v9 = vpop.trf.xlu1 }
 0x28b   : > { %v2044_v31 = vadd.f32 %v3442_v9, %v3438_v16 }
 0x28d   : > { %2045 = vadd.xlane.f32.xlu1 %v2044_v31 }
 0x28e   : > { %v3448_v17 = vpop.trf.xlu1 }
 0x28f   : > { %v2047_v54 = vadd.f32 %v3448_v17, %v3446_v25 }
 0x291   : > { %2048 = vadd.xlane.f32.xlu0 %v2047_v54 }
 0x2fe   : > { %v2028_v22 = vpop.xlane.xlu0 %2027 }
 0x2ff   : > { %v2051_v39 = vmul.f32 0.00390625, %v2028_v22 }
 0x301   : > { %v2067_v38 = vmul.f32 %v2059_v28, %v2051_v39  ;;  %v2106_v28 = vld [vmem:[%s3598_s9 + $0x38] sm:$0xff] }
 0x302   : > { %v2031_v29 = vpop.xlane.xlu1 %2030 }
 0x303   : > { %v2052_v56 = vmul.f32 0.00390625, %v2031_v29  ;;  %v2075_v32 = vsel %vm553_vm0, %v2067_v38, 0.0  ;;  %v2103_v38 = vld [vmem:[%s3598_s9 + $0x20] sm:$0xff] }
 0x305   : > { %v2068_v61 = vmul.f32 %v2060_v43, %v2052_v56  ;;  %v2096_v43 = vld [vmem:[%s3597_s8] sm:$0x1] }
 0x306   : > { %v2034_v6 = vpop.xlane.xlu0 %2033 }
 0x307   : > { %v2053_v18 = vmul.f32 0.00390625, %v2034_v6  ;;  %v2076_v33 = vsel %vm553_vm0, %v2068_v61, 0.0  ;;  %v3607_v61 = vld [vmem:[#allocation4_spill] sm:$0xff] }
 0x308   : > { %v2077_v20 = vadd.f32 %v2076_v33, %v2075_v32  ;;  %v2101_v32 = vld [vmem:[%s3598_s9 + $0x10] sm:$0xff] }
 0x309   : > { %v2069_v34 = vmul.f32 %v2061_v10, %v2053_v18  ;;  %v2105_v10 = vld [vmem:[%s3598_s9 + $0x30] sm:$0xff] }
 0x30a   : > { %v2037_v26 = vpop.xlane.xlu0 %2036 }
 0x30b   : > { %v2054_v49 = vmul.f32 0.00390625, %v2037_v26  ;;  %v2078_v3 = vsel %vm553_vm0, %v2069_v34, 0.0 }
 0x30c   : > { %v2079_v1 = vadd.f32 %v2078_v3, %v2077_v20 }
 0x30d   : > { %v2070_v57 = vmul.f32 %v2062_v62, %v2054_v49  ;;  %v3608_v49 = vsub.s32 0, %v3607_v61 }
 0x30e   : > { %v2040_v55 = vpop.xlane.xlu1 %2039 }
 0x30f   : > { %v2055_v27 = vmul.f32 0.00390625, %v2040_v55  ;;  %v2080_v47 = vsel %vm553_vm0, %v2070_v57, 0.0  ;;  %v2104_v55 = vld [vmem:[%s3598_s9 + $0x28] sm:$0xff] }
 0x310   : > { %v2081_v12 = vadd.f32 %v2080_v47, %v2079_v1  ;;  %v2100_v47 = vld [vmem:[%s3598_s9 + $0x8] sm:$0xff] }
 0x311   : > { %v2071_v24 = vmul.f32 %v2063_v13, %v2055_v27 }
 0x312   : > { %v2043_v36 = vpop.xlane.xlu0 %2042 }
 0x313   : > { %v2056_v60 = vmul.f32 0.00390625, %v2043_v36  ;;  %v2082_v44 = vsel %vm553_vm0, %v2071_v24, 0.0  ;;  %v2102_v36 = vld [vmem:[%s3598_s9 + $0x18] sm:$0xff] }
 0x314   : > { %v2083_v48 = vadd.f32 %v2082_v44, %v2081_v12 }
 0x315   : > { %v2072_v40 = vmul.f32 %v2064_v46, %v2056_v60 }
 0x316   : > { %v2046_v52 = vpop.xlane.xlu1 %2045 }
 0x317   : > { %v2057_v4 = vmul.f32 0.00390625, %v2046_v52  ;;  %v2084_v19 = vsel %vm553_vm0, %v2072_v40, 0.0  ;;  %v2099_v40 = vld [vmem:[%s3598_s9] sm:$0xff] }
 0x318   : > { %v2085_v8 = vadd.f32 %v2084_v19, %v2083_v48  ;;  %v2150_v19 = vld [vmem:[%s3599_s10 + $0x38] sm:$0xff] }
 0x319   : > { %v2073_v14 = vmul.f32 %v2065_v21, %v2057_v4 }
 0x31a   : > { %v2049_v0 = vpop.xlane.xlu0 %2048 }
 0x31b   : > { %v2086_v15 = vsel %vm553_vm0, %v2073_v14, 0.0  ;;  %v2058_v23 = vmul.f32 0.00390625, %v2049_v0  ;;  %v2149_v14 = vld [vmem:[%s3599_s10 + $0x30] sm:$0xff] }
 0x31c   : > { %v2087_v42 = vadd.f32 %v2086_v15, %v2085_v8  ;;  %v2147_v8 = vld [vmem:[%s3599_s10 + $0x20] sm:$0xff] }
 0x31d   : > { %v2074_v11 = vmul.f32 %v2066_v58, %v2058_v23  ;;  %v2148_v23 = vld [vmem:[%s3599_s10 + $0x28] sm:$0xff] }
 0x31f   : > { %v2088_v7 = vsel %vm553_vm0, %v2074_v11, 0.0 }
 0x320   : > { %v2089_v31 = vadd.f32 %v2088_v7, %v2087_v42 }
 0x322   : > { %v2090_v54 = vrot.slane %v2089_v31, 4 }
 0x324   : > { %v2091_v22 = vadd.f32 %v2090_v54, %v2089_v31 }
 0x326   : > { %v2092_v29 = vrot.slane %v2091_v22, 2 }
 0x328   : > { %v2093_v6 = vadd.f32 %v2092_v29, %v2091_v22 }
 0x32a   : > { %v2094_v56 = vrot.slane %v2093_v6, 1 }
 0x32c   : > { %v2095_v26 = vadd.f32 %v2094_v56, %v2093_v6 }
 0x32e   : > { %v2097_v39 = vadd.f32 %v2096_v43, %v2095_v26 }
 0x330   : > { %v2098_v18 = vmax.f32 %v2097_v39, 0.0 }
 0x332   : > { %v2110_v62 = vrot.slane %v2098_v18, %v3608_v49  ;;  %v2146_v18 = vld [vmem:[%s3599_s10 + $0x18] sm:$0xff] }
 0x334   : > { %v2118_v34 = vmul.f32 %v2110_v62, %v2106_v28  ;;  %v2117_v27 = vmul.f32 %v2110_v62, %v2105_v10  ;;  %v2116_v57 = vmul.f32 %v2110_v62, %v2104_v55  ;;  %v2115_v46 = vmul.f32 %v2110_v62, %v2103_v38  ;;  %v2145_v28 = vld [vmem:[%s3599_s10 + $0x10] sm:$0xff] }
 0x335   : > { %v2114_v60 = vmul.f32 %v2110_v62, %v2102_v36  ;;  %v2113_v20 = vmul.f32 %v2110_v62, %v2101_v32  ;;  %v2112_v52 = vmul.f32 %v2110_v62, %v2100_v47  ;;  %v2111_v44 = vmul.f32 %v2110_v62, %v2099_v40 }
 0x336   : > { %v2140_v13 = vsel %vm553_vm0, %v2118_v34, 0.0  ;;  %v2137_v33 = vsel %vm553_vm0, %v2117_v27, 0.0  ;;  %v2134_v3 = vsel %vm553_vm0, %v2116_v57, 0.0  ;;  %v2131_v24 = vsel %vm553_vm0, %v2115_v46, 0.0 }
 0x337   : > { %2141 = vadd.xlane.f32.xlu0 %v2140_v13  ;;  %2138 = vadd.xlane.f32.xlu1 %v2137_v33  ;;  %v2128_v1 = vsel %vm553_vm0, %v2114_v60, 0.0  ;;  %v2125_v21 = vsel %vm553_vm0, %v2113_v20, 0.0  ;;  %v2122_v4 = vsel %vm553_vm0, %v2112_v52, 0.0  ;;  %v2119_v12 = vsel %vm553_vm0, %v2111_v44, 0.0  ;;  %v2144_v13 = vld [vmem:[%s3599_s10 + $0x8] sm:$0xff]  ;;  %v2143_v33 = vld [vmem:[%s3599_s10] sm:$0xff] }
 0x33b   : > { %2135 = vadd.xlane.f32.xlu0 %v2134_v3  ;;  %2132 = vadd.xlane.f32.xlu1 %v2131_v24 }
 0x33f   : > { %2129 = vadd.xlane.f32.xlu0 %v2128_v1  ;;  %2126 = vadd.xlane.f32.xlu1 %v2125_v21 }
 0x343   : > { %2123 = vadd.xlane.f32.xlu0 %v2122_v4  ;;  %2120 = vadd.xlane.f32.xlu1 %v2119_v12 }
 0x3c0   : > { %v2142_v48 = vpop.xlane.xlu0 %2141  ;;  %v2139_v58 = vpop.xlane.xlu1 %2138 }
 0x3c1   : > { %v2158_v0 = vadd.f32 %v2150_v19, %v2142_v48  ;;  %v2157_v15 = vadd.f32 %v2149_v14, %v2139_v58 }
 0x3c3   : > { %v2166_v11 = vadd.f32 3.0, %v2158_v0  ;;  %v2165_v42 = vadd.f32 3.0, %v2157_v15 }
 0x3c4   : > { %v2136_v7 = vpop.xlane.xlu0 %2135  ;;  %v2133_v31 = vpop.xlane.xlu1 %2132 }
 0x3c5   : > { %v2174_v54 = vmax.f32 %v2166_v11, 0.0  ;;  %v2173_v22 = vmax.f32 %v2165_v42, 0.0  ;;  %v2156_v29 = vadd.f32 %v2148_v23, %v2136_v7  ;;  %v2155_v6 = vadd.f32 %v2147_v8, %v2133_v31  ;;  %v2388_v11 = vld [vmem:[%s3601_s12] sm:$0xff]  ;;  %v2389_v42 = vld [vmem:[%s3601_s12 + $0x8] sm:$0xff] }
 0x3c6   : > { %v2404_v7 = vld [vmem:[%s3602_s13] sm:$0xff]  ;;  %v2405_v31 = vld [vmem:[%s3602_s13 + $0x8] sm:$0xff] }
 0x3c7   : > { %v2182_v56 = vmin.f32 %v2174_v54, 6.0  ;;  %v2181_v43 = vmin.f32 %v2173_v22, 6.0  ;;  %v2164_v26 = vadd.f32 3.0, %v2156_v29  ;;  %v2163_v39 = vadd.f32 3.0, %v2155_v6 }
 0x3c8   : > { %v2130_v10 = vpop.xlane.xlu0 %2129  ;;  %v2127_v61 = vpop.xlane.xlu1 %2126 }
 0x3c9   : > { %v2190_v49 = vmul.f32 0.16666667, %v2182_v56  ;;  %v2189_v62 = vmul.f32 0.16666667, %v2181_v43  ;;  %v2172_v55 = vmax.f32 %v2164_v26, 0.0  ;;  %v2171_v38 = vmax.f32 %v2163_v39, 0.0 }
 0x3ca   : > { %v2154_v34 = vadd.f32 %v2146_v18, %v2130_v10  ;;  %v2153_v27 = vadd.f32 %v2145_v28, %v2127_v61 }
 0x3cb   : > { %v2179_v57 = vmin.f32 %v2171_v38, 6.0  ;;  %2228 = vperm.xlu0 %2519, %v2190_v49   ;;  %2223 = vperm.xlu1 %2520, %v2189_v62   ;;  %v2180_v24 = vmin.f32 %v2172_v55, 6.0 }
 0x3cc   : > { %v2162_v46 = vadd.f32 3.0, %v2154_v34  ;;  %v2161_v36 = vadd.f32 3.0, %v2153_v27  ;;  %v2124_v32 = vpop.xlane.xlu0 %2123  ;;  %v2121_v3 = vpop.xlane.xlu1 %2120 }
 0x3cd   : > { %v2187_v60 = vmul.f32 0.16666667, %v2179_v57  ;;  %v2152_v20 = vadd.f32 %v2144_v13, %v2124_v32  ;;  %v2151_v47 = vadd.f32 %v2143_v33, %v2121_v3  ;;  %v2188_v4 = vmul.f32 0.16666667, %v2180_v24 }
 0x3ce   : > { %v2170_v40 = vmax.f32 %v2162_v46, 0.0  ;;  %v2169_v1 = vmax.f32 %v2161_v36, 0.0 }
 0x3cf   : > { %v2160_v21 = vadd.f32 3.0, %v2152_v20  ;;  %v2159_v52 = vadd.f32 3.0, %v2151_v47  ;;  %2213 = vperm.xlu1 %2520, %v2187_v60  }
 0x3d0   : > { %v2177_v44 = vmin.f32 %v2169_v1, 6.0  ;;  %v2178_v12 = vmin.f32 %v2170_v40, 6.0 }
 0x3d1   : > { %v2168_v19 = vmax.f32 %v2160_v21, 0.0  ;;  %v2167_v14 = vmax.f32 %v2159_v52, 0.0 }
 0x3d2   : > { %v2185_v48 = vmul.f32 0.16666667, %v2177_v44  ;;  %v2186_v0 = vmul.f32 0.16666667, %v2178_v12 }
 0x3d3   : > { %v2175_v58 = vmin.f32 %v2167_v14, 6.0  ;;  %2218 = vperm.xlu1 %2520, %v2188_v4   ;;  %v2176_v15 = vmin.f32 %v2168_v19, 6.0 }
 0x3d4   : > { %2203 = vperm.xlu0 %2519, %v2185_v48  }
 0x3d5   : > { %v2183_v23 = vmul.f32 0.16666667, %v2175_v58  ;;  %v2184_v8 = vmul.f32 0.16666667, %v2176_v15 }
 0x3d7   : > { %2208 = vperm.xlu1 %2520, %v2186_v0  }
 0x3d8   : > { %2193 = vperm.xlu0 %2519, %v2183_v23  }
 0x3db   : > { %2198 = vperm.xlu1 %2520, %v2184_v8  }
 0x3dc   : > { %2392 = vperm.xlu0 %2519, %v2388_v11  }
 0x3df   : > { %2397 = vperm.xlu1 %2520, %v2389_v42  }
 0x3e0   : > { %2408 = vperm.xlu0 %2519, %v2404_v7  }
 0x3e3   : > { %2413 = vperm.xlu1 %2520, %v2405_v31  }
 0x446   : > { %v2229_v54 = vpop.permute.xlu0 %2228  ;;  %v2224_v22 = vpop.permute.xlu1 %2223 }
 0x447   : > { %v2245_v29 = vmul.f32 %v2229_v54, %v3446_v25  ;;  %v2246_v6 = vmul.f32 %v2229_v54, %v3448_v17  ;;  %v2243_v56 = vmul.f32 %v2224_v22, %v3438_v16  ;;  %v2244_v43 = vmul.f32 %v2224_v22, %v3442_v9 }
 0x449   : > { %v2261_v26 = vadd.f32 3.0, %v2245_v29  ;;  %v2262_v39 = vadd.f32 3.0, %v2246_v6  ;;  %v2259_v18 = vadd.f32 3.0, %v2243_v56  ;;  %v2260_v28 = vadd.f32 3.0, %v2244_v43 }
 0x44a   : > { %v2214_v10 = vpop.permute.xlu1 %2213 }
 0x44b   : > { %v2277_v61 = vmax.f32 %v2261_v26, 0.0  ;;  %v2275_v49 = vmax.f32 %v2259_v18, 0.0  ;;  %v2239_v62 = vmul.f32 %v2214_v10, %v3422_v2  ;;  %v2240_v55 = vmul.f32 %v2214_v10, %v3432_v50 }
 0x44c   : > { %v2278_v38 = vmax.f32 %v2262_v39, 0.0  ;;  %v2276_v34 = vmax.f32 %v2260_v28, 0.0 }
 0x44d   : > { %v2255_v25 = vadd.f32 3.0, %v2239_v62  ;;  %v2256_v27 = vadd.f32 3.0, %v2240_v55  ;;  %v2293_v13 = vmin.f32 %v2277_v61, 6.0  ;;  %v2291_v16 = vmin.f32 %v2275_v49, 6.0 }
 0x44e   : > { %v2219_v17 = vpop.permute.xlu1 %2218  ;;  %v2292_v24 = vmin.f32 %v2276_v34, 6.0  ;;  %v2294_v60 = vmin.f32 %v2278_v38, 6.0 }
 0x44f   : > { %v2204_v33 = vpop.permute.xlu0 %2203  ;;  %v2241_v9 = vmul.f32 %v2219_v17, %v3430_v45  ;;  %v2242_v57 = vmul.f32 %v2219_v17, %v3436_v51  ;;  %v2271_v46 = vmax.f32 %v2255_v25, 0.0  ;;  %v2272_v36 = vmax.f32 %v2256_v27, 0.0 }
 0x450   : > { %v2235_v32 = vmul.f32 %v2204_v33, %v3408_v53  ;;  %v2236_v2 = vmul.f32 %v2204_v33, %v3420_v30  ;;  %v2308_v23 = vmul.f32 %v2292_v24, %v2244_v43  ;;  %v2310_v8 = vmul.f32 %v2294_v60, %v2246_v6 }
 0x451   : > { %v2257_v3 = vadd.f32 3.0, %v2241_v9  ;;  %v2258_v50 = vadd.f32 3.0, %v2242_v57  ;;  %v2287_v20 = vmin.f32 %v2271_v46, 6.0  ;;  %v2288_v47 = vmin.f32 %v2272_v36, 6.0 }
 0x452   : > { %v2251_v40 = vadd.f32 3.0, %v2235_v32  ;;  %v2252_v1 = vadd.f32 3.0, %v2236_v2  ;;  %v2209_v21 = vpop.permute.xlu1 %2208  ;;  %v2307_v54 = vmul.f32 %v2291_v16, %v2243_v56  ;;  %v2324_v6 = vmul.f32 0.16666667, %v2308_v23 }
 0x453   : > { %v2273_v52 = vmax.f32 %v2257_v3, 0.0  ;;  %v2274_v44 = vmax.f32 %v2258_v50, 0.0  ;;  %v2194_v45 = vpop.permute.xlu0 %2193  ;;  %v2237_v51 = vmul.f32 %v2209_v21, %v3414_v59  ;;  %v2238_v4 = vmul.f32 %v2209_v21, %v3426_v41 }
 0x454   : > { %v2303_v12 = vmul.f32 %v2287_v20, %v2239_v62  ;;  %v2304_v53 = vmul.f32 %v2288_v47, %v2240_v55  ;;  %v2267_v19 = vmax.f32 %v2251_v40, 0.0  ;;  %v2268_v30 = vmax.f32 %v2252_v1, 0.0 }
 0x455   : > { %v2289_v14 = vmin.f32 %v2273_v52, 6.0  ;;  %v2290_v48 = vmin.f32 %v2274_v44, 6.0  ;;  %v2231_v58 = vmul.f32 %v2194_v45, %v3404_v37  ;;  %v2232_v0 = vmul.f32 %v2194_v45, %v3410_v35 }
 0x456   : > { %v2284_v15 = vmin.f32 %v2268_v30, 6.0  ;;  %v2309_v59 = vmul.f32 %v2293_v13, %v2245_v29  ;;  %v2253_v41 = vadd.f32 3.0, %v2237_v51  ;;  %v2254_v22 = vadd.f32 3.0, %v2238_v4  ;;  %v2199_v35 = vpop.permute.xlu1 %2198 }
 0x457   : > { %v2305_v11 = vmul.f32 %v2289_v14, %v2241_v9  ;;  %v2306_v42 = vmul.f32 %v2290_v48, %v2242_v57  ;;  %v2247_v7 = vadd.f32 3.0, %v2231_v58  ;;  %v2248_v31 = vadd.f32 3.0, %v2232_v0  ;;  %v2525_v48 = vld [vmem:[%s3600_s11] sm:$0xff]  }
 0x458   : > { %v2319_v26 = vmul.f32 0.16666667, %v2303_v12  ;;  %v2320_v39 = vmul.f32 0.16666667, %v2304_v53  ;;  %v2283_v18 = vmin.f32 %v2267_v19, 6.0  ;;  %v2300_v28 = vmul.f32 %v2284_v15, %v2236_v2 }
 0x459   : > { %v2321_v10 = vmul.f32 0.16666667, %v2305_v11  ;;  %v2322_v61 = vmul.f32 0.16666667, %v2306_v42  ;;  %v2269_v37 = vmax.f32 %v2253_v41, 0.0  ;;  %v2270_v49 = vmax.f32 %v2254_v22, 0.0 }
 0x45a   : > { %v2263_v62 = vmax.f32 %v2247_v7, 0.0  ;;  %v2264_v43 = vmax.f32 %v2248_v31, 0.0  ;;  %v2326_v55 = vmul.f32 0.16666667, %v2310_v8  ;;  %v2323_v25 = vmul.f32 0.16666667, %v2307_v54 }
 0x45b   : > { %v2285_v38 = vmin.f32 %v2269_v37, 6.0  ;;  %v2286_v34 = vmin.f32 %v2270_v49, 6.0  ;;  %v2325_v29 = vmul.f32 0.16666667, %v2309_v59  ;;  %v2299_v56 = vmul.f32 %v2283_v18, %v2235_v32  ;;  %v2529_v59 = vld [vmem:[%s2640_s22] sm:$0xff]  ;;  %v2530_v18 = vld [vmem:[%s2640_s22 + $0x8] sm:$0xff] }
 0x45c   : > { %v2316_v27 = vmul.f32 0.16666667, %v2300_v28  ;;  %v2336_v17 = vpack.c.bf16 %v2326_v55, %v2324_v6  ;;  %v2233_v13 = vmul.f32 %v2199_v35, %v3406_v5  ;;  %v2234_v57 = vmul.f32 %v2199_v35, %v3416_v63  ;;  %v2531_v37 = vld [vmem:[%s2640_s22 + $0x10] sm:$0xff] }
 0x45d   : > { %v2301_v16 = vmul.f32 %v2285_v38, %v2237_v51  ;;  %v2302_v33 = vmul.f32 %v2286_v34, %v2238_v4  ;;  %v2335_v9 = vpack.c.bf16 %v2325_v29, %v2323_v25  ;;  %v2279_v46 = vmin.f32 %v2263_v62, 6.0  ;;  %v2532_v62 = vld [vmem:[%s2640_s22 + $0x18] sm:$0xff] }
 0x45e   : > { %v2280_v36 = vmin.f32 %v2264_v43, 6.0  ;;  %2353 = vmatprep.subr.bf16.mxu1 %v2336_v17  ;;  %v2249_v2 = vadd.f32 3.0, %v2233_v13  ;;  %v2334_v3 = vpack.c.bf16 %v2322_v61, %v2320_v39  ;;  %v2250_v60 = vadd.f32 3.0, %v2234_v57 }
 0x45f   : > { %v2317_v50 = vmul.f32 0.16666667, %v2301_v16  ;;  %v2318_v24 = vmul.f32 0.16666667, %v2302_v33  ;;  %2354 = vmatpush1.bf16.msra.mxu1 %v2335_v9  ;;  %v2333_v20 = vpack.c.bf16 %v2321_v10, %v2319_v26  ;;  %v2315_v47 = vmul.f32 0.16666667, %v2299_v56 }
 0x460   : > { %v2265_v32 = vmax.f32 %v2249_v2, 0.0  ;;  %2355 = vmatprep.subr.bf16.mxu1 %v2334_v3  ;;  %v2266_v40 = vmax.f32 %v2250_v60, 0.0  ;;  %v2295_v1 = vmul.f32 %v2279_v46, %v2231_v58  ;;  %v2296_v52 = vmul.f32 %v2280_v36, %v2232_v0  ;;  %v2393_v58 = vpop.permute.xlu0 %2392  ;;  %v2398_v0 = vpop.permute.xlu1 %2397 }
 0x461   : > { %v2332_v5 = vpack.c.bf16 %v2318_v24, %v2316_v27  ;;  %v2331_v63 = vpack.c.bf16 %v2317_v50, %v2315_v47 }
 0x462   : > { %v2281_v21 = vmin.f32 %v2265_v32, 6.0  ;;  %v2282_v44 = vmin.f32 %v2266_v40, 6.0  ;;  %v2311_v4 = vmul.f32 0.16666667, %v2295_v1  ;;  %v2312_v53 = vmul.f32 0.16666667, %v2296_v52 }
 0x463   : > { %2356 = vmatpush1.bf16.msra.mxu1 %v2333_v20 }
 0x464   : > { %v2297_v45 = vmul.f32 %v2281_v21, %v2233_v13  ;;  %2357 = vmatprep.subr.bf16.mxu1 %v2332_v5  ;;  %v2298_v51 = vmul.f32 %v2282_v44, %v2234_v57  ;;  %v2409_v8 = vpop.permute.xlu0 %2408  ;;  %v2414_v26 = vpop.permute.xlu1 %2413 }
 0x466   : > { %v2313_v12 = vmul.f32 0.16666667, %v2297_v45  ;;  %v2314_v19 = vmul.f32 0.16666667, %v2298_v51 }
 0x467   : > { %2358 = vmatpush1.bf16.msra.mxu1 %v2331_v63 }
 0x468   : > { %v2329_v30 = vpack.c.bf16 %v2313_v12, %v2311_v4  ;;  %v2330_v14 = vpack.c.bf16 %v2314_v19, %v2312_v53 }
 0x46a   : > { %2359 = vmatprep.subr.bf16.mxu1 %v2330_v14 }
 0x46b   : > { %2360 = vmatpush1.bf16.msra.mxu1 %v2329_v30 }
 0x46e   : > { %2504 = vmatmul.mubr.msk.bf16.vlgmr.msra.gmra.mxu1 %vm469_vm1, %v2525_v48 }
 0x52e   : > { %v2379_v15 = vpop.f32.mrf.mxu1 }
 0x52f   : > { %v2400_v23 = vmul.f32 %v2393_v58, %v2379_v15 }
 0x530   : > { %v2381_v11 = vpop.f32.mrf.mxu1 }
 0x531   : > { %v2416_v42 = vadd.f32 %v2409_v8, %v2400_v23  ;;  %v2401_v7 = vmul.f32 %v2393_v58, %v2381_v11 }
 0x532   : > { %v2383_v31 = vpop.f32.mrf.mxu1 }
 0x533   : > { %v2420_v54 = vadd.f32 %v2529_v59, %v2416_v42  ;;  %v2417_v41 = vadd.f32 %v2409_v8, %v2401_v7  ;;  %v2402_v22 = vmul.f32 %v2398_v0, %v2383_v31 }
 0x534   : > { %v2385_v39 = vpop.f32.mrf.mxu1 }
 0x535   : > { %2424 = vst [vmem:[%s467_s27] sm:$0xff] %v2420_v54  ;;  %v2421_v28 = vadd.f32 %v2530_v18, %v2417_v41  ;;  %v2418_v10 = vadd.f32 %v2414_v26, %v2402_v22  ;;  %v2403_v61 = vmul.f32 %v2398_v0, %v2385_v39 }
 0x537   : > { %2425 = vst [vmem:[%s467_s27 + $0x8] sm:$0xff] %v2421_v28  ;;  %v2422_v49 = vadd.f32 %v2531_v37, %v2418_v10  ;;  %v2419_v35 = vadd.f32 %v2414_v26, %v2403_v61 }
 0x539   : > { %2426 = vst [vmem:[%s467_s27 + $0x10] sm:$0xff] %v2422_v49  ;;  %v2423_v43 = vadd.f32 %v2532_v62, %v2419_v35 }
 0x53b   : > { %2427 = vst [vmem:[%s467_s27 + $0x18] sm:$0xff] %v2423_v43 }
 0x53c PF: > { %s24_s29 = sadd.s32 1, %s2539_s29  }
 0x53d   : > { %p21_p4 = scmp.ge.s32.totalorder %s24_s29, 4  }
 0x53f   :  { %23 = sbr.rel (!%p21_p4) target bundleno = 1 (0x1), region = 118 }

</bundles_post_ra>
